<compile_context>
chip_gen: v6e
topology: v6e:2x2x1
jax: 0.10.0
libtpu: 0.0.40
codegen_flags: <defaults>
</compile_context>

<pallas_src>
import functools
import math

import jax
import jax.numpy as jnp
from jax.experimental import pallas as pl
from jax.experimental.pallas import tpu as pltpu

# ---------------- small, module-consistent hyper-parameters ------------------
B = 2
SEQ = 8
VOCAB = 100
BERT_DIM = 32          # bert.config.hidden_size
BERT_HEADS = 4
BERT_FF = 64
BERT_LAYERS = 4        # >= NUM_HS, so text[-4:] are all encoder-layer outputs
NUM_HS = 4             # torch.stack([dropout(x) for x in text[-4:]]).mean(0)
LN_EPS = 1e-12
BN_EPS = 1e-5


# ================================ fused kernel ================================
def _bert_module_kernel(pool_ref, bias_ref, emb_ref, emb_ln_ref,
                        wqkv_ref, bqkv_ref, wo_ref, bo_ref, ln1_ref,
                        wi_ref, bi_ref, wo2_ref, bo2_ref, ln2_ref, bn_ref,
                        out_ref, *, num_layers, num_hs, num_heads):
    hidden = emb_ref.shape[-1]
    hd = hidden // num_heads
    scale = 1.0 / math.sqrt(hd)

    def layer_norm(v, gb):
        g, b = gb[0:1, :], gb[1:2, :]
        mu = jnp.mean(v, axis=-1, keepdims=True)
        var = jnp.mean(v * v, axis=-1, keepdims=True) - mu * mu   # one-pass LN
        return (v - mu) * jax.lax.rsqrt(var + LN_EPS) * g + b

    def gelu_tanh(v):
        # TODO(synk): HF BERT uses exact-erf GELU; tanh approximation used
        # in-kernel (EUP-friendly, difference ~1e-3).
        c = math.sqrt(2.0 / math.pi)
        return 0.5 * v * (1.0 + jnp.tanh(c * (v + 0.044715 * v * v * v)))

    attn_bias = bias_ref[...]                                     # (B*S, B*S), mask-derived
    x = layer_norm(emb_ref[...], emb_ln_ref[...])                 # embedding LayerNorm
    hs_acc = jnp.zeros_like(x)                                    # sum of last-4 hidden states

    for l in range(num_layers):                                   # unrolled layer loop
        # ---- self-attention: one fused QKV matmul, flattened-batch scores ----
        qkv = jnp.dot(x, wqkv_ref[l], preferred_element_type=jnp.float32) + bqkv_ref[l]
        heads = []
        for h in range(num_heads):
            q = qkv[:, h * hd:(h + 1) * hd]
            k = qkv[:, hidden + h * hd:hidden + (h + 1) * hd]
            v = qkv[:, 2 * hidden + h * hd:2 * hidden + (h + 1) * hd]
            s = jax.lax.dot_general(q, k, (((1,), (1,)), ((), ())),
                                    preferred_element_type=jnp.float32) * scale
            s = s + attn_bias                                     # HF key mask + cross-batch block
            m = jnp.max(s, axis=-1, keepdims=True)
            p = jnp.exp(s - m)
            p = p * pl.reciprocal(jnp.sum(p, axis=-1, keepdims=True), approx=True)
            heads.append(jnp.dot(p, v, preferred_element_type=jnp.float32))  # (B*S, HD)
        ctx = jnp.concatenate(heads, axis=-1)                     # (B*S, H)
        a = jnp.dot(ctx, wo_ref[l], preferred_element_type=jnp.float32) + bo_ref[l]
        x = layer_norm(x + a, ln1_ref[l])                         # add & norm

        # ---- feed-forward -----------------------------------------------------
        ff = jnp.dot(x, wi_ref[l], preferred_element_type=jnp.float32) + bi_ref[l]
        ff = gelu_tanh(ff)
        ff = jnp.dot(ff, wo2_ref[l], preferred_element_type=jnp.float32) + bo2_ref[l]
        x = layer_norm(x + ff, ln2_ref[l])                        # add & norm

        # ---- accumulate hidden states feeding torch.stack(text[-4:]).mean(0) --
        if l >= num_layers - num_hs:
            hs_acc = hs_acc + x

    # ---- epilogue: masked sequence average (as one pooling matmul) + BN -----
    seq_feat = hs_acc * (1.0 / num_hs)                            # (B*S, H)
    pooled = jnp.dot(pool_ref[...], seq_feat,
                     preferred_element_type=jnp.float32)          # (B, H): mask-weighted mean
    g, beta = bn_ref[0:1, :], bn_ref[1:2, :]
    mu, var = bn_ref[2:3, :], bn_ref[3:4, :]
    out_ref[...] = (pooled - mu) * jax.lax.rsqrt(var + BN_EPS) * g + beta   # bert_bn (eval)


# ================================ forward wrapper =============================
def bert_module_forward(params, input_ids, attention_mask):
    bsz, s = input_ids.shape
    H = BERT_DIM
    mask = attention_mask.astype(jnp.float32)                     # (B, S)

    # TODO(synk): token-embedding lookup is a data-dependent gather; kept in JAX glue.
    we = jnp.take(params['word'], input_ids, axis=0)              # (B, S, H)
    pe = params['pos'][None, :s, :]
    te = params['type'][0][None, None, :]                         # token_type_ids == 0
    emb = (we + pe + te).reshape(bsz * s, H)                      # pre-LN embedding sum

    # Mask-derived attention bias over flattened (B*S) rows, built ONCE:
    #  same-batch blocks get the HF -10000 key mask, cross-batch pairs -1e9.
    col_b = jnp.arange(bsz * s, dtype=jnp.int32) // s
    key_bias = ((1.0 - mask) * -10000.0).reshape(bsz * s)
    attn_bias = jnp.where(col_b[:, None] == col_b[None, :],
                          key_bias[None, :], -1e9).astype(jnp.float32)      # (B*S, B*S)

    # Pooling matrix: pooled[b] = sum_s mask[b,s]/sum(mask[b]) * feat[b*S+s]
    denom = jnp.maximum(jnp.sum(mask, axis=-1, keepdims=True), 1.0)         # zero-mask guard
    w = (mask / denom).reshape(bsz * s)
    row_b = jnp.arange(bsz, dtype=jnp.int32)
    pool = jnp.where(row_b[:, None] == col_b[None, :],
                     w[None, :], 0.0).astype(jnp.float32)                   # (B, B*S)

    kernel = functools.partial(_bert_module_kernel, num_layers=BERT_LAYERS,
                               num_hs=NUM_HS, num_heads=BERT_HEADS)

    inputs = (pool, attn_bias, emb, params['emb_ln'],
              params['wqkv'], params['bqkv'], params['wo'], params['bo'], params['ln1'],
              params['wi'], params['bi'], params['wo2'], params['bo2'], params['ln2'],
              params['bn'])
    vmem_spec = lambda: pl.BlockSpec(memory_space=pltpu.MemorySpace.VMEM)

    return pl.pallas_call(
        kernel,
        out_shape=jax.ShapeDtypeStruct((bsz, H), jnp.float32),
        in_specs=[vmem_spec() for _ in inputs],
        out_specs=vmem_spec(),
    )(*inputs)


# ================================ parameter init ==============================
def init_params(key):
    """Canonical (PyTorch-structured) synthetic BERT weights; (in, out) convention."""
    H, FF, L = BERT_DIM, BERT_FF, BERT_LAYERS
    ks = iter(jax.random.split(key, 16))
    nk = lambda: next(ks)
    sc = 0.02
    return {
        'word': jax.random.normal(nk(), (VOCAB, H), jnp.float32) * sc,
        'pos': jax.random.normal(nk(), (SEQ, H), jnp.float32) * sc,
        'type': jax.random.normal(nk(), (2, H), jnp.float32) * sc,
        'emb_ln_g': jnp.ones((H,), jnp.float32), 'emb_ln_b': jnp.zeros((H,), jnp.float32),
        'wq': jax.random.normal(nk(), (L, H, H), jnp.float32) * sc, 'bq': jnp.zeros((L, H), jnp.float32),
        'wk': jax.random.normal(nk(), (L, H, H), jnp.float32) * sc, 'bk': jnp.zeros((L, H), jnp.float32),
        'wv': jax.random.normal(nk(), (L, H, H), jnp.float32) * sc, 'bv': jnp.zeros((L, H), jnp.float32),
        'wo': jax.random.normal(nk(), (L, H, H), jnp.float32) * sc, 'bo': jnp.zeros((L, H), jnp.float32),
        'ln1_g': jnp.ones((L, H), jnp.float32), 'ln1_b': jnp.zeros((L, H), jnp.float32),
        'wi': jax.random.normal(nk(), (L, H, FF), jnp.float32) * sc, 'bi': jnp.zeros((L, FF), jnp.float32),
        'wo2': jax.random.normal(nk(), (L, FF, H), jnp.float32) * sc, 'bo2': jnp.zeros((L, H), jnp.float32),
        'ln2_g': jnp.ones((L, H), jnp.float32), 'ln2_b': jnp.zeros((L, H), jnp.float32),
        'bn_g': jnp.ones((H,), jnp.float32), 'bn_b': jnp.zeros((H,), jnp.float32),
        'bn_m': jnp.zeros((H,), jnp.float32), 'bn_v': jnp.ones((H,), jnp.float32),
    }


def pack_params(p):
    """One-time repack into the fused kernel layout (done once, off the hot path)."""
    H, FF, L = BERT_DIM, BERT_FF, BERT_LAYERS
    return {
        'word': p['word'], 'pos': p['pos'], 'type': p['type'],
        'emb_ln': jnp.stack([p['emb_ln_g'], p['emb_ln_b']], axis=0),            # (2, H)
        # fused QKV: head h = output columns [h*HD:(h+1)*HD] of each H-wide slab
        'wqkv': jnp.concatenate([p['wq'], p['wk'], p['wv']], axis=-1),          # (L, H, 3H)
        'bqkv': jnp.concatenate([p['bq'], p['bk'], p['bv']], axis=-1)[:, None, :],  # (L, 1, 3H)
        'wo': p['wo'],                                                          # (L, H, H)
        'bo': p['bo'].reshape(L, 1, H),
        'ln1': jnp.stack([p['ln1_g'], p['ln1_b']], axis=1),                     # (L, 2, H)
        'wi': p['wi'], 'bi': p['bi'].reshape(L, 1, FF),
        'wo2': p['wo2'], 'bo2': p['bo2'].reshape(L, 1, H),
        'ln2': jnp.stack([p['ln2_g'], p['ln2_b']], axis=1),                     # (L, 2, H)
        'bn': jnp.stack([p['bn_g'], p['bn_b'], p['bn_m'], p['bn_v']], axis=0),  # (4, H)
    }


# =================================== main =====================================
if __name__ == "__main__":
    key = jax.random.PRNGKey(0)
    pkey, tkey = jax.random.split(key)

    params = pack_params(init_params(pkey))
    input_ids = jax.random.randint(tkey, (B, SEQ), 0, VOCAB, dtype=jnp.int32)
    attention_mask = jnp.array([[1] * SEQ, [1] * 5 + [0] * 3], jnp.float32)     # (B, S)

    fwd = jax.jit(bert_module_forward)
    text = fwd(params, input_ids, attention_mask)
    jax.block_until_ready(text)

    assert text.shape == (B, BERT_DIM) and text.dtype == jnp.float32
    assert bool(jnp.all(jnp.isfinite(text)))
    print("KERNEL_OK")
</pallas_src>

<mosaic_0001>
module attributes {stable_mosaic.version = 11 : i64} {
  func.func @_bert_module_kernel(%arg0: memref<2x16xf32, #tpu.memory_space<vmem>>, %arg1: memref<16x16xf32, #tpu.memory_space<vmem>>, %arg2: memref<16x32xf32, #tpu.memory_space<vmem>>, %arg3: memref<2x32xf32, #tpu.memory_space<vmem>>, %arg4: memref<4x32x96xf32, #tpu.memory_space<vmem>>, %arg5: memref<4x1x96xf32, #tpu.memory_space<vmem>>, %arg6: memref<4x32x32xf32, #tpu.memory_space<vmem>>, %arg7: memref<4x1x32xf32, #tpu.memory_space<vmem>>, %arg8: memref<4x2x32xf32, #tpu.memory_space<vmem>>, %arg9: memref<4x32x64xf32, #tpu.memory_space<vmem>>, %arg10: memref<4x1x64xf32, #tpu.memory_space<vmem>>, %arg11: memref<4x64x32xf32, #tpu.memory_space<vmem>>, %arg12: memref<4x1x32xf32, #tpu.memory_space<vmem>>, %arg13: memref<4x2x32xf32, #tpu.memory_space<vmem>>, %arg14: memref<4x32xf32, #tpu.memory_space<vmem>>, %arg15: memref<2x32xf32, #tpu.memory_space<vmem>>) attributes {dimension_semantics = [], scalar_prefetch = 0 : i64, scratch_operands = 0 : i64, tpu.core_type = #tpu.core_type<tc>} {
    %c0 = arith.constant 0 : index
    %c0_0 = arith.constant 0 : index
    %0 = vector.load %arg1[%c0, %c0_0] : memref<16x16xf32, #tpu.memory_space<vmem>>, vector<16x16xf32>
    %c0_1 = arith.constant 0 : index
    %c0_2 = arith.constant 0 : index
    %1 = vector.load %arg2[%c0_1, %c0_2] : memref<16x32xf32, #tpu.memory_space<vmem>>, vector<16x32xf32>
    %c0_3 = arith.constant 0 : index
    %c0_4 = arith.constant 0 : index
    %2 = vector.load %arg3[%c0_3, %c0_4] : memref<2x32xf32, #tpu.memory_space<vmem>>, vector<2x32xf32>
    %3 = vector.extract_strided_slice %2 {offsets = [0, 0], sizes = [1, 32], strides = [1, 1]} : vector<2x32xf32> to vector<1x32xf32>
    %4 = vector.extract_strided_slice %2 {offsets = [1, 0], sizes = [1, 32], strides = [1, 1]} : vector<2x32xf32> to vector<1x32xf32>
    %cst = arith.constant dense<0.000000e+00> : vector<16xf32>
    %5 = vector.multi_reduction <add>, %1, %cst [1] : vector<16x32xf32> to vector<16xf32>
    %6 = vector.shape_cast %5 : vector<16xf32> to vector<16x1xf32>
    %cst_5 = arith.constant 3.200000e+01 : f32
    %7 = vector.broadcast %cst_5 : f32 to vector<16x1xf32>
    %8 = arith.divf %6, %7 : vector<16x1xf32>
    %9 = arith.mulf %1, %1 : vector<16x32xf32>
    %cst_6 = arith.constant dense<0.000000e+00> : vector<16xf32>
    %10 = vector.multi_reduction <add>, %9, %cst_6 [1] : vector<16x32xf32> to vector<16xf32>
    %11 = vector.shape_cast %10 : vector<16xf32> to vector<16x1xf32>
    %cst_7 = arith.constant 3.200000e+01 : f32
    %12 = vector.broadcast %cst_7 : f32 to vector<16x1xf32>
    %13 = arith.divf %11, %12 : vector<16x1xf32>
    %14 = arith.mulf %8, %8 : vector<16x1xf32>
    %15 = arith.subf %13, %14 : vector<16x1xf32>
    %16 = vector.broadcast %8 : vector<16x1xf32> to vector<16x32xf32>
    %17 = arith.subf %1, %16 : vector<16x32xf32>
    %cst_8 = arith.constant 9.99999996E-13 : f32
    %18 = vector.broadcast %cst_8 : f32 to vector<16x1xf32>
    %19 = arith.addf %15, %18 : vector<16x1xf32>
    %20 = math.rsqrt %19 : vector<16x1xf32>
    %21 = vector.broadcast %20 : vector<16x1xf32> to vector<16x32xf32>
    %22 = arith.mulf %17, %21 : vector<16x32xf32>
    %23 = vector.broadcast %3 : vector<1x32xf32> to vector<16x32xf32>
    %24 = arith.mulf %22, %23 : vector<16x32xf32>
    %25 = vector.broadcast %4 : vector<1x32xf32> to vector<16x32xf32>
    %26 = arith.addf %24, %25 : vector<16x32xf32>
    %cst_9 = arith.constant 0.000000e+00 : f32
    %27 = vector.broadcast %cst_9 : f32 to vector<16x32xf32>
    %c0_10 = arith.constant 0 : index
    %c0_11 = arith.constant 0 : index
    %c0_12 = arith.constant 0 : index
    %28 = vector.load %arg4[%c0_10, %c0_11, %c0_12] : memref<4x32x96xf32, #tpu.memory_space<vmem>>, vector<1x32x96xf32>
    %29 = vector.shape_cast %28 : vector<1x32x96xf32> to vector<32x96xf32>
    %cst_13 = arith.constant dense<0.000000e+00> : vector<16x96xf32>
    %30 = tpu.matmul %26, %29, %cst_13 {dimension_numbers = #tpu.dot_dimension_numbers<[1], [0], [0], [1], [0, 0, 1, 1], [], []>} : vector<16x32xf32>, vector<32x96xf32>, vector<16x96xf32> -> vector<16x96xf32>
    %c0_14 = arith.constant 0 : index
    %c0_15 = arith.constant 0 : index
    %c0_16 = arith.constant 0 : index
    %31 = vector.load %arg5[%c0_14, %c0_15, %c0_16] : memref<4x1x96xf32, #tpu.memory_space<vmem>>, vector<1x1x96xf32>
    %32 = vector.shape_cast %31 : vector<1x1x96xf32> to vector<1x96xf32>
    %33 = vector.broadcast %32 : vector<1x96xf32> to vector<16x96xf32>
    %34 = arith.addf %30, %33 : vector<16x96xf32>
    %35 = vector.extract_strided_slice %34 {offsets = [0, 0], sizes = [16, 8], strides = [1, 1]} : vector<16x96xf32> to vector<16x8xf32>
    %36 = vector.extract_strided_slice %34 {offsets = [0, 32], sizes = [16, 8], strides = [1, 1]} : vector<16x96xf32> to vector<16x8xf32>
    %37 = vector.extract_strided_slice %34 {offsets = [0, 64], sizes = [16, 8], strides = [1, 1]} : vector<16x96xf32> to vector<16x8xf32>
    %cst_17 = arith.constant dense<0.000000e+00> : vector<16x16xf32>
    %38 = tpu.matmul %35, %36, %cst_17 {dimension_numbers = #tpu.dot_dimension_numbers<[1], [1], [0], [0], [0, 0, 1, 0], [], []>} : vector<16x8xf32>, vector<16x8xf32>, vector<16x16xf32> -> vector<16x16xf32>
    %cst_18 = arith.constant 0.353553385 : f32
    %39 = vector.broadcast %cst_18 : f32 to vector<16x16xf32>
    %40 = arith.mulf %38, %39 : vector<16x16xf32>
    %41 = arith.addf %40, %0 : vector<16x16xf32>
    %cst_19 = arith.constant dense<0xFF800000> : vector<16xf32>
    %42 = vector.multi_reduction <maximumf>, %41, %cst_19 [1] : vector<16x16xf32> to vector<16xf32>
    %43 = vector.shape_cast %42 : vector<16xf32> to vector<16x1xf32>
    %44 = vector.broadcast %43 : vector<16x1xf32> to vector<16x16xf32>
    %45 = arith.subf %41, %44 : vector<16x16xf32>
    %46 = math.exp %45 : vector<16x16xf32>
    %cst_20 = arith.constant dense<0.000000e+00> : vector<16xf32>
    %47 = vector.multi_reduction <add>, %46, %cst_20 [1] : vector<16x16xf32> to vector<16xf32>
    %48 = vector.shape_cast %47 : vector<16xf32> to vector<16x1xf32>
    %49 = tpu.reciprocal %48 {approx = true} : vector<16x1xf32> -> vector<16x1xf32>
    %50 = vector.broadcast %49 : vector<16x1xf32> to vector<16x16xf32>
    %51 = arith.mulf %46, %50 : vector<16x16xf32>
    %cst_21 = arith.constant dense<0.000000e+00> : vector<16x8xf32>
    %52 = tpu.matmul %51, %37, %cst_21 {dimension_numbers = #tpu.dot_dimension_numbers<[1], [0], [0], [1], [0, 0, 1, 1], [], []>} : vector<16x16xf32>, vector<16x8xf32>, vector<16x8xf32> -> vector<16x8xf32>
    %53 = vector.extract_strided_slice %34 {offsets = [0, 8], sizes = [16, 8], strides = [1, 1]} : vector<16x96xf32> to vector<16x8xf32>
    %54 = vector.extract_strided_slice %34 {offsets = [0, 40], sizes = [16, 8], strides = [1, 1]} : vector<16x96xf32> to vector<16x8xf32>
    %55 = vector.extract_strided_slice %34 {offsets = [0, 72], sizes = [16, 8], strides = [1, 1]} : vector<16x96xf32> to vector<16x8xf32>
    %cst_22 = arith.constant dense<0.000000e+00> : vector<16x16xf32>
    %56 = tpu.matmul %53, %54, %cst_22 {dimension_numbers = #tpu.dot_dimension_numbers<[1], [1], [0], [0], [0, 0, 1, 0], [], []>} : vector<16x8xf32>, vector<16x8xf32>, vector<16x16xf32> -> vector<16x16xf32>
    %cst_23 = arith.constant 0.353553385 : f32
    %57 = vector.broadcast %cst_23 : f32 to vector<16x16xf32>
    %58 = arith.mulf %56, %57 : vector<16x16xf32>
    %59 = arith.addf %58, %0 : vector<16x16xf32>
    %cst_24 = arith.constant dense<0xFF800000> : vector<16xf32>
    %60 = vector.multi_reduction <maximumf>, %59, %cst_24 [1] : vector<16x16xf32> to vector<16xf32>
    %61 = vector.shape_cast %60 : vector<16xf32> to vector<16x1xf32>
    %62 = vector.broadcast %61 : vector<16x1xf32> to vector<16x16xf32>
    %63 = arith.subf %59, %62 : vector<16x16xf32>
    %64 = math.exp %63 : vector<16x16xf32>
    %cst_25 = arith.constant dense<0.000000e+00> : vector<16xf32>
    %65 = vector.multi_reduction <add>, %64, %cst_25 [1] : vector<16x16xf32> to vector<16xf32>
    %66 = vector.shape_cast %65 : vector<16xf32> to vector<16x1xf32>
    %67 = tpu.reciprocal %66 {approx = true} : vector<16x1xf32> -> vector<16x1xf32>
    %68 = vector.broadcast %67 : vector<16x1xf32> to vector<16x16xf32>
    %69 = arith.mulf %64, %68 : vector<16x16xf32>
    %cst_26 = arith.constant dense<0.000000e+00> : vector<16x8xf32>
    %70 = tpu.matmul %69, %55, %cst_26 {dimension_numbers = #tpu.dot_dimension_numbers<[1], [0], [0], [1], [0, 0, 1, 1], [], []>} : vector<16x16xf32>, vector<16x8xf32>, vector<16x8xf32> -> vector<16x8xf32>
    %71 = vector.extract_strided_slice %34 {offsets = [0, 16], sizes = [16, 8], strides = [1, 1]} : vector<16x96xf32> to vector<16x8xf32>
    %72 = vector.extract_strided_slice %34 {offsets = [0, 48], sizes = [16, 8], strides = [1, 1]} : vector<16x96xf32> to vector<16x8xf32>
    %73 = vector.extract_strided_slice %34 {offsets = [0, 80], sizes = [16, 8], strides = [1, 1]} : vector<16x96xf32> to vector<16x8xf32>
    %cst_27 = arith.constant dense<0.000000e+00> : vector<16x16xf32>
    %74 = tpu.matmul %71, %72, %cst_27 {dimension_numbers = #tpu.dot_dimension_numbers<[1], [1], [0], [0], [0, 0, 1, 0], [], []>} : vector<16x8xf32>, vector<16x8xf32>, vector<16x16xf32> -> vector<16x16xf32>
    %cst_28 = arith.constant 0.353553385 : f32
    %75 = vector.broadcast %cst_28 : f32 to vector<16x16xf32>
    %76 = arith.mulf %74, %75 : vector<16x16xf32>
    %77 = arith.addf %76, %0 : vector<16x16xf32>
    %cst_29 = arith.constant dense<0xFF800000> : vector<16xf32>
    %78 = vector.multi_reduction <maximumf>, %77, %cst_29 [1] : vector<16x16xf32> to vector<16xf32>
    %79 = vector.shape_cast %78 : vector<16xf32> to vector<16x1xf32>
    %80 = vector.broadcast %79 : vector<16x1xf32> to vector<16x16xf32>
    %81 = arith.subf %77, %80 : vector<16x16xf32>
    %82 = math.exp %81 : vector<16x16xf32>
    %cst_30 = arith.constant dense<0.000000e+00> : vector<16xf32>
    %83 = vector.multi_reduction <add>, %82, %cst_30 [1] : vector<16x16xf32> to vector<16xf32>
    %84 = vector.shape_cast %83 : vector<16xf32> to vector<16x1xf32>
    %85 = tpu.reciprocal %84 {approx = true} : vector<16x1xf32> -> vector<16x1xf32>
    %86 = vector.broadcast %85 : vector<16x1xf32> to vector<16x16xf32>
    %87 = arith.mulf %82, %86 : vector<16x16xf32>
    %cst_31 = arith.constant dense<0.000000e+00> : vector<16x8xf32>
    %88 = tpu.matmul %87, %73, %cst_31 {dimension_numbers = #tpu.dot_dimension_numbers<[1], [0], [0], [1], [0, 0, 1, 1], [], []>} : vector<16x16xf32>, vector<16x8xf32>, vector<16x8xf32> -> vector<16x8xf32>
    %89 = vector.extract_strided_slice %34 {offsets = [0, 24], sizes = [16, 8], strides = [1, 1]} : vector<16x96xf32> to vector<16x8xf32>
    %90 = vector.extract_strided_slice %34 {offsets = [0, 56], sizes = [16, 8], strides = [1, 1]} : vector<16x96xf32> to vector<16x8xf32>
    %91 = vector.extract_strided_slice %34 {offsets = [0, 88], sizes = [16, 8], strides = [1, 1]} : vector<16x96xf32> to vector<16x8xf32>
    %cst_32 = arith.constant dense<0.000000e+00> : vector<16x16xf32>
    %92 = tpu.matmul %89, %90, %cst_32 {dimension_numbers = #tpu.dot_dimension_numbers<[1], [1], [0], [0], [0, 0, 1, 0], [], []>} : vector<16x8xf32>, vector<16x8xf32>, vector<16x16xf32> -> vector<16x16xf32>
    %cst_33 = arith.constant 0.353553385 : f32
    %93 = vector.broadcast %cst_33 : f32 to vector<16x16xf32>
    %94 = arith.mulf %92, %93 : vector<16x16xf32>
    %95 = arith.addf %94, %0 : vector<16x16xf32>
    %cst_34 = arith.constant dense<0xFF800000> : vector<16xf32>
    %96 = vector.multi_reduction <maximumf>, %95, %cst_34 [1] : vector<16x16xf32> to vector<16xf32>
    %97 = vector.shape_cast %96 : vector<16xf32> to vector<16x1xf32>
    %98 = vector.broadcast %97 : vector<16x1xf32> to vector<16x16xf32>
    %99 = arith.subf %95, %98 : vector<16x16xf32>
    %100 = math.exp %99 : vector<16x16xf32>
    %cst_35 = arith.constant dense<0.000000e+00> : vector<16xf32>
    %101 = vector.multi_reduction <add>, %100, %cst_35 [1] : vector<16x16xf32> to vector<16xf32>
    %102 = vector.shape_cast %101 : vector<16xf32> to vector<16x1xf32>
    %103 = tpu.reciprocal %102 {approx = true} : vector<16x1xf32> -> vector<16x1xf32>
    %104 = vector.broadcast %103 : vector<16x1xf32> to vector<16x16xf32>
    %105 = arith.mulf %100, %104 : vector<16x16xf32>
    %cst_36 = arith.constant dense<0.000000e+00> : vector<16x8xf32>
    %106 = tpu.matmul %105, %91, %cst_36 {dimension_numbers = #tpu.dot_dimension_numbers<[1], [0], [0], [1], [0, 0, 1, 1], [], []>} : vector<16x16xf32>, vector<16x8xf32>, vector<16x8xf32> -> vector<16x8xf32>
    %107 = tpu.concatenate %52, %70, %88, %106 in 1 : vector<16x8xf32>, vector<16x8xf32>, vector<16x8xf32>, vector<16x8xf32> -> vector<16x32xf32>
    %c0_37 = arith.constant 0 : index
    %c0_38 = arith.constant 0 : index
    %c0_39 = arith.constant 0 : index
    %108 = vector.load %arg6[%c0_37, %c0_38, %c0_39] : memref<4x32x32xf32, #tpu.memory_space<vmem>>, vector<1x32x32xf32>
    %109 = vector.shape_cast %108 : vector<1x32x32xf32> to vector<32x32xf32>
    %cst_40 = arith.constant dense<0.000000e+00> : vector<16x32xf32>
    %110 = tpu.matmul %107, %109, %cst_40 {dimension_numbers = #tpu.dot_dimension_numbers<[1], [0], [0], [1], [0, 0, 1, 1], [], []>} : vector<16x32xf32>, vector<32x32xf32>, vector<16x32xf32> -> vector<16x32xf32>
    %c0_41 = arith.constant 0 : index
    %c0_42 = arith.constant 0 : index
    %c0_43 = arith.constant 0 : index
    %111 = vector.load %arg7[%c0_41, %c0_42, %c0_43] : memref<4x1x32xf32, #tpu.memory_space<vmem>>, vector<1x1x32xf32>
    %112 = vector.shape_cast %111 : vector<1x1x32xf32> to vector<1x32xf32>
    %113 = vector.broadcast %112 : vector<1x32xf32> to vector<16x32xf32>
    %114 = arith.addf %110, %113 : vector<16x32xf32>
    %115 = arith.addf %26, %114 : vector<16x32xf32>
    %c0_44 = arith.constant 0 : index
    %c0_45 = arith.constant 0 : index
    %c0_46 = arith.constant 0 : index
    %116 = vector.load %arg8[%c0_44, %c0_45, %c0_46] : memref<4x2x32xf32, #tpu.memory_space<vmem>>, vector<1x2x32xf32>
    %117 = vector.shape_cast %116 : vector<1x2x32xf32> to vector<2x32xf32>
    %118 = vector.extract_strided_slice %117 {offsets = [0, 0], sizes = [1, 32], strides = [1, 1]} : vector<2x32xf32> to vector<1x32xf32>
    %119 = vector.extract_strided_slice %117 {offsets = [1, 0], sizes = [1, 32], strides = [1, 1]} : vector<2x32xf32> to vector<1x32xf32>
    %cst_47 = arith.constant dense<0.000000e+00> : vector<16xf32>
    %120 = vector.multi_reduction <add>, %115, %cst_47 [1] : vector<16x32xf32> to vector<16xf32>
    %121 = vector.shape_cast %120 : vector<16xf32> to vector<16x1xf32>
    %cst_48 = arith.constant 3.200000e+01 : f32
    %122 = vector.broadcast %cst_48 : f32 to vector<16x1xf32>
    %123 = arith.divf %121, %122 : vector<16x1xf32>
    %124 = arith.mulf %115, %115 : vector<16x32xf32>
    %cst_49 = arith.constant dense<0.000000e+00> : vector<16xf32>
    %125 = vector.multi_reduction <add>, %124, %cst_49 [1] : vector<16x32xf32> to vector<16xf32>
    %126 = vector.shape_cast %125 : vector<16xf32> to vector<16x1xf32>
    %cst_50 = arith.constant 3.200000e+01 : f32
    %127 = vector.broadcast %cst_50 : f32 to vector<16x1xf32>
    %128 = arith.divf %126, %127 : vector<16x1xf32>
    %129 = arith.mulf %123, %123 : vector<16x1xf32>
    %130 = arith.subf %128, %129 : vector<16x1xf32>
    %131 = vector.broadcast %123 : vector<16x1xf32> to vector<16x32xf32>
    %132 = arith.subf %115, %131 : vector<16x32xf32>
    %cst_51 = arith.constant 9.99999996E-13 : f32
    %133 = vector.broadcast %cst_51 : f32 to vector<16x1xf32>
    %134 = arith.addf %130, %133 : vector<16x1xf32>
    %135 = math.rsqrt %134 : vector<16x1xf32>
    %136 = vector.broadcast %135 : vector<16x1xf32> to vector<16x32xf32>
    %137 = arith.mulf %132, %136 : vector<16x32xf32>
    %138 = vector.broadcast %118 : vector<1x32xf32> to vector<16x32xf32>
    %139 = arith.mulf %137, %138 : vector<16x32xf32>
    %140 = vector.broadcast %119 : vector<1x32xf32> to vector<16x32xf32>
    %141 = arith.addf %139, %140 : vector<16x32xf32>
    %c0_52 = arith.constant 0 : index
    %c0_53 = arith.constant 0 : index
    %c0_54 = arith.constant 0 : index
    %142 = vector.load %arg9[%c0_52, %c0_53, %c0_54] : memref<4x32x64xf32, #tpu.memory_space<vmem>>, vector<1x32x64xf32>
    %143 = vector.shape_cast %142 : vector<1x32x64xf32> to vector<32x64xf32>
    %cst_55 = arith.constant dense<0.000000e+00> : vector<16x64xf32>
    %144 = tpu.matmul %141, %143, %cst_55 {dimension_numbers = #tpu.dot_dimension_numbers<[1], [0], [0], [1], [0, 0, 1, 1], [], []>} : vector<16x32xf32>, vector<32x64xf32>, vector<16x64xf32> -> vector<16x64xf32>
    %c0_56 = arith.constant 0 : index
    %c0_57 = arith.constant 0 : index
    %c0_58 = arith.constant 0 : index
    %145 = vector.load %arg10[%c0_56, %c0_57, %c0_58] : memref<4x1x64xf32, #tpu.memory_space<vmem>>, vector<1x1x64xf32>
    %146 = vector.shape_cast %145 : vector<1x1x64xf32> to vector<1x64xf32>
    %147 = vector.broadcast %146 : vector<1x64xf32> to vector<16x64xf32>
    %148 = arith.addf %144, %147 : vector<16x64xf32>
    %cst_59 = arith.constant 5.000000e-01 : f32
    %149 = vector.broadcast %cst_59 : f32 to vector<16x64xf32>
    %150 = arith.mulf %149, %148 : vector<16x64xf32>
    %cst_60 = arith.constant 4.471500e-02 : f32
    %151 = vector.broadcast %cst_60 : f32 to vector<16x64xf32>
    %152 = arith.mulf %151, %148 : vector<16x64xf32>
    %153 = arith.mulf %152, %148 : vector<16x64xf32>
    %154 = arith.mulf %153, %148 : vector<16x64xf32>
    %155 = arith.addf %148, %154 : vector<16x64xf32>
    %cst_61 = arith.constant 0.797884583 : f32
    %156 = vector.broadcast %cst_61 : f32 to vector<16x64xf32>
    %157 = arith.mulf %156, %155 : vector<16x64xf32>
    %158 = math.tanh %157 : vector<16x64xf32>
    %cst_62 = arith.constant 1.000000e+00 : f32
    %159 = vector.broadcast %cst_62 : f32 to vector<16x64xf32>
    %160 = arith.addf %159, %158 : vector<16x64xf32>
    %161 = arith.mulf %150, %160 : vector<16x64xf32>
    %c0_63 = arith.constant 0 : index
    %c0_64 = arith.constant 0 : index
    %c0_65 = arith.constant 0 : index
    %162 = vector.load %arg11[%c0_63, %c0_64, %c0_65] : memref<4x64x32xf32, #tpu.memory_space<vmem>>, vector<1x64x32xf32>
    %163 = vector.shape_cast %162 : vector<1x64x32xf32> to vector<64x32xf32>
    %cst_66 = arith.constant dense<0.000000e+00> : vector<16x32xf32>
    %164 = tpu.matmul %161, %163, %cst_66 {dimension_numbers = #tpu.dot_dimension_numbers<[1], [0], [0], [1], [0, 0, 1, 1], [], []>} : vector<16x64xf32>, vector<64x32xf32>, vector<16x32xf32> -> vector<16x32xf32>
    %c0_67 = arith.constant 0 : index
    %c0_68 = arith.constant 0 : index
    %c0_69 = arith.constant 0 : index
    %165 = vector.load %arg12[%c0_67, %c0_68, %c0_69] : memref<4x1x32xf32, #tpu.memory_space<vmem>>, vector<1x1x32xf32>
    %166 = vector.shape_cast %165 : vector<1x1x32xf32> to vector<1x32xf32>
    %167 = vector.broadcast %166 : vector<1x32xf32> to vector<16x32xf32>
    %168 = arith.addf %164, %167 : vector<16x32xf32>
    %169 = arith.addf %141, %168 : vector<16x32xf32>
    %c0_70 = arith.constant 0 : index
    %c0_71 = arith.constant 0 : index
    %c0_72 = arith.constant 0 : index
    %170 = vector.load %arg13[%c0_70, %c0_71, %c0_72] : memref<4x2x32xf32, #tpu.memory_space<vmem>>, vector<1x2x32xf32>
    %171 = vector.shape_cast %170 : vector<1x2x32xf32> to vector<2x32xf32>
    %172 = vector.extract_strided_slice %171 {offsets = [0, 0], sizes = [1, 32], strides = [1, 1]} : vector<2x32xf32> to vector<1x32xf32>
    %173 = vector.extract_strided_slice %171 {offsets = [1, 0], sizes = [1, 32], strides = [1, 1]} : vector<2x32xf32> to vector<1x32xf32>
    %cst_73 = arith.constant dense<0.000000e+00> : vector<16xf32>
    %174 = vector.multi_reduction <add>, %169, %cst_73 [1] : vector<16x32xf32> to vector<16xf32>
    %175 = vector.shape_cast %174 : vector<16xf32> to vector<16x1xf32>
    %cst_74 = arith.constant 3.200000e+01 : f32
    %176 = vector.broadcast %cst_74 : f32 to vector<16x1xf32>
    %177 = arith.divf %175, %176 : vector<16x1xf32>
    %178 = arith.mulf %169, %169 : vector<16x32xf32>
    %cst_75 = arith.constant dense<0.000000e+00> : vector<16xf32>
    %179 = vector.multi_reduction <add>, %178, %cst_75 [1] : vector<16x32xf32> to vector<16xf32>
    %180 = vector.shape_cast %179 : vector<16xf32> to vector<16x1xf32>
    %cst_76 = arith.constant 3.200000e+01 : f32
    %181 = vector.broadcast %cst_76 : f32 to vector<16x1xf32>
    %182 = arith.divf %180, %181 : vector<16x1xf32>
    %183 = arith.mulf %177, %177 : vector<16x1xf32>
    %184 = arith.subf %182, %183 : vector<16x1xf32>
    %185 = vector.broadcast %177 : vector<16x1xf32> to vector<16x32xf32>
    %186 = arith.subf %169, %185 : vector<16x32xf32>
    %cst_77 = arith.constant 9.99999996E-13 : f32
    %187 = vector.broadcast %cst_77 : f32 to vector<16x1xf32>
    %188 = arith.addf %184, %187 : vector<16x1xf32>
    %189 = math.rsqrt %188 : vector<16x1xf32>
    %190 = vector.broadcast %189 : vector<16x1xf32> to vector<16x32xf32>
    %191 = arith.mulf %186, %190 : vector<16x32xf32>
    %192 = vector.broadcast %172 : vector<1x32xf32> to vector<16x32xf32>
    %193 = arith.mulf %191, %192 : vector<16x32xf32>
    %194 = vector.broadcast %173 : vector<1x32xf32> to vector<16x32xf32>
    %195 = arith.addf %193, %194 : vector<16x32xf32>
    %196 = arith.addf %27, %195 : vector<16x32xf32>
    %c1 = arith.constant 1 : index
    %c0_78 = arith.constant 0 : index
    %c0_79 = arith.constant 0 : index
    %197 = vector.load %arg4[%c1, %c0_78, %c0_79] : memref<4x32x96xf32, #tpu.memory_space<vmem>>, vector<1x32x96xf32>
    %198 = vector.shape_cast %197 : vector<1x32x96xf32> to vector<32x96xf32>
    %cst_80 = arith.constant dense<0.000000e+00> : vector<16x96xf32>
    %199 = tpu.matmul %195, %198, %cst_80 {dimension_numbers = #tpu.dot_dimension_numbers<[1], [0], [0], [1], [0, 0, 1, 1], [], []>} : vector<16x32xf32>, vector<32x96xf32>, vector<16x96xf32> -> vector<16x96xf32>
    %c1_81 = arith.constant 1 : index
    %c0_82 = arith.constant 0 : index
    %c0_83 = arith.constant 0 : index
    %200 = vector.load %arg5[%c1_81, %c0_82, %c0_83] : memref<4x1x96xf32, #tpu.memory_space<vmem>>, vector<1x1x96xf32>
    %201 = vector.shape_cast %200 : vector<1x1x96xf32> to vector<1x96xf32>
    %202 = vector.broadcast %201 : vector<1x96xf32> to vector<16x96xf32>
    %203 = arith.addf %199, %202 : vector<16x96xf32>
    %204 = vector.extract_strided_slice %203 {offsets = [0, 0], sizes = [16, 8], strides = [1, 1]} : vector<16x96xf32> to vector<16x8xf32>
    %205 = vector.extract_strided_slice %203 {offsets = [0, 32], sizes = [16, 8], strides = [1, 1]} : vector<16x96xf32> to vector<16x8xf32>
    %206 = vector.extract_strided_slice %203 {offsets = [0, 64], sizes = [16, 8], strides = [1, 1]} : vector<16x96xf32> to vector<16x8xf32>
    %cst_84 = arith.constant dense<0.000000e+00> : vector<16x16xf32>
    %207 = tpu.matmul %204, %205, %cst_84 {dimension_numbers = #tpu.dot_dimension_numbers<[1], [1], [0], [0], [0, 0, 1, 0], [], []>} : vector<16x8xf32>, vector<16x8xf32>, vector<16x16xf32> -> vector<16x16xf32>
    %cst_85 = arith.constant 0.353553385 : f32
    %208 = vector.broadcast %cst_85 : f32 to vector<16x16xf32>
    %209 = arith.mulf %207, %208 : vector<16x16xf32>
    %210 = arith.addf %209, %0 : vector<16x16xf32>
    %cst_86 = arith.constant dense<0xFF800000> : vector<16xf32>
    %211 = vector.multi_reduction <maximumf>, %210, %cst_86 [1] : vector<16x16xf32> to vector<16xf32>
    %212 = vector.shape_cast %211 : vector<16xf32> to vector<16x1xf32>
    %213 = vector.broadcast %212 : vector<16x1xf32> to vector<16x16xf32>
    %214 = arith.subf %210, %213 : vector<16x16xf32>
    %215 = math.exp %214 : vector<16x16xf32>
    %cst_87 = arith.constant dense<0.000000e+00> : vector<16xf32>
    %216 = vector.multi_reduction <add>, %215, %cst_87 [1] : vector<16x16xf32> to vector<16xf32>
    %217 = vector.shape_cast %216 : vector<16xf32> to vector<16x1xf32>
    %218 = tpu.reciprocal %217 {approx = true} : vector<16x1xf32> -> vector<16x1xf32>
    %219 = vector.broadcast %218 : vector<16x1xf32> to vector<16x16xf32>
    %220 = arith.mulf %215, %219 : vector<16x16xf32>
    %cst_88 = arith.constant dense<0.000000e+00> : vector<16x8xf32>
    %221 = tpu.matmul %220, %206, %cst_88 {dimension_numbers = #tpu.dot_dimension_numbers<[1], [0], [0], [1], [0, 0, 1, 1], [], []>} : vector<16x16xf32>, vector<16x8xf32>, vector<16x8xf32> -> vector<16x8xf32>
    %222 = vector.extract_strided_slice %203 {offsets = [0, 8], sizes = [16, 8], strides = [1, 1]} : vector<16x96xf32> to vector<16x8xf32>
    %223 = vector.extract_strided_slice %203 {offsets = [0, 40], sizes = [16, 8], strides = [1, 1]} : vector<16x96xf32> to vector<16x8xf32>
    %224 = vector.extract_strided_slice %203 {offsets = [0, 72], sizes = [16, 8], strides = [1, 1]} : vector<16x96xf32> to vector<16x8xf32>
    %cst_89 = arith.constant dense<0.000000e+00> : vector<16x16xf32>
    %225 = tpu.matmul %222, %223, %cst_89 {dimension_numbers = #tpu.dot_dimension_numbers<[1], [1], [0], [0], [0, 0, 1, 0], [], []>} : vector<16x8xf32>, vector<16x8xf32>, vector<16x16xf32> -> vector<16x16xf32>
    %cst_90 = arith.constant 0.353553385 : f32
    %226 = vector.broadcast %cst_90 : f32 to vector<16x16xf32>
    %227 = arith.mulf %225, %226 : vector<16x16xf32>
    %228 = arith.addf %227, %0 : vector<16x16xf32>
    %cst_91 = arith.constant dense<0xFF800000> : vector<16xf32>
    %229 = vector.multi_reduction <maximumf>, %228, %cst_91 [1] : vector<16x16xf32> to vector<16xf32>
    %230 = vector.shape_cast %229 : vector<16xf32> to vector<16x1xf32>
    %231 = vector.broadcast %230 : vector<16x1xf32> to vector<16x16xf32>
    %232 = arith.subf %228, %231 : vector<16x16xf32>
    %233 = math.exp %232 : vector<16x16xf32>
    %cst_92 = arith.constant dense<0.000000e+00> : vector<16xf32>
    %234 = vector.multi_reduction <add>, %233, %cst_92 [1] : vector<16x16xf32> to vector<16xf32>
    %235 = vector.shape_cast %234 : vector<16xf32> to vector<16x1xf32>
    %236 = tpu.reciprocal %235 {approx = true} : vector<16x1xf32> -> vector<16x1xf32>
    %237 = vector.broadcast %236 : vector<16x1xf32> to vector<16x16xf32>
    %238 = arith.mulf %233, %237 : vector<16x16xf32>
    %cst_93 = arith.constant dense<0.000000e+00> : vector<16x8xf32>
    %239 = tpu.matmul %238, %224, %cst_93 {dimension_numbers = #tpu.dot_dimension_numbers<[1], [0], [0], [1], [0, 0, 1, 1], [], []>} : vector<16x16xf32>, vector<16x8xf32>, vector<16x8xf32> -> vector<16x8xf32>
    %240 = vector.extract_strided_slice %203 {offsets = [0, 16], sizes = [16, 8], strides = [1, 1]} : vector<16x96xf32> to vector<16x8xf32>
    %241 = vector.extract_strided_slice %203 {offsets = [0, 48], sizes = [16, 8], strides = [1, 1]} : vector<16x96xf32> to vector<16x8xf32>
    %242 = vector.extract_strided_slice %203 {offsets = [0, 80], sizes = [16, 8], strides = [1, 1]} : vector<16x96xf32> to vector<16x8xf32>
    %cst_94 = arith.constant dense<0.000000e+00> : vector<16x16xf32>
    %243 = tpu.matmul %240, %241, %cst_94 {dimension_numbers = #tpu.dot_dimension_numbers<[1], [1], [0], [0], [0, 0, 1, 0], [], []>} : vector<16x8xf32>, vector<16x8xf32>, vector<16x16xf32> -> vector<16x16xf32>
    %cst_95 = arith.constant 0.353553385 : f32
    %244 = vector.broadcast %cst_95 : f32 to vector<16x16xf32>
    %245 = arith.mulf %243, %244 : vector<16x16xf32>
    %246 = arith.addf %245, %0 : vector<16x16xf32>
    %cst_96 = arith.constant dense<0xFF800000> : vector<16xf32>
    %247 = vector.multi_reduction <maximumf>, %246, %cst_96 [1] : vector<16x16xf32> to vector<16xf32>
    %248 = vector.shape_cast %247 : vector<16xf32> to vector<16x1xf32>
    %249 = vector.broadcast %248 : vector<16x1xf32> to vector<16x16xf32>
    %250 = arith.subf %246, %249 : vector<16x16xf32>
    %251 = math.exp %250 : vector<16x16xf32>
    %cst_97 = arith.constant dense<0.000000e+00> : vector<16xf32>
    %252 = vector.multi_reduction <add>, %251, %cst_97 [1] : vector<16x16xf32> to vector<16xf32>
    %253 = vector.shape_cast %252 : vector<16xf32> to vector<16x1xf32>
    %254 = tpu.reciprocal %253 {approx = true} : vector<16x1xf32> -> vector<16x1xf32>
    %255 = vector.broadcast %254 : vector<16x1xf32> to vector<16x16xf32>
    %256 = arith.mulf %251, %255 : vector<16x16xf32>
    %cst_98 = arith.constant dense<0.000000e+00> : vector<16x8xf32>
    %257 = tpu.matmul %256, %242, %cst_98 {dimension_numbers = #tpu.dot_dimension_numbers<[1], [0], [0], [1], [0, 0, 1, 1], [], []>} : vector<16x16xf32>, vector<16x8xf32>, vector<16x8xf32> -> vector<16x8xf32>
    %258 = vector.extract_strided_slice %203 {offsets = [0, 24], sizes = [16, 8], strides = [1, 1]} : vector<16x96xf32> to vector<16x8xf32>
    %259 = vector.extract_strided_slice %203 {offsets = [0, 56], sizes = [16, 8], strides = [1, 1]} : vector<16x96xf32> to vector<16x8xf32>
    %260 = vector.extract_strided_slice %203 {offsets = [0, 88], sizes = [16, 8], strides = [1, 1]} : vector<16x96xf32> to vector<16x8xf32>
    %cst_99 = arith.constant dense<0.000000e+00> : vector<16x16xf32>
    %261 = tpu.matmul %258, %259, %cst_99 {dimension_numbers = #tpu.dot_dimension_numbers<[1], [1], [0], [0], [0, 0, 1, 0], [], []>} : vector<16x8xf32>, vector<16x8xf32>, vector<16x16xf32> -> vector<16x16xf32>
    %cst_100 = arith.constant 0.353553385 : f32
    %262 = vector.broadcast %cst_100 : f32 to vector<16x16xf32>
    %263 = arith.mulf %261, %262 : vector<16x16xf32>
    %264 = arith.addf %263, %0 : vector<16x16xf32>
    %cst_101 = arith.constant dense<0xFF800000> : vector<16xf32>
    %265 = vector.multi_reduction <maximumf>, %264, %cst_101 [1] : vector<16x16xf32> to vector<16xf32>
    %266 = vector.shape_cast %265 : vector<16xf32> to vector<16x1xf32>
    %267 = vector.broadcast %266 : vector<16x1xf32> to vector<16x16xf32>
    %268 = arith.subf %264, %267 : vector<16x16xf32>
    %269 = math.exp %268 : vector<16x16xf32>
    %cst_102 = arith.constant dense<0.000000e+00> : vector<16xf32>
    %270 = vector.multi_reduction <add>, %269, %cst_102 [1] : vector<16x16xf32> to vector<16xf32>
    %271 = vector.shape_cast %270 : vector<16xf32> to vector<16x1xf32>
    %272 = tpu.reciprocal %271 {approx = true} : vector<16x1xf32> -> vector<16x1xf32>
    %273 = vector.broadcast %272 : vector<16x1xf32> to vector<16x16xf32>
    %274 = arith.mulf %269, %273 : vector<16x16xf32>
    %cst_103 = arith.constant dense<0.000000e+00> : vector<16x8xf32>
    %275 = tpu.matmul %274, %260, %cst_103 {dimension_numbers = #tpu.dot_dimension_numbers<[1], [0], [0], [1], [0, 0, 1, 1], [], []>} : vector<16x16xf32>, vector<16x8xf32>, vector<16x8xf32> -> vector<16x8xf32>
    %276 = tpu.concatenate %221, %239, %257, %275 in 1 : vector<16x8xf32>, vector<16x8xf32>, vector<16x8xf32>, vector<16x8xf32> -> vector<16x32xf32>
    %c1_104 = arith.constant 1 : index
    %c0_105 = arith.constant 0 : index
    %c0_106 = arith.constant 0 : index
    %277 = vector.load %arg6[%c1_104, %c0_105, %c0_106] : memref<4x32x32xf32, #tpu.memory_space<vmem>>, vector<1x32x32xf32>
    %278 = vector.shape_cast %277 : vector<1x32x32xf32> to vector<32x32xf32>
    %cst_107 = arith.constant dense<0.000000e+00> : vector<16x32xf32>
    %279 = tpu.matmul %276, %278, %cst_107 {dimension_numbers = #tpu.dot_dimension_numbers<[1], [0], [0], [1], [0, 0, 1, 1], [], []>} : vector<16x32xf32>, vector<32x32xf32>, vector<16x32xf32> -> vector<16x32xf32>
    %c1_108 = arith.constant 1 : index
    %c0_109 = arith.constant 0 : index
    %c0_110 = arith.constant 0 : index
    %280 = vector.load %arg7[%c1_108, %c0_109, %c0_110] : memref<4x1x32xf32, #tpu.memory_space<vmem>>, vector<1x1x32xf32>
    %281 = vector.shape_cast %280 : vector<1x1x32xf32> to vector<1x32xf32>
    %282 = vector.broadcast %281 : vector<1x32xf32> to vector<16x32xf32>
    %283 = arith.addf %279, %282 : vector<16x32xf32>
    %284 = arith.addf %195, %283 : vector<16x32xf32>
    %c1_111 = arith.constant 1 : index
    %c0_112 = arith.constant 0 : index
    %c0_113 = arith.constant 0 : index
    %285 = vector.load %arg8[%c1_111, %c0_112, %c0_113] : memref<4x2x32xf32, #tpu.memory_space<vmem>>, vector<1x2x32xf32>
    %286 = vector.shape_cast %285 : vector<1x2x32xf32> to vector<2x32xf32>
    %287 = vector.extract_strided_slice %286 {offsets = [0, 0], sizes = [1, 32], strides = [1, 1]} : vector<2x32xf32> to vector<1x32xf32>
    %288 = vector.extract_strided_slice %286 {offsets = [1, 0], sizes = [1, 32], strides = [1, 1]} : vector<2x32xf32> to vector<1x32xf32>
    %cst_114 = arith.constant dense<0.000000e+00> : vector<16xf32>
    %289 = vector.multi_reduction <add>, %284, %cst_114 [1] : vector<16x32xf32> to vector<16xf32>
    %290 = vector.shape_cast %289 : vector<16xf32> to vector<16x1xf32>
    %cst_115 = arith.constant 3.200000e+01 : f32
    %291 = vector.broadcast %cst_115 : f32 to vector<16x1xf32>
    %292 = arith.divf %290, %291 : vector<16x1xf32>
    %293 = arith.mulf %284, %284 : vector<16x32xf32>
    %cst_116 = arith.constant dense<0.000000e+00> : vector<16xf32>
    %294 = vector.multi_reduction <add>, %293, %cst_116 [1] : vector<16x32xf32> to vector<16xf32>
    %295 = vector.shape_cast %294 : vector<16xf32> to vector<16x1xf32>
    %cst_117 = arith.constant 3.200000e+01 : f32
    %296 = vector.broadcast %cst_117 : f32 to vector<16x1xf32>
    %297 = arith.divf %295, %296 : vector<16x1xf32>
    %298 = arith.mulf %292, %292 : vector<16x1xf32>
    %299 = arith.subf %297, %298 : vector<16x1xf32>
    %300 = vector.broadcast %292 : vector<16x1xf32> to vector<16x32xf32>
    %301 = arith.subf %284, %300 : vector<16x32xf32>
    %cst_118 = arith.constant 9.99999996E-13 : f32
    %302 = vector.broadcast %cst_118 : f32 to vector<16x1xf32>
    %303 = arith.addf %299, %302 : vector<16x1xf32>
    %304 = math.rsqrt %303 : vector<16x1xf32>
    %305 = vector.broadcast %304 : vector<16x1xf32> to vector<16x32xf32>
    %306 = arith.mulf %301, %305 : vector<16x32xf32>
    %307 = vector.broadcast %287 : vector<1x32xf32> to vector<16x32xf32>
    %308 = arith.mulf %306, %307 : vector<16x32xf32>
    %309 = vector.broadcast %288 : vector<1x32xf32> to vector<16x32xf32>
    %310 = arith.addf %308, %309 : vector<16x32xf32>
    %c1_119 = arith.constant 1 : index
    %c0_120 = arith.constant 0 : index
    %c0_121 = arith.constant 0 : index
    %311 = vector.load %arg9[%c1_119, %c0_120, %c0_121] : memref<4x32x64xf32, #tpu.memory_space<vmem>>, vector<1x32x64xf32>
    %312 = vector.shape_cast %311 : vector<1x32x64xf32> to vector<32x64xf32>
    %cst_122 = arith.constant dense<0.000000e+00> : vector<16x64xf32>
    %313 = tpu.matmul %310, %312, %cst_122 {dimension_numbers = #tpu.dot_dimension_numbers<[1], [0], [0], [1], [0, 0, 1, 1], [], []>} : vector<16x32xf32>, vector<32x64xf32>, vector<16x64xf32> -> vector<16x64xf32>
    %c1_123 = arith.constant 1 : index
    %c0_124 = arith.constant 0 : index
    %c0_125 = arith.constant 0 : index
    %314 = vector.load %arg10[%c1_123, %c0_124, %c0_125] : memref<4x1x64xf32, #tpu.memory_space<vmem>>, vector<1x1x64xf32>
    %315 = vector.shape_cast %314 : vector<1x1x64xf32> to vector<1x64xf32>
    %316 = vector.broadcast %315 : vector<1x64xf32> to vector<16x64xf32>
    %317 = arith.addf %313, %316 : vector<16x64xf32>
    %cst_126 = arith.constant 5.000000e-01 : f32
    %318 = vector.broadcast %cst_126 : f32 to vector<16x64xf32>
    %319 = arith.mulf %318, %317 : vector<16x64xf32>
    %cst_127 = arith.constant 4.471500e-02 : f32
    %320 = vector.broadcast %cst_127 : f32 to vector<16x64xf32>
    %321 = arith.mulf %320, %317 : vector<16x64xf32>
    %322 = arith.mulf %321, %317 : vector<16x64xf32>
    %323 = arith.mulf %322, %317 : vector<16x64xf32>
    %324 = arith.addf %317, %323 : vector<16x64xf32>
    %cst_128 = arith.constant 0.797884583 : f32
    %325 = vector.broadcast %cst_128 : f32 to vector<16x64xf32>
    %326 = arith.mulf %325, %324 : vector<16x64xf32>
    %327 = math.tanh %326 : vector<16x64xf32>
    %cst_129 = arith.constant 1.000000e+00 : f32
    %328 = vector.broadcast %cst_129 : f32 to vector<16x64xf32>
    %329 = arith.addf %328, %327 : vector<16x64xf32>
    %330 = arith.mulf %319, %329 : vector<16x64xf32>
    %c1_130 = arith.constant 1 : index
    %c0_131 = arith.constant 0 : index
    %c0_132 = arith.constant 0 : index
    %331 = vector.load %arg11[%c1_130, %c0_131, %c0_132] : memref<4x64x32xf32, #tpu.memory_space<vmem>>, vector<1x64x32xf32>
    %332 = vector.shape_cast %331 : vector<1x64x32xf32> to vector<64x32xf32>
    %cst_133 = arith.constant dense<0.000000e+00> : vector<16x32xf32>
    %333 = tpu.matmul %330, %332, %cst_133 {dimension_numbers = #tpu.dot_dimension_numbers<[1], [0], [0], [1], [0, 0, 1, 1], [], []>} : vector<16x64xf32>, vector<64x32xf32>, vector<16x32xf32> -> vector<16x32xf32>
    %c1_134 = arith.constant 1 : index
    %c0_135 = arith.constant 0 : index
    %c0_136 = arith.constant 0 : index
    %334 = vector.load %arg12[%c1_134, %c0_135, %c0_136] : memref<4x1x32xf32, #tpu.memory_space<vmem>>, vector<1x1x32xf32>
    %335 = vector.shape_cast %334 : vector<1x1x32xf32> to vector<1x32xf32>
    %336 = vector.broadcast %335 : vector<1x32xf32> to vector<16x32xf32>
    %337 = arith.addf %333, %336 : vector<16x32xf32>
    %338 = arith.addf %310, %337 : vector<16x32xf32>
    %c1_137 = arith.constant 1 : index
    %c0_138 = arith.constant 0 : index
    %c0_139 = arith.constant 0 : index
    %339 = vector.load %arg13[%c1_137, %c0_138, %c0_139] : memref<4x2x32xf32, #tpu.memory_space<vmem>>, vector<1x2x32xf32>
    %340 = vector.shape_cast %339 : vector<1x2x32xf32> to vector<2x32xf32>
    %341 = vector.extract_strided_slice %340 {offsets = [0, 0], sizes = [1, 32], strides = [1, 1]} : vector<2x32xf32> to vector<1x32xf32>
    %342 = vector.extract_strided_slice %340 {offsets = [1, 0], sizes = [1, 32], strides = [1, 1]} : vector<2x32xf32> to vector<1x32xf32>
    %cst_140 = arith.constant dense<0.000000e+00> : vector<16xf32>
    %343 = vector.multi_reduction <add>, %338, %cst_140 [1] : vector<16x32xf32> to vector<16xf32>
    %344 = vector.shape_cast %343 : vector<16xf32> to vector<16x1xf32>
    %cst_141 = arith.constant 3.200000e+01 : f32
    %345 = vector.broadcast %cst_141 : f32 to vector<16x1xf32>
    %346 = arith.divf %344, %345 : vector<16x1xf32>
    %347 = arith.mulf %338, %338 : vector<16x32xf32>
    %cst_142 = arith.constant dense<0.000000e+00> : vector<16xf32>
    %348 = vector.multi_reduction <add>, %347, %cst_142 [1] : vector<16x32xf32> to vector<16xf32>
    %349 = vector.shape_cast %348 : vector<16xf32> to vector<16x1xf32>
    %cst_143 = arith.constant 3.200000e+01 : f32
    %350 = vector.broadcast %cst_143 : f32 to vector<16x1xf32>
    %351 = arith.divf %349, %350 : vector<16x1xf32>
    %352 = arith.mulf %346, %346 : vector<16x1xf32>
    %353 = arith.subf %351, %352 : vector<16x1xf32>
    %354 = vector.broadcast %346 : vector<16x1xf32> to vector<16x32xf32>
    %355 = arith.subf %338, %354 : vector<16x32xf32>
    %cst_144 = arith.constant 9.99999996E-13 : f32
    %356 = vector.broadcast %cst_144 : f32 to vector<16x1xf32>
    %357 = arith.addf %353, %356 : vector<16x1xf32>
    %358 = math.rsqrt %357 : vector<16x1xf32>
    %359 = vector.broadcast %358 : vector<16x1xf32> to vector<16x32xf32>
    %360 = arith.mulf %355, %359 : vector<16x32xf32>
    %361 = vector.broadcast %341 : vector<1x32xf32> to vector<16x32xf32>
    %362 = arith.mulf %360, %361 : vector<16x32xf32>
    %363 = vector.broadcast %342 : vector<1x32xf32> to vector<16x32xf32>
    %364 = arith.addf %362, %363 : vector<16x32xf32>
    %365 = arith.addf %196, %364 : vector<16x32xf32>
    %c2 = arith.constant 2 : index
    %c0_145 = arith.constant 0 : index
    %c0_146 = arith.constant 0 : index
    %366 = vector.load %arg4[%c2, %c0_145, %c0_146] : memref<4x32x96xf32, #tpu.memory_space<vmem>>, vector<1x32x96xf32>
    %367 = vector.shape_cast %366 : vector<1x32x96xf32> to vector<32x96xf32>
    %cst_147 = arith.constant dense<0.000000e+00> : vector<16x96xf32>
    %368 = tpu.matmul %364, %367, %cst_147 {dimension_numbers = #tpu.dot_dimension_numbers<[1], [0], [0], [1], [0, 0, 1, 1], [], []>} : vector<16x32xf32>, vector<32x96xf32>, vector<16x96xf32> -> vector<16x96xf32>
    %c2_148 = arith.constant 2 : index
    %c0_149 = arith.constant 0 : index
    %c0_150 = arith.constant 0 : index
    %369 = vector.load %arg5[%c2_148, %c0_149, %c0_150] : memref<4x1x96xf32, #tpu.memory_space<vmem>>, vector<1x1x96xf32>
    %370 = vector.shape_cast %369 : vector<1x1x96xf32> to vector<1x96xf32>
    %371 = vector.broadcast %370 : vector<1x96xf32> to vector<16x96xf32>
    %372 = arith.addf %368, %371 : vector<16x96xf32>
    %373 = vector.extract_strided_slice %372 {offsets = [0, 0], sizes = [16, 8], strides = [1, 1]} : vector<16x96xf32> to vector<16x8xf32>
    %374 = vector.extract_strided_slice %372 {offsets = [0, 32], sizes = [16, 8], strides = [1, 1]} : vector<16x96xf32> to vector<16x8xf32>
    %375 = vector.extract_strided_slice %372 {offsets = [0, 64], sizes = [16, 8], strides = [1, 1]} : vector<16x96xf32> to vector<16x8xf32>
    %cst_151 = arith.constant dense<0.000000e+00> : vector<16x16xf32>
    %376 = tpu.matmul %373, %374, %cst_151 {dimension_numbers = #tpu.dot_dimension_numbers<[1], [1], [0], [0], [0, 0, 1, 0], [], []>} : vector<16x8xf32>, vector<16x8xf32>, vector<16x16xf32> -> vector<16x16xf32>
    %cst_152 = arith.constant 0.353553385 : f32
    %377 = vector.broadcast %cst_152 : f32 to vector<16x16xf32>
    %378 = arith.mulf %376, %377 : vector<16x16xf32>
    %379 = arith.addf %378, %0 : vector<16x16xf32>
    %cst_153 = arith.constant dense<0xFF800000> : vector<16xf32>
    %380 = vector.multi_reduction <maximumf>, %379, %cst_153 [1] : vector<16x16xf32> to vector<16xf32>
    %381 = vector.shape_cast %380 : vector<16xf32> to vector<16x1xf32>
    %382 = vector.broadcast %381 : vector<16x1xf32> to vector<16x16xf32>
    %383 = arith.subf %379, %382 : vector<16x16xf32>
    %384 = math.exp %383 : vector<16x16xf32>
    %cst_154 = arith.constant dense<0.000000e+00> : vector<16xf32>
    %385 = vector.multi_reduction <add>, %384, %cst_154 [1] : vector<16x16xf32> to vector<16xf32>
    %386 = vector.shape_cast %385 : vector<16xf32> to vector<16x1xf32>
    %387 = tpu.reciprocal %386 {approx = true} : vector<16x1xf32> -> vector<16x1xf32>
    %388 = vector.broadcast %387 : vector<16x1xf32> to vector<16x16xf32>
    %389 = arith.mulf %384, %388 : vector<16x16xf32>
    %cst_155 = arith.constant dense<0.000000e+00> : vector<16x8xf32>
    %390 = tpu.matmul %389, %375, %cst_155 {dimension_numbers = #tpu.dot_dimension_numbers<[1], [0], [0], [1], [0, 0, 1, 1], [], []>} : vector<16x16xf32>, vector<16x8xf32>, vector<16x8xf32> -> vector<16x8xf32>
    %391 = vector.extract_strided_slice %372 {offsets = [0, 8], sizes = [16, 8], strides = [1, 1]} : vector<16x96xf32> to vector<16x8xf32>
    %392 = vector.extract_strided_slice %372 {offsets = [0, 40], sizes = [16, 8], strides = [1, 1]} : vector<16x96xf32> to vector<16x8xf32>
    %393 = vector.extract_strided_slice %372 {offsets = [0, 72], sizes = [16, 8], strides = [1, 1]} : vector<16x96xf32> to vector<16x8xf32>
    %cst_156 = arith.constant dense<0.000000e+00> : vector<16x16xf32>
    %394 = tpu.matmul %391, %392, %cst_156 {dimension_numbers = #tpu.dot_dimension_numbers<[1], [1], [0], [0], [0, 0, 1, 0], [], []>} : vector<16x8xf32>, vector<16x8xf32>, vector<16x16xf32> -> vector<16x16xf32>
    %cst_157 = arith.constant 0.353553385 : f32
    %395 = vector.broadcast %cst_157 : f32 to vector<16x16xf32>
    %396 = arith.mulf %394, %395 : vector<16x16xf32>
    %397 = arith.addf %396, %0 : vector<16x16xf32>
    %cst_158 = arith.constant dense<0xFF800000> : vector<16xf32>
    %398 = vector.multi_reduction <maximumf>, %397, %cst_158 [1] : vector<16x16xf32> to vector<16xf32>
    %399 = vector.shape_cast %398 : vector<16xf32> to vector<16x1xf32>
    %400 = vector.broadcast %399 : vector<16x1xf32> to vector<16x16xf32>
    %401 = arith.subf %397, %400 : vector<16x16xf32>
    %402 = math.exp %401 : vector<16x16xf32>
    %cst_159 = arith.constant dense<0.000000e+00> : vector<16xf32>
    %403 = vector.multi_reduction <add>, %402, %cst_159 [1] : vector<16x16xf32> to vector<16xf32>
    %404 = vector.shape_cast %403 : vector<16xf32> to vector<16x1xf32>
    %405 = tpu.reciprocal %404 {approx = true} : vector<16x1xf32> -> vector<16x1xf32>
    %406 = vector.broadcast %405 : vector<16x1xf32> to vector<16x16xf32>
    %407 = arith.mulf %402, %406 : vector<16x16xf32>
    %cst_160 = arith.constant dense<0.000000e+00> : vector<16x8xf32>
    %408 = tpu.matmul %407, %393, %cst_160 {dimension_numbers = #tpu.dot_dimension_numbers<[1], [0], [0], [1], [0, 0, 1, 1], [], []>} : vector<16x16xf32>, vector<16x8xf32>, vector<16x8xf32> -> vector<16x8xf32>
    %409 = vector.extract_strided_slice %372 {offsets = [0, 16], sizes = [16, 8], strides = [1, 1]} : vector<16x96xf32> to vector<16x8xf32>
    %410 = vector.extract_strided_slice %372 {offsets = [0, 48], sizes = [16, 8], strides = [1, 1]} : vector<16x96xf32> to vector<16x8xf32>
    %411 = vector.extract_strided_slice %372 {offsets = [0, 80], sizes = [16, 8], strides = [1, 1]} : vector<16x96xf32> to vector<16x8xf32>
    %cst_161 = arith.constant dense<0.000000e+00> : vector<16x16xf32>
    %412 = tpu.matmul %409, %410, %cst_161 {dimension_numbers = #tpu.dot_dimension_numbers<[1], [1], [0], [0], [0, 0, 1, 0], [], []>} : vector<16x8xf32>, vector<16x8xf32>, vector<16x16xf32> -> vector<16x16xf32>
    %cst_162 = arith.constant 0.353553385 : f32
    %413 = vector.broadcast %cst_162 : f32 to vector<16x16xf32>
    %414 = arith.mulf %412, %413 : vector<16x16xf32>
    %415 = arith.addf %414, %0 : vector<16x16xf32>
    %cst_163 = arith.constant dense<0xFF800000> : vector<16xf32>
    %416 = vector.multi_reduction <maximumf>, %415, %cst_163 [1] : vector<16x16xf32> to vector<16xf32>
    %417 = vector.shape_cast %416 : vector<16xf32> to vector<16x1xf32>
    %418 = vector.broadcast %417 : vector<16x1xf32> to vector<16x16xf32>
    %419 = arith.subf %415, %418 : vector<16x16xf32>
    %420 = math.exp %419 : vector<16x16xf32>
    %cst_164 = arith.constant dense<0.000000e+00> : vector<16xf32>
    %421 = vector.multi_reduction <add>, %420, %cst_164 [1] : vector<16x16xf32> to vector<16xf32>
    %422 = vector.shape_cast %421 : vector<16xf32> to vector<16x1xf32>
    %423 = tpu.reciprocal %422 {approx = true} : vector<16x1xf32> -> vector<16x1xf32>
    %424 = vector.broadcast %423 : vector<16x1xf32> to vector<16x16xf32>
    %425 = arith.mulf %420, %424 : vector<16x16xf32>
    %cst_165 = arith.constant dense<0.000000e+00> : vector<16x8xf32>
    %426 = tpu.matmul %425, %411, %cst_165 {dimension_numbers = #tpu.dot_dimension_numbers<[1], [0], [0], [1], [0, 0, 1, 1], [], []>} : vector<16x16xf32>, vector<16x8xf32>, vector<16x8xf32> -> vector<16x8xf32>
    %427 = vector.extract_strided_slice %372 {offsets = [0, 24], sizes = [16, 8], strides = [1, 1]} : vector<16x96xf32> to vector<16x8xf32>
    %428 = vector.extract_strided_slice %372 {offsets = [0, 56], sizes = [16, 8], strides = [1, 1]} : vector<16x96xf32> to vector<16x8xf32>
    %429 = vector.extract_strided_slice %372 {offsets = [0, 88], sizes = [16, 8], strides = [1, 1]} : vector<16x96xf32> to vector<16x8xf32>
    %cst_166 = arith.constant dense<0.000000e+00> : vector<16x16xf32>
    %430 = tpu.matmul %427, %428, %cst_166 {dimension_numbers = #tpu.dot_dimension_numbers<[1], [1], [0], [0], [0, 0, 1, 0], [], []>} : vector<16x8xf32>, vector<16x8xf32>, vector<16x16xf32> -> vector<16x16xf32>
    %cst_167 = arith.constant 0.353553385 : f32
    %431 = vector.broadcast %cst_167 : f32 to vector<16x16xf32>
    %432 = arith.mulf %430, %431 : vector<16x16xf32>
    %433 = arith.addf %432, %0 : vector<16x16xf32>
    %cst_168 = arith.constant dense<0xFF800000> : vector<16xf32>
    %434 = vector.multi_reduction <maximumf>, %433, %cst_168 [1] : vector<16x16xf32> to vector<16xf32>
    %435 = vector.shape_cast %434 : vector<16xf32> to vector<16x1xf32>
    %436 = vector.broadcast %435 : vector<16x1xf32> to vector<16x16xf32>
    %437 = arith.subf %433, %436 : vector<16x16xf32>
    %438 = math.exp %437 : vector<16x16xf32>
    %cst_169 = arith.constant dense<0.000000e+00> : vector<16xf32>
    %439 = vector.multi_reduction <add>, %438, %cst_169 [1] : vector<16x16xf32> to vector<16xf32>
    %440 = vector.shape_cast %439 : vector<16xf32> to vector<16x1xf32>
    %441 = tpu.reciprocal %440 {approx = true} : vector<16x1xf32> -> vector<16x1xf32>
    %442 = vector.broadcast %441 : vector<16x1xf32> to vector<16x16xf32>
    %443 = arith.mulf %438, %442 : vector<16x16xf32>
    %cst_170 = arith.constant dense<0.000000e+00> : vector<16x8xf32>
    %444 = tpu.matmul %443, %429, %cst_170 {dimension_numbers = #tpu.dot_dimension_numbers<[1], [0], [0], [1], [0, 0, 1, 1], [], []>} : vector<16x16xf32>, vector<16x8xf32>, vector<16x8xf32> -> vector<16x8xf32>
    %445 = tpu.concatenate %390, %408, %426, %444 in 1 : vector<16x8xf32>, vector<16x8xf32>, vector<16x8xf32>, vector<16x8xf32> -> vector<16x32xf32>
    %c2_171 = arith.constant 2 : index
    %c0_172 = arith.constant 0 : index
    %c0_173 = arith.constant 0 : index
    %446 = vector.load %arg6[%c2_171, %c0_172, %c0_173] : memref<4x32x32xf32, #tpu.memory_space<vmem>>, vector<1x32x32xf32>
    %447 = vector.shape_cast %446 : vector<1x32x32xf32> to vector<32x32xf32>
    %cst_174 = arith.constant dense<0.000000e+00> : vector<16x32xf32>
    %448 = tpu.matmul %445, %447, %cst_174 {dimension_numbers = #tpu.dot_dimension_numbers<[1], [0], [0], [1], [0, 0, 1, 1], [], []>} : vector<16x32xf32>, vector<32x32xf32>, vector<16x32xf32> -> vector<16x32xf32>
    %c2_175 = arith.constant 2 : index
    %c0_176 = arith.constant 0 : index
    %c0_177 = arith.constant 0 : index
    %449 = vector.load %arg7[%c2_175, %c0_176, %c0_177] : memref<4x1x32xf32, #tpu.memory_space<vmem>>, vector<1x1x32xf32>
    %450 = vector.shape_cast %449 : vector<1x1x32xf32> to vector<1x32xf32>
    %451 = vector.broadcast %450 : vector<1x32xf32> to vector<16x32xf32>
    %452 = arith.addf %448, %451 : vector<16x32xf32>
    %453 = arith.addf %364, %452 : vector<16x32xf32>
    %c2_178 = arith.constant 2 : index
    %c0_179 = arith.constant 0 : index
    %c0_180 = arith.constant 0 : index
    %454 = vector.load %arg8[%c2_178, %c0_179, %c0_180] : memref<4x2x32xf32, #tpu.memory_space<vmem>>, vector<1x2x32xf32>
    %455 = vector.shape_cast %454 : vector<1x2x32xf32> to vector<2x32xf32>
    %456 = vector.extract_strided_slice %455 {offsets = [0, 0], sizes = [1, 32], strides = [1, 1]} : vector<2x32xf32> to vector<1x32xf32>
    %457 = vector.extract_strided_slice %455 {offsets = [1, 0], sizes = [1, 32], strides = [1, 1]} : vector<2x32xf32> to vector<1x32xf32>
    %cst_181 = arith.constant dense<0.000000e+00> : vector<16xf32>
    %458 = vector.multi_reduction <add>, %453, %cst_181 [1] : vector<16x32xf32> to vector<16xf32>
    %459 = vector.shape_cast %458 : vector<16xf32> to vector<16x1xf32>
    %cst_182 = arith.constant 3.200000e+01 : f32
    %460 = vector.broadcast %cst_182 : f32 to vector<16x1xf32>
    %461 = arith.divf %459, %460 : vector<16x1xf32>
    %462 = arith.mulf %453, %453 : vector<16x32xf32>
    %cst_183 = arith.constant dense<0.000000e+00> : vector<16xf32>
    %463 = vector.multi_reduction <add>, %462, %cst_183 [1] : vector<16x32xf32> to vector<16xf32>
    %464 = vector.shape_cast %463 : vector<16xf32> to vector<16x1xf32>
    %cst_184 = arith.constant 3.200000e+01 : f32
    %465 = vector.broadcast %cst_184 : f32 to vector<16x1xf32>
    %466 = arith.divf %464, %465 : vector<16x1xf32>
    %467 = arith.mulf %461, %461 : vector<16x1xf32>
    %468 = arith.subf %466, %467 : vector<16x1xf32>
    %469 = vector.broadcast %461 : vector<16x1xf32> to vector<16x32xf32>
    %470 = arith.subf %453, %469 : vector<16x32xf32>
    %cst_185 = arith.constant 9.99999996E-13 : f32
    %471 = vector.broadcast %cst_185 : f32 to vector<16x1xf32>
    %472 = arith.addf %468, %471 : vector<16x1xf32>
    %473 = math.rsqrt %472 : vector<16x1xf32>
    %474 = vector.broadcast %473 : vector<16x1xf32> to vector<16x32xf32>
    %475 = arith.mulf %470, %474 : vector<16x32xf32>
    %476 = vector.broadcast %456 : vector<1x32xf32> to vector<16x32xf32>
    %477 = arith.mulf %475, %476 : vector<16x32xf32>
    %478 = vector.broadcast %457 : vector<1x32xf32> to vector<16x32xf32>
    %479 = arith.addf %477, %478 : vector<16x32xf32>
    %c2_186 = arith.constant 2 : index
    %c0_187 = arith.constant 0 : index
    %c0_188 = arith.constant 0 : index
    %480 = vector.load %arg9[%c2_186, %c0_187, %c0_188] : memref<4x32x64xf32, #tpu.memory_space<vmem>>, vector<1x32x64xf32>
    %481 = vector.shape_cast %480 : vector<1x32x64xf32> to vector<32x64xf32>
    %cst_189 = arith.constant dense<0.000000e+00> : vector<16x64xf32>
    %482 = tpu.matmul %479, %481, %cst_189 {dimension_numbers = #tpu.dot_dimension_numbers<[1], [0], [0], [1], [0, 0, 1, 1], [], []>} : vector<16x32xf32>, vector<32x64xf32>, vector<16x64xf32> -> vector<16x64xf32>
    %c2_190 = arith.constant 2 : index
    %c0_191 = arith.constant 0 : index
    %c0_192 = arith.constant 0 : index
    %483 = vector.load %arg10[%c2_190, %c0_191, %c0_192] : memref<4x1x64xf32, #tpu.memory_space<vmem>>, vector<1x1x64xf32>
    %484 = vector.shape_cast %483 : vector<1x1x64xf32> to vector<1x64xf32>
    %485 = vector.broadcast %484 : vector<1x64xf32> to vector<16x64xf32>
    %486 = arith.addf %482, %485 : vector<16x64xf32>
    %cst_193 = arith.constant 5.000000e-01 : f32
    %487 = vector.broadcast %cst_193 : f32 to vector<16x64xf32>
    %488 = arith.mulf %487, %486 : vector<16x64xf32>
    %cst_194 = arith.constant 4.471500e-02 : f32
    %489 = vector.broadcast %cst_194 : f32 to vector<16x64xf32>
    %490 = arith.mulf %489, %486 : vector<16x64xf32>
    %491 = arith.mulf %490, %486 : vector<16x64xf32>
    %492 = arith.mulf %491, %486 : vector<16x64xf32>
    %493 = arith.addf %486, %492 : vector<16x64xf32>
    %cst_195 = arith.constant 0.797884583 : f32
    %494 = vector.broadcast %cst_195 : f32 to vector<16x64xf32>
    %495 = arith.mulf %494, %493 : vector<16x64xf32>
    %496 = math.tanh %495 : vector<16x64xf32>
    %cst_196 = arith.constant 1.000000e+00 : f32
    %497 = vector.broadcast %cst_196 : f32 to vector<16x64xf32>
    %498 = arith.addf %497, %496 : vector<16x64xf32>
    %499 = arith.mulf %488, %498 : vector<16x64xf32>
    %c2_197 = arith.constant 2 : index
    %c0_198 = arith.constant 0 : index
    %c0_199 = arith.constant 0 : index
    %500 = vector.load %arg11[%c2_197, %c0_198, %c0_199] : memref<4x64x32xf32, #tpu.memory_space<vmem>>, vector<1x64x32xf32>
    %501 = vector.shape_cast %500 : vector<1x64x32xf32> to vector<64x32xf32>
    %cst_200 = arith.constant dense<0.000000e+00> : vector<16x32xf32>
    %502 = tpu.matmul %499, %501, %cst_200 {dimension_numbers = #tpu.dot_dimension_numbers<[1], [0], [0], [1], [0, 0, 1, 1], [], []>} : vector<16x64xf32>, vector<64x32xf32>, vector<16x32xf32> -> vector<16x32xf32>
    %c2_201 = arith.constant 2 : index
    %c0_202 = arith.constant 0 : index
    %c0_203 = arith.constant 0 : index
    %503 = vector.load %arg12[%c2_201, %c0_202, %c0_203] : memref<4x1x32xf32, #tpu.memory_space<vmem>>, vector<1x1x32xf32>
    %504 = vector.shape_cast %503 : vector<1x1x32xf32> to vector<1x32xf32>
    %505 = vector.broadcast %504 : vector<1x32xf32> to vector<16x32xf32>
    %506 = arith.addf %502, %505 : vector<16x32xf32>
    %507 = arith.addf %479, %506 : vector<16x32xf32>
    %c2_204 = arith.constant 2 : index
    %c0_205 = arith.constant 0 : index
    %c0_206 = arith.constant 0 : index
    %508 = vector.load %arg13[%c2_204, %c0_205, %c0_206] : memref<4x2x32xf32, #tpu.memory_space<vmem>>, vector<1x2x32xf32>
    %509 = vector.shape_cast %508 : vector<1x2x32xf32> to vector<2x32xf32>
    %510 = vector.extract_strided_slice %509 {offsets = [0, 0], sizes = [1, 32], strides = [1, 1]} : vector<2x32xf32> to vector<1x32xf32>
    %511 = vector.extract_strided_slice %509 {offsets = [1, 0], sizes = [1, 32], strides = [1, 1]} : vector<2x32xf32> to vector<1x32xf32>
    %cst_207 = arith.constant dense<0.000000e+00> : vector<16xf32>
    %512 = vector.multi_reduction <add>, %507, %cst_207 [1] : vector<16x32xf32> to vector<16xf32>
    %513 = vector.shape_cast %512 : vector<16xf32> to vector<16x1xf32>
    %cst_208 = arith.constant 3.200000e+01 : f32
    %514 = vector.broadcast %cst_208 : f32 to vector<16x1xf32>
    %515 = arith.divf %513, %514 : vector<16x1xf32>
    %516 = arith.mulf %507, %507 : vector<16x32xf32>
    %cst_209 = arith.constant dense<0.000000e+00> : vector<16xf32>
    %517 = vector.multi_reduction <add>, %516, %cst_209 [1] : vector<16x32xf32> to vector<16xf32>
    %518 = vector.shape_cast %517 : vector<16xf32> to vector<16x1xf32>
    %cst_210 = arith.constant 3.200000e+01 : f32
    %519 = vector.broadcast %cst_210 : f32 to vector<16x1xf32>
    %520 = arith.divf %518, %519 : vector<16x1xf32>
    %521 = arith.mulf %515, %515 : vector<16x1xf32>
    %522 = arith.subf %520, %521 : vector<16x1xf32>
    %523 = vector.broadcast %515 : vector<16x1xf32> to vector<16x32xf32>
    %524 = arith.subf %507, %523 : vector<16x32xf32>
    %cst_211 = arith.constant 9.99999996E-13 : f32
    %525 = vector.broadcast %cst_211 : f32 to vector<16x1xf32>
    %526 = arith.addf %522, %525 : vector<16x1xf32>
    %527 = math.rsqrt %526 : vector<16x1xf32>
    %528 = vector.broadcast %527 : vector<16x1xf32> to vector<16x32xf32>
    %529 = arith.mulf %524, %528 : vector<16x32xf32>
    %530 = vector.broadcast %510 : vector<1x32xf32> to vector<16x32xf32>
    %531 = arith.mulf %529, %530 : vector<16x32xf32>
    %532 = vector.broadcast %511 : vector<1x32xf32> to vector<16x32xf32>
    %533 = arith.addf %531, %532 : vector<16x32xf32>
    %534 = arith.addf %365, %533 : vector<16x32xf32>
    %c3 = arith.constant 3 : index
    %c0_212 = arith.constant 0 : index
    %c0_213 = arith.constant 0 : index
    %535 = vector.load %arg4[%c3, %c0_212, %c0_213] : memref<4x32x96xf32, #tpu.memory_space<vmem>>, vector<1x32x96xf32>
    %536 = vector.shape_cast %535 : vector<1x32x96xf32> to vector<32x96xf32>
    %cst_214 = arith.constant dense<0.000000e+00> : vector<16x96xf32>
    %537 = tpu.matmul %533, %536, %cst_214 {dimension_numbers = #tpu.dot_dimension_numbers<[1], [0], [0], [1], [0, 0, 1, 1], [], []>} : vector<16x32xf32>, vector<32x96xf32>, vector<16x96xf32> -> vector<16x96xf32>
    %c3_215 = arith.constant 3 : index
    %c0_216 = arith.constant 0 : index
    %c0_217 = arith.constant 0 : index
    %538 = vector.load %arg5[%c3_215, %c0_216, %c0_217] : memref<4x1x96xf32, #tpu.memory_space<vmem>>, vector<1x1x96xf32>
    %539 = vector.shape_cast %538 : vector<1x1x96xf32> to vector<1x96xf32>
    %540 = vector.broadcast %539 : vector<1x96xf32> to vector<16x96xf32>
    %541 = arith.addf %537, %540 : vector<16x96xf32>
    %542 = vector.extract_strided_slice %541 {offsets = [0, 0], sizes = [16, 8], strides = [1, 1]} : vector<16x96xf32> to vector<16x8xf32>
    %543 = vector.extract_strided_slice %541 {offsets = [0, 32], sizes = [16, 8], strides = [1, 1]} : vector<16x96xf32> to vector<16x8xf32>
    %544 = vector.extract_strided_slice %541 {offsets = [0, 64], sizes = [16, 8], strides = [1, 1]} : vector<16x96xf32> to vector<16x8xf32>
    %cst_218 = arith.constant dense<0.000000e+00> : vector<16x16xf32>
    %545 = tpu.matmul %542, %543, %cst_218 {dimension_numbers = #tpu.dot_dimension_numbers<[1], [1], [0], [0], [0, 0, 1, 0], [], []>} : vector<16x8xf32>, vector<16x8xf32>, vector<16x16xf32> -> vector<16x16xf32>
    %cst_219 = arith.constant 0.353553385 : f32
    %546 = vector.broadcast %cst_219 : f32 to vector<16x16xf32>
    %547 = arith.mulf %545, %546 : vector<16x16xf32>
    %548 = arith.addf %547, %0 : vector<16x16xf32>
    %cst_220 = arith.constant dense<0xFF800000> : vector<16xf32>
    %549 = vector.multi_reduction <maximumf>, %548, %cst_220 [1] : vector<16x16xf32> to vector<16xf32>
    %550 = vector.shape_cast %549 : vector<16xf32> to vector<16x1xf32>
    %551 = vector.broadcast %550 : vector<16x1xf32> to vector<16x16xf32>
    %552 = arith.subf %548, %551 : vector<16x16xf32>
    %553 = math.exp %552 : vector<16x16xf32>
    %cst_221 = arith.constant dense<0.000000e+00> : vector<16xf32>
    %554 = vector.multi_reduction <add>, %553, %cst_221 [1] : vector<16x16xf32> to vector<16xf32>
    %555 = vector.shape_cast %554 : vector<16xf32> to vector<16x1xf32>
    %556 = tpu.reciprocal %555 {approx = true} : vector<16x1xf32> -> vector<16x1xf32>
    %557 = vector.broadcast %556 : vector<16x1xf32> to vector<16x16xf32>
    %558 = arith.mulf %553, %557 : vector<16x16xf32>
    %cst_222 = arith.constant dense<0.000000e+00> : vector<16x8xf32>
    %559 = tpu.matmul %558, %544, %cst_222 {dimension_numbers = #tpu.dot_dimension_numbers<[1], [0], [0], [1], [0, 0, 1, 1], [], []>} : vector<16x16xf32>, vector<16x8xf32>, vector<16x8xf32> -> vector<16x8xf32>
    %560 = vector.extract_strided_slice %541 {offsets = [0, 8], sizes = [16, 8], strides = [1, 1]} : vector<16x96xf32> to vector<16x8xf32>
    %561 = vector.extract_strided_slice %541 {offsets = [0, 40], sizes = [16, 8], strides = [1, 1]} : vector<16x96xf32> to vector<16x8xf32>
    %562 = vector.extract_strided_slice %541 {offsets = [0, 72], sizes = [16, 8], strides = [1, 1]} : vector<16x96xf32> to vector<16x8xf32>
    %cst_223 = arith.constant dense<0.000000e+00> : vector<16x16xf32>
    %563 = tpu.matmul %560, %561, %cst_223 {dimension_numbers = #tpu.dot_dimension_numbers<[1], [1], [0], [0], [0, 0, 1, 0], [], []>} : vector<16x8xf32>, vector<16x8xf32>, vector<16x16xf32> -> vector<16x16xf32>
    %cst_224 = arith.constant 0.353553385 : f32
    %564 = vector.broadcast %cst_224 : f32 to vector<16x16xf32>
    %565 = arith.mulf %563, %564 : vector<16x16xf32>
    %566 = arith.addf %565, %0 : vector<16x16xf32>
    %cst_225 = arith.constant dense<0xFF800000> : vector<16xf32>
    %567 = vector.multi_reduction <maximumf>, %566, %cst_225 [1] : vector<16x16xf32> to vector<16xf32>
    %568 = vector.shape_cast %567 : vector<16xf32> to vector<16x1xf32>
    %569 = vector.broadcast %568 : vector<16x1xf32> to vector<16x16xf32>
    %570 = arith.subf %566, %569 : vector<16x16xf32>
    %571 = math.exp %570 : vector<16x16xf32>
    %cst_226 = arith.constant dense<0.000000e+00> : vector<16xf32>
    %572 = vector.multi_reduction <add>, %571, %cst_226 [1] : vector<16x16xf32> to vector<16xf32>
    %573 = vector.shape_cast %572 : vector<16xf32> to vector<16x1xf32>
    %574 = tpu.reciprocal %573 {approx = true} : vector<16x1xf32> -> vector<16x1xf32>
    %575 = vector.broadcast %574 : vector<16x1xf32> to vector<16x16xf32>
    %576 = arith.mulf %571, %575 : vector<16x16xf32>
    %cst_227 = arith.constant dense<0.000000e+00> : vector<16x8xf32>
    %577 = tpu.matmul %576, %562, %cst_227 {dimension_numbers = #tpu.dot_dimension_numbers<[1], [0], [0], [1], [0, 0, 1, 1], [], []>} : vector<16x16xf32>, vector<16x8xf32>, vector<16x8xf32> -> vector<16x8xf32>
    %578 = vector.extract_strided_slice %541 {offsets = [0, 16], sizes = [16, 8], strides = [1, 1]} : vector<16x96xf32> to vector<16x8xf32>
    %579 = vector.extract_strided_slice %541 {offsets = [0, 48], sizes = [16, 8], strides = [1, 1]} : vector<16x96xf32> to vector<16x8xf32>
    %580 = vector.extract_strided_slice %541 {offsets = [0, 80], sizes = [16, 8], strides = [1, 1]} : vector<16x96xf32> to vector<16x8xf32>
    %cst_228 = arith.constant dense<0.000000e+00> : vector<16x16xf32>
    %581 = tpu.matmul %578, %579, %cst_228 {dimension_numbers = #tpu.dot_dimension_numbers<[1], [1], [0], [0], [0, 0, 1, 0], [], []>} : vector<16x8xf32>, vector<16x8xf32>, vector<16x16xf32> -> vector<16x16xf32>
    %cst_229 = arith.constant 0.353553385 : f32
    %582 = vector.broadcast %cst_229 : f32 to vector<16x16xf32>
    %583 = arith.mulf %581, %582 : vector<16x16xf32>
    %584 = arith.addf %583, %0 : vector<16x16xf32>
    %cst_230 = arith.constant dense<0xFF800000> : vector<16xf32>
    %585 = vector.multi_reduction <maximumf>, %584, %cst_230 [1] : vector<16x16xf32> to vector<16xf32>
    %586 = vector.shape_cast %585 : vector<16xf32> to vector<16x1xf32>
    %587 = vector.broadcast %586 : vector<16x1xf32> to vector<16x16xf32>
    %588 = arith.subf %584, %587 : vector<16x16xf32>
    %589 = math.exp %588 : vector<16x16xf32>
    %cst_231 = arith.constant dense<0.000000e+00> : vector<16xf32>
    %590 = vector.multi_reduction <add>, %589, %cst_231 [1] : vector<16x16xf32> to vector<16xf32>
    %591 = vector.shape_cast %590 : vector<16xf32> to vector<16x1xf32>
    %592 = tpu.reciprocal %591 {approx = true} : vector<16x1xf32> -> vector<16x1xf32>
    %593 = vector.broadcast %592 : vector<16x1xf32> to vector<16x16xf32>
    %594 = arith.mulf %589, %593 : vector<16x16xf32>
    %cst_232 = arith.constant dense<0.000000e+00> : vector<16x8xf32>
    %595 = tpu.matmul %594, %580, %cst_232 {dimension_numbers = #tpu.dot_dimension_numbers<[1], [0], [0], [1], [0, 0, 1, 1], [], []>} : vector<16x16xf32>, vector<16x8xf32>, vector<16x8xf32> -> vector<16x8xf32>
    %596 = vector.extract_strided_slice %541 {offsets = [0, 24], sizes = [16, 8], strides = [1, 1]} : vector<16x96xf32> to vector<16x8xf32>
    %597 = vector.extract_strided_slice %541 {offsets = [0, 56], sizes = [16, 8], strides = [1, 1]} : vector<16x96xf32> to vector<16x8xf32>
    %598 = vector.extract_strided_slice %541 {offsets = [0, 88], sizes = [16, 8], strides = [1, 1]} : vector<16x96xf32> to vector<16x8xf32>
    %cst_233 = arith.constant dense<0.000000e+00> : vector<16x16xf32>
    %599 = tpu.matmul %596, %597, %cst_233 {dimension_numbers = #tpu.dot_dimension_numbers<[1], [1], [0], [0], [0, 0, 1, 0], [], []>} : vector<16x8xf32>, vector<16x8xf32>, vector<16x16xf32> -> vector<16x16xf32>
    %cst_234 = arith.constant 0.353553385 : f32
    %600 = vector.broadcast %cst_234 : f32 to vector<16x16xf32>
    %601 = arith.mulf %599, %600 : vector<16x16xf32>
    %602 = arith.addf %601, %0 : vector<16x16xf32>
    %cst_235 = arith.constant dense<0xFF800000> : vector<16xf32>
    %603 = vector.multi_reduction <maximumf>, %602, %cst_235 [1] : vector<16x16xf32> to vector<16xf32>
    %604 = vector.shape_cast %603 : vector<16xf32> to vector<16x1xf32>
    %605 = vector.broadcast %604 : vector<16x1xf32> to vector<16x16xf32>
    %606 = arith.subf %602, %605 : vector<16x16xf32>
    %607 = math.exp %606 : vector<16x16xf32>
    %cst_236 = arith.constant dense<0.000000e+00> : vector<16xf32>
    %608 = vector.multi_reduction <add>, %607, %cst_236 [1] : vector<16x16xf32> to vector<16xf32>
    %609 = vector.shape_cast %608 : vector<16xf32> to vector<16x1xf32>
    %610 = tpu.reciprocal %609 {approx = true} : vector<16x1xf32> -> vector<16x1xf32>
    %611 = vector.broadcast %610 : vector<16x1xf32> to vector<16x16xf32>
    %612 = arith.mulf %607, %611 : vector<16x16xf32>
    %cst_237 = arith.constant dense<0.000000e+00> : vector<16x8xf32>
    %613 = tpu.matmul %612, %598, %cst_237 {dimension_numbers = #tpu.dot_dimension_numbers<[1], [0], [0], [1], [0, 0, 1, 1], [], []>} : vector<16x16xf32>, vector<16x8xf32>, vector<16x8xf32> -> vector<16x8xf32>
    %614 = tpu.concatenate %559, %577, %595, %613 in 1 : vector<16x8xf32>, vector<16x8xf32>, vector<16x8xf32>, vector<16x8xf32> -> vector<16x32xf32>
    %c3_238 = arith.constant 3 : index
    %c0_239 = arith.constant 0 : index
    %c0_240 = arith.constant 0 : index
    %615 = vector.load %arg6[%c3_238, %c0_239, %c0_240] : memref<4x32x32xf32, #tpu.memory_space<vmem>>, vector<1x32x32xf32>
    %616 = vector.shape_cast %615 : vector<1x32x32xf32> to vector<32x32xf32>
    %cst_241 = arith.constant dense<0.000000e+00> : vector<16x32xf32>
    %617 = tpu.matmul %614, %616, %cst_241 {dimension_numbers = #tpu.dot_dimension_numbers<[1], [0], [0], [1], [0, 0, 1, 1], [], []>} : vector<16x32xf32>, vector<32x32xf32>, vector<16x32xf32> -> vector<16x32xf32>
    %c3_242 = arith.constant 3 : index
    %c0_243 = arith.constant 0 : index
    %c0_244 = arith.constant 0 : index
    %618 = vector.load %arg7[%c3_242, %c0_243, %c0_244] : memref<4x1x32xf32, #tpu.memory_space<vmem>>, vector<1x1x32xf32>
    %619 = vector.shape_cast %618 : vector<1x1x32xf32> to vector<1x32xf32>
    %620 = vector.broadcast %619 : vector<1x32xf32> to vector<16x32xf32>
    %621 = arith.addf %617, %620 : vector<16x32xf32>
    %622 = arith.addf %533, %621 : vector<16x32xf32>
    %c3_245 = arith.constant 3 : index
    %c0_246 = arith.constant 0 : index
    %c0_247 = arith.constant 0 : index
    %623 = vector.load %arg8[%c3_245, %c0_246, %c0_247] : memref<4x2x32xf32, #tpu.memory_space<vmem>>, vector<1x2x32xf32>
    %624 = vector.shape_cast %623 : vector<1x2x32xf32> to vector<2x32xf32>
    %625 = vector.extract_strided_slice %624 {offsets = [0, 0], sizes = [1, 32], strides = [1, 1]} : vector<2x32xf32> to vector<1x32xf32>
    %626 = vector.extract_strided_slice %624 {offsets = [1, 0], sizes = [1, 32], strides = [1, 1]} : vector<2x32xf32> to vector<1x32xf32>
    %cst_248 = arith.constant dense<0.000000e+00> : vector<16xf32>
    %627 = vector.multi_reduction <add>, %622, %cst_248 [1] : vector<16x32xf32> to vector<16xf32>
    %628 = vector.shape_cast %627 : vector<16xf32> to vector<16x1xf32>
    %cst_249 = arith.constant 3.200000e+01 : f32
    %629 = vector.broadcast %cst_249 : f32 to vector<16x1xf32>
    %630 = arith.divf %628, %629 : vector<16x1xf32>
    %631 = arith.mulf %622, %622 : vector<16x32xf32>
    %cst_250 = arith.constant dense<0.000000e+00> : vector<16xf32>
    %632 = vector.multi_reduction <add>, %631, %cst_250 [1] : vector<16x32xf32> to vector<16xf32>
    %633 = vector.shape_cast %632 : vector<16xf32> to vector<16x1xf32>
    %cst_251 = arith.constant 3.200000e+01 : f32
    %634 = vector.broadcast %cst_251 : f32 to vector<16x1xf32>
    %635 = arith.divf %633, %634 : vector<16x1xf32>
    %636 = arith.mulf %630, %630 : vector<16x1xf32>
    %637 = arith.subf %635, %636 : vector<16x1xf32>
    %638 = vector.broadcast %630 : vector<16x1xf32> to vector<16x32xf32>
    %639 = arith.subf %622, %638 : vector<16x32xf32>
    %cst_252 = arith.constant 9.99999996E-13 : f32
    %640 = vector.broadcast %cst_252 : f32 to vector<16x1xf32>
    %641 = arith.addf %637, %640 : vector<16x1xf32>
    %642 = math.rsqrt %641 : vector<16x1xf32>
    %643 = vector.broadcast %642 : vector<16x1xf32> to vector<16x32xf32>
    %644 = arith.mulf %639, %643 : vector<16x32xf32>
    %645 = vector.broadcast %625 : vector<1x32xf32> to vector<16x32xf32>
    %646 = arith.mulf %644, %645 : vector<16x32xf32>
    %647 = vector.broadcast %626 : vector<1x32xf32> to vector<16x32xf32>
    %648 = arith.addf %646, %647 : vector<16x32xf32>
    %c3_253 = arith.constant 3 : index
    %c0_254 = arith.constant 0 : index
    %c0_255 = arith.constant 0 : index
    %649 = vector.load %arg9[%c3_253, %c0_254, %c0_255] : memref<4x32x64xf32, #tpu.memory_space<vmem>>, vector<1x32x64xf32>
    %650 = vector.shape_cast %649 : vector<1x32x64xf32> to vector<32x64xf32>
    %cst_256 = arith.constant dense<0.000000e+00> : vector<16x64xf32>
    %651 = tpu.matmul %648, %650, %cst_256 {dimension_numbers = #tpu.dot_dimension_numbers<[1], [0], [0], [1], [0, 0, 1, 1], [], []>} : vector<16x32xf32>, vector<32x64xf32>, vector<16x64xf32> -> vector<16x64xf32>
    %c3_257 = arith.constant 3 : index
    %c0_258 = arith.constant 0 : index
    %c0_259 = arith.constant 0 : index
    %652 = vector.load %arg10[%c3_257, %c0_258, %c0_259] : memref<4x1x64xf32, #tpu.memory_space<vmem>>, vector<1x1x64xf32>
    %653 = vector.shape_cast %652 : vector<1x1x64xf32> to vector<1x64xf32>
    %654 = vector.broadcast %653 : vector<1x64xf32> to vector<16x64xf32>
    %655 = arith.addf %651, %654 : vector<16x64xf32>
    %cst_260 = arith.constant 5.000000e-01 : f32
    %656 = vector.broadcast %cst_260 : f32 to vector<16x64xf32>
    %657 = arith.mulf %656, %655 : vector<16x64xf32>
    %cst_261 = arith.constant 4.471500e-02 : f32
    %658 = vector.broadcast %cst_261 : f32 to vector<16x64xf32>
    %659 = arith.mulf %658, %655 : vector<16x64xf32>
    %660 = arith.mulf %659, %655 : vector<16x64xf32>
    %661 = arith.mulf %660, %655 : vector<16x64xf32>
    %662 = arith.addf %655, %661 : vector<16x64xf32>
    %cst_262 = arith.constant 0.797884583 : f32
    %663 = vector.broadcast %cst_262 : f32 to vector<16x64xf32>
    %664 = arith.mulf %663, %662 : vector<16x64xf32>
    %665 = math.tanh %664 : vector<16x64xf32>
    %cst_263 = arith.constant 1.000000e+00 : f32
    %666 = vector.broadcast %cst_263 : f32 to vector<16x64xf32>
    %667 = arith.addf %666, %665 : vector<16x64xf32>
    %668 = arith.mulf %657, %667 : vector<16x64xf32>
    %c3_264 = arith.constant 3 : index
    %c0_265 = arith.constant 0 : index
    %c0_266 = arith.constant 0 : index
    %669 = vector.load %arg11[%c3_264, %c0_265, %c0_266] : memref<4x64x32xf32, #tpu.memory_space<vmem>>, vector<1x64x32xf32>
    %670 = vector.shape_cast %669 : vector<1x64x32xf32> to vector<64x32xf32>
    %cst_267 = arith.constant dense<0.000000e+00> : vector<16x32xf32>
    %671 = tpu.matmul %668, %670, %cst_267 {dimension_numbers = #tpu.dot_dimension_numbers<[1], [0], [0], [1], [0, 0, 1, 1], [], []>} : vector<16x64xf32>, vector<64x32xf32>, vector<16x32xf32> -> vector<16x32xf32>
    %c3_268 = arith.constant 3 : index
    %c0_269 = arith.constant 0 : index
    %c0_270 = arith.constant 0 : index
    %672 = vector.load %arg12[%c3_268, %c0_269, %c0_270] : memref<4x1x32xf32, #tpu.memory_space<vmem>>, vector<1x1x32xf32>
    %673 = vector.shape_cast %672 : vector<1x1x32xf32> to vector<1x32xf32>
    %674 = vector.broadcast %673 : vector<1x32xf32> to vector<16x32xf32>
    %675 = arith.addf %671, %674 : vector<16x32xf32>
    %676 = arith.addf %648, %675 : vector<16x32xf32>
    %c3_271 = arith.constant 3 : index
    %c0_272 = arith.constant 0 : index
    %c0_273 = arith.constant 0 : index
    %677 = vector.load %arg13[%c3_271, %c0_272, %c0_273] : memref<4x2x32xf32, #tpu.memory_space<vmem>>, vector<1x2x32xf32>
    %678 = vector.shape_cast %677 : vector<1x2x32xf32> to vector<2x32xf32>
    %679 = vector.extract_strided_slice %678 {offsets = [0, 0], sizes = [1, 32], strides = [1, 1]} : vector<2x32xf32> to vector<1x32xf32>
    %680 = vector.extract_strided_slice %678 {offsets = [1, 0], sizes = [1, 32], strides = [1, 1]} : vector<2x32xf32> to vector<1x32xf32>
    %cst_274 = arith.constant dense<0.000000e+00> : vector<16xf32>
    %681 = vector.multi_reduction <add>, %676, %cst_274 [1] : vector<16x32xf32> to vector<16xf32>
    %682 = vector.shape_cast %681 : vector<16xf32> to vector<16x1xf32>
    %cst_275 = arith.constant 3.200000e+01 : f32
    %683 = vector.broadcast %cst_275 : f32 to vector<16x1xf32>
    %684 = arith.divf %682, %683 : vector<16x1xf32>
    %685 = arith.mulf %676, %676 : vector<16x32xf32>
    %cst_276 = arith.constant dense<0.000000e+00> : vector<16xf32>
    %686 = vector.multi_reduction <add>, %685, %cst_276 [1] : vector<16x32xf32> to vector<16xf32>
    %687 = vector.shape_cast %686 : vector<16xf32> to vector<16x1xf32>
    %cst_277 = arith.constant 3.200000e+01 : f32
    %688 = vector.broadcast %cst_277 : f32 to vector<16x1xf32>
    %689 = arith.divf %687, %688 : vector<16x1xf32>
    %690 = arith.mulf %684, %684 : vector<16x1xf32>
    %691 = arith.subf %689, %690 : vector<16x1xf32>
    %692 = vector.broadcast %684 : vector<16x1xf32> to vector<16x32xf32>
    %693 = arith.subf %676, %692 : vector<16x32xf32>
    %cst_278 = arith.constant 9.99999996E-13 : f32
    %694 = vector.broadcast %cst_278 : f32 to vector<16x1xf32>
    %695 = arith.addf %691, %694 : vector<16x1xf32>
    %696 = math.rsqrt %695 : vector<16x1xf32>
    %697 = vector.broadcast %696 : vector<16x1xf32> to vector<16x32xf32>
    %698 = arith.mulf %693, %697 : vector<16x32xf32>
    %699 = vector.broadcast %679 : vector<1x32xf32> to vector<16x32xf32>
    %700 = arith.mulf %698, %699 : vector<16x32xf32>
    %701 = vector.broadcast %680 : vector<1x32xf32> to vector<16x32xf32>
    %702 = arith.addf %700, %701 : vector<16x32xf32>
    %703 = arith.addf %534, %702 : vector<16x32xf32>
    %cst_279 = arith.constant 2.500000e-01 : f32
    %704 = vector.broadcast %cst_279 : f32 to vector<16x32xf32>
    %705 = arith.mulf %703, %704 : vector<16x32xf32>
    %c0_280 = arith.constant 0 : index
    %c0_281 = arith.constant 0 : index
    %706 = vector.load %arg0[%c0_280, %c0_281] : memref<2x16xf32, #tpu.memory_space<vmem>>, vector<2x16xf32>
    %cst_282 = arith.constant dense<0.000000e+00> : vector<2x32xf32>
    %707 = tpu.matmul %706, %705, %cst_282 {dimension_numbers = #tpu.dot_dimension_numbers<[1], [0], [0], [1], [0, 0, 1, 1], [], []>} : vector<2x16xf32>, vector<16x32xf32>, vector<2x32xf32> -> vector<2x32xf32>
    %c0_283 = arith.constant 0 : index
    %c0_284 = arith.constant 0 : index
    %708 = vector.load %arg14[%c0_283, %c0_284] : memref<4x32xf32, #tpu.memory_space<vmem>>, vector<1x32xf32>
    %c1_285 = arith.constant 1 : index
    %c0_286 = arith.constant 0 : index
    %709 = vector.load %arg14[%c1_285, %c0_286] : memref<4x32xf32, #tpu.memory_space<vmem>>, vector<1x32xf32>
    %c2_287 = arith.constant 2 : index
    %c0_288 = arith.constant 0 : index
    %710 = vector.load %arg14[%c2_287, %c0_288] : memref<4x32xf32, #tpu.memory_space<vmem>>, vector<1x32xf32>
    %c3_289 = arith.constant 3 : index
    %c0_290 = arith.constant 0 : index
    %711 = vector.load %arg14[%c3_289, %c0_290] : memref<4x32xf32, #tpu.memory_space<vmem>>, vector<1x32xf32>
    %712 = vector.broadcast %710 : vector<1x32xf32> to vector<2x32xf32>
    %713 = arith.subf %707, %712 : vector<2x32xf32>
    %cst_291 = arith.constant 9.99999974E-6 : f32
    %714 = vector.broadcast %cst_291 : f32 to vector<1x32xf32>
    %715 = arith.addf %711, %714 : vector<1x32xf32>
    %716 = math.rsqrt %715 : vector<1x32xf32>
    %717 = vector.broadcast %716 : vector<1x32xf32> to vector<2x32xf32>
    %718 = arith.mulf %713, %717 : vector<2x32xf32>
    %719 = vector.broadcast %708 : vector<1x32xf32> to vector<2x32xf32>
    %720 = arith.mulf %718, %719 : vector<2x32xf32>
    %721 = vector.broadcast %709 : vector<1x32xf32> to vector<2x32xf32>
    %722 = arith.addf %720, %721 : vector<2x32xf32>
    %c0_292 = arith.constant 0 : index
    %c0_293 = arith.constant 0 : index
    %723 = vector.load %arg15[%c0_292, %c0_293] : memref<2x32xf32, #tpu.memory_space<vmem>>, vector<2x32xf32>
    tpu.vector_store %arg15[%c0_292, %c0_293], %722 {strides = array<i32>} : memref<2x32xf32, #tpu.memory_space<vmem>>, vector<2x32xf32>,
    return
  }
}

</mosaic_0001>

<bundles_post_ra>
// kernel: bert_module_forward.1
= control target key start
LH: loop header
LB: loop body
LE: loop exit
PB: predicated region body
PF: predicated region fallthrough
CT: control target
= control target key end

     0   :  { %s7809_s0 = inlined_call_operand.vmem [shape: f32[2,16], index: 0, kind: input, shape index: {}]   ;;  %s7810_s1 = inlined_call_operand.vmem [shape: f32[16,16], index: 1, kind: input, shape index: {}]   ;;  %s7811_s2 = inlined_call_operand.vmem [shape: f32[16,32], index: 2, kind: input, shape index: {}]   ;;  %s7812_s3 = inlined_call_operand.vmem [shape: f32[2,32], index: 3, kind: input, shape index: {}]   ;;  %s7813_s4 = inlined_call_operand.vmem [shape: f32[4,32,96], index: 4, kind: input, shape index: {}]   ;;  %s7814_s5 = inlined_call_operand.vmem [shape: f32[4,1,96], index: 5, kind: input, shape index: {}]   ;;  %s7815_s6 = inlined_call_operand.vmem [shape: f32[4,32,32], index: 6, kind: input, shape index: {}]   ;;  %s7816_s7 = inlined_call_operand.vmem [shape: f32[4,1,32], index: 7, kind: input, shape index: {}]   ;;  %s7817_s8 = inlined_call_operand.vmem [shape: f32[4,2,32], index: 8, kind: input, shape index: {}]   ;;  %s7818_s9 = inlined_call_operand.vmem [shape: f32[4,32,64], index: 9, kind: input, shape index: {}]   ;;  %s7819_s10 = inlined_call_operand.vmem [shape: f32[4,1,64], index: 10, kind: input, shape index: {}]   ;;  %s7820_s11 = inlined_call_operand.vmem [shape: f32[4,64,32], index: 11, kind: input, shape index: {}]   ;;  %s7821_s12 = inlined_call_operand.vmem [shape: f32[4,1,32], index: 12, kind: input, shape index: {}]   ;;  %s7822_s13 = inlined_call_operand.vmem [shape: f32[4,2,32], index: 13, kind: input, shape index: {}]   ;;  %s7823_s14 = inlined_call_operand.vmem [shape: f32[4,32], index: 14, kind: input, shape index: {}]   ;;  %s7824_s15 = inlined_call_operand.hbm [shape: f32[2,32], index: 15, kind: output, shape index: {}]  }
   0x1   :  { %7853 = sst [smem:[#allocation5_spill]] %s7824_s15 }
   0x2   :  { %v53_v0 = vld [vmem:[%s7811_s2] sm:$0xff]  ;;  %vm56_vm0 = vcmask 261120   ;;  %v54_v1 = vld [vmem:[%s7811_s2 + $0x8] sm:$0xff] }
   0x3   :  { %20 = vsyncpa [#allocation3], 0  ;;  %v57_v2 = vsel %vm56_vm0, %v53_v0, 0.0  ;;  %v66_v3 = vmul.f32 %v53_v0, %v53_v0  ;;  %v67_v4 = vmul.f32 %v54_v1, %v54_v1  ;;  %v60_v6 = vsel %vm56_vm0, %v54_v1, 0.0  ;;  %v103_v8 = vld [vmem:[%s7813_s4 + $0x18] sm:$0xff]  ;;  %v102_v9 = vld [vmem:[%s7813_s4 + $0x10] sm:$0xff] }
   0x4   :  { %58 = vadd.xlane.f32.xlu0 %v57_v2  ;;  %6025 = vmatprep.subr.mxu1 %v103_v8  ;;  %v101_v10 = vld [vmem:[%s7813_s4 + $0x8] sm:$0xff]  ;;  %v100_v11 = vld [vmem:[%s7813_s4] sm:$0xff]  ;;  %v88_v25 = vlaneseq  ;;  %vm198_vm1 = vcmask 64512   ;;  %s7851_s17 = smov 96   ;;  %s7849_s18 = smov 120   ;;  %vm286_vm2 = vcmask 130048  }
   0x5   :  { %v68_v5 = vsel %vm56_vm0, %v66_v3, 0.0  ;;  %v71_v7 = vsel %vm56_vm0, %v67_v4, 0.0  ;;  %6026 = vmatpush3.msra.mxu1 %v103_v8  ;;  %v55_v29 = vld [vmem:[%s7812_s3] sm:$0x3]  ;;  %s7847_s19 = smov 88   ;;  %v6861_v55 = vld [vmem:[%s7810_s1 + $0x8] sm:$0xff] }
   0x6   :  { %69 = vadd.xlane.f32.xlu1 %v68_v5  ;;  %6027 = vmatprep.subr.mxu1 %v102_v9  ;;  %v89_v27 = vshrl.u32 %v88_v25, 7  ;;  %v5556_v43 = vld [vmem:[%s7814_s5] ss:$0 sm:$0xff]  ;;  %s7845_s2 = smov 64   ;;  %s7843_s24 = smov 56   ;;  %vm1036_vm3 = vcmask 195584  }
   0x7   :  { %6028 = vmatpush3.msra.mxu1 %v102_v9  ;;  %v6866_v58 = vld [vmem:[%s7810_s1] sm:$0xff]  ;;  %s7841_s25 = smov 80   ;;  %s7839_s26 = smov 112   ;;  %vm1301_vm4 = vcmask 523264   ;;  %vm6704_vm5 = vmmov 0   ;;  %vm5540_vm6 = vcmask 254976  }
   0x8   :  { %61 = vadd.xlane.f32.xlu0 %v60_v6  ;;  %6029 = vmatprep.subr.mxu1 %v101_v10  ;;  %v6808_v28 = vsub.s32 0, %v89_v27  ;;  %v6813_v30 = vsub.s32 1, %v89_v27  ;;  %s7837_s27 = smov 48   ;;  %s7835_s28 = smov 72  }
   0x9   :  { %6030 = vmatpush3.msra.mxu1 %v101_v10  ;;  %s7831_s29 = smov 104   ;;  %s7829_s30 = smov 40  }
   0xa   :  { %72 = vadd.xlane.f32.xlu1 %v71_v7  ;;  %6031 = vmatprep.subr.mxu1 %v100_v11  ;;  %v91_v32 = vrot.slane %v55_v29, %v6808_v28  ;;  %v97_v35 = vrot.slane %v55_v29, %v6813_v30  ;;  %s7827_s3 = smov 8   ;;  %s7825_s16 = smov 16  }
   0xb   :  { %6032 = vmatpush3.msra.mxu1 %v100_v11  ;;  %s7833_s20 = smov 24   ;;  %s7860_s21 = smov 80  }
   0xc   :  { %s7861_s22 = smov 112   ;;  %s7862_s23 = smov 48  }
  0x8d   :  { %v59_v12 = vpop.xlane.xlu0 %58 }
  0x8e   :  { %v64_v13 = vmul.f32 0.03125, %v59_v12 }
  0x8f   :  { %v70_v14 = vpop.xlane.xlu1 %69 }
  0x90   :  { %v76_v15 = vmul.f32 %v64_v13, %v64_v13  ;;  %v74_v16 = vmul.f32 0.03125, %v70_v14  ;;  %v80_v31 = vsub.f32 %v53_v0, %v64_v13 }
  0x91   :  { %v62_v17 = vpop.xlane.xlu0 %61 }
  0x92   :  { %v78_v18 = vsub.f32 %v74_v16, %v76_v15  ;;  %v65_v19 = vmul.f32 0.03125, %v62_v17 }
  0x93   :  { %v73_v20 = vpop.xlane.xlu1 %72 }
  0x94   :  { %v82_v21 = vadd.f32 1e-12, %v78_v18  ;;  %v77_v22 = vmul.f32 %v65_v19, %v65_v19  ;;  %v75_v23 = vmul.f32 0.03125, %v73_v20  ;;  %v81_v36 = vsub.f32 %v54_v1, %v65_v19 }
  0x96   :  { %6481 = vrsqrt.f32 %v82_v21  ;;  %v79_v24 = vsub.f32 %v75_v23, %v77_v22 }
  0x98   :  { %v83_v26 = vadd.f32 1e-12, %v79_v24 }
  0x9a   :  { %6483 = vrsqrt.f32 %v83_v26 }
  0xa3   :  { %v6482_v33 = vpop.eup %6481 }
  0xa4   :  { %v86_v34 = vmul.f32 %v6482_v33, %v80_v31 }
  0xa6   :  { %v92_v37 = vmul.f32 %v91_v32, %v86_v34 }
  0xa7   :  { %v6484_v38 = vpop.eup %6483 }
  0xa8   :  { %v87_v39 = vmul.f32 %v6484_v38, %v81_v36  ;;  %v6817_v40 = vadd.f32 %v97_v35, %v92_v37 }
  0xaa   :  { %v93_v41 = vmul.f32 %v91_v32, %v87_v39  ;;  %6033 = vmatprep.mubr.msk.f32.mxu1 %vm56_vm0, %v6817_v40 }
  0xac   :  { %v6821_v42 = vadd.f32 %v97_v35, %v93_v41 }
  0xae   :  { %6034 = vmatmul.mubr.msk.f32.vlgmr.msra.gmra.mxu1 %vm56_vm0, %v6821_v42 }
 0x16e   :  { %v6035_v44 = vpop.f32.mrf.mxu1 }
 0x16f   :  { %v6828_v45 = vadd.f32 %v6035_v44, %v5556_v43 }
 0x170   :  { %v183_v46 = vpop.f32.mrf.mxu1 }
 0x171   :  { %v6830_v47 = vadd.f32 %v5556_v43, %v183_v46  ;;  %196 = vrot.lane.b32.xlu0 %v6828_v45, %s7851_s17 }
 0x173   :  { %194 = vrot.lane.b32.xlu1 %v6830_v47, %s7851_s17  ;;  %6040 = vmatprep.mubr.msk.f32.mxu1 %vm198_vm1, %v6830_v47 }
 0x175   :  { %396 = vrot.lane.b32.xlu0 %v6830_v47, %s7849_s18 }
 0x177   :  { %402 = vrot.lane.b32.xlu1 %v6828_v45, %s7847_s19 }
 0x17b   :  { %400 = vrot.lane.b32.xlu1 %v6830_v47, %s7847_s19 }
 0x17f   :  { %398 = vrot.lane.b32.xlu1 %v6828_v45, %s7849_s18 }
 0x1e3   :  { %v197_v48 = vpop.permute.xlu0 %196 }
 0x1e4   :  { %6036 = vmatprep.subr.msk.mxu1 %vm198_vm1, %v197_v48 }
 0x1e5   :  { %6037 = vmatpush3.xpose.msk.msra.mxu1 %vm198_vm1, %v197_v48  ;;  %v195_v49 = vpop.permute.xlu1 %194 }
 0x1e6   :  { %6038 = vmatprep.subr.msk.mxu1 %vm198_vm1, %v195_v49 }
 0x1e7   :  { %v397_v51 = vpop.permute.xlu0 %396 }
 0x1e9   :  { %6039 = vmatpush3.xpose.msk.msra.mxu1 %vm198_vm1, %v195_v49  ;;  %v403_v50 = vpop.permute.xlu1 %402 }
 0x1ea   :  { %6050 = vmatprep.subr.msk.mxu1 %vm198_vm1, %v403_v50 }
 0x1ec   :  { %6041 = vmatmul.mubr.msk.f32.vlgmr.msra.gmra.mxu1 %vm198_vm1, %v6828_v45 }
 0x1ed   :  { %v401_v52 = vpop.permute.xlu1 %400  ;;  %6051 = vmatpush3.xpose.msk.msra.mxu1 %vm198_vm1, %v403_v50  ;;  %6054 = vmatprep.mubr.msk.f32.mxu1 %vm198_vm1, %v397_v51 }
 0x1ee   :  { %6052 = vmatprep.subr.msk.mxu1 %vm198_vm1, %v401_v52 }
 0x1f1   :  { %6053 = vmatpush3.xpose.msk.msra.mxu1 %vm198_vm1, %v401_v52  ;;  %v399_v53 = vpop.permute.xlu1 %398 }
 0x1f4   :  { %6055 = vmatmul.mubr.msk.f32.vlgmr.msra.gmra.mxu1 %vm198_vm1, %v399_v53 }
 0x2ac   :  { %v6042_v54 = vpop.f32.mrf.mxu1 }
 0x2ad   :  { %v283_v56 = vmul.f32 0.35355338, %v6042_v54 }
 0x2ae   :  { %v273_v57 = vpop.f32.mrf.mxu1 }
 0x2af   :  { %v282_v59 = vmul.f32 0.35355338, %v273_v57  ;;  %v285_v60 = vadd.f32 %v283_v56, %v6861_v55 }
 0x2b1   :  { %v290_v61 = vsel %vm286_vm2, %v285_v60, -inf  ;;  %v284_v62 = vadd.f32 %v282_v59, %v6866_v58 }
 0x2b2   :  { %291 = vmax.xlane.f32.xlu1 %v290_v61 }
 0x2b3   :  { %v287_v63 = vsel %vm286_vm2, %v284_v62, -inf }
 0x2b4   :  { %v6056_v0 = vpop.f32.mrf.mxu1  ;;  %288 = vmax.xlane.f32.xlu0 %v287_v63 }
 0x2b5   :  { %v488_v2 = vmul.f32 0.35355338, %v6056_v0 }
 0x2b6   :  { %v478_v1 = vpop.f32.mrf.mxu1 }
 0x2b7   :  { %v487_v3 = vmul.f32 0.35355338, %v478_v1  ;;  %v490_v6 = vadd.f32 %v488_v2, %v6861_v55 }
 0x2b9   :  { %v489_v4 = vadd.f32 %v487_v3, %v6866_v58  ;;  %v494_v7 = vsel %vm286_vm2, %v490_v6, -inf }
 0x2bb   :  { %v491_v5 = vsel %vm286_vm2, %v489_v4, -inf }
 0x2bc   :  { %492 = vmax.xlane.f32.xlu0 %v491_v5 }
 0x2c0   :  { %495 = vmax.xlane.f32.xlu0 %v494_v7 }
 0x2c3   :  { %309 = vrot.lane.b32.xlu1 %v6830_v47, %s7845_s2 }
 0x2c7   :  { %515 = vrot.lane.b32.xlu1 %v6828_v45, %s7843_s24 }
 0x2cb   :  { %513 = vrot.lane.b32.xlu1 %v6830_v47, %s7843_s24 }
 0x2d6   :  { %311 = vrot.lane.b32.xlu0 %v6828_v45, %s7845_s2 }
 0x33b   :  { %v292_v8 = vpop.xlane.xlu1 %291 }
 0x33c   :  { %v294_v9 = vsub.f32 %v285_v60, %v292_v8 }
 0x33d   :  { %v289_v10 = vpop.xlane.xlu0 %288 }
 0x33e   :  { %v297_v11 = vmul.f32 1.442695, %v294_v9  ;;  %v293_v12 = vsub.f32 %v284_v62, %v289_v10 }
 0x33f   :  { %v310_v19 = vpop.permute.xlu1 %309 }
 0x340   :  { %6485 = vpow2.f32 %v297_v11  ;;  %v295_v13 = vmul.f32 1.442695, %v293_v12 }
 0x342   :  { %6487 = vpow2.f32 %v295_v13 }
 0x343   :  { %v516_v26 = vpop.permute.xlu1 %515 }
 0x345   :  { %v493_v14 = vpop.xlane.xlu0 %492 }
 0x346   :  { %v497_v15 = vsub.f32 %v489_v4, %v493_v14 }
 0x347   :  { %v514_v33 = vpop.permute.xlu1 %513 }
 0x348   :  { %v499_v16 = vmul.f32 1.442695, %v497_v15 }
 0x349   :  { %v496_v17 = vpop.xlane.xlu0 %495 }
 0x34a   :  { %6489 = vpow2.f32 %v499_v16  ;;  %v498_v18 = vsub.f32 %v490_v6, %v496_v17 }
 0x34c   :  { %v501_v20 = vmul.f32 1.442695, %v498_v18 }
 0x34d   :  { %v6486_v21 = vpop.eup %6485  ;;  %v312_v22 = vpop.permute.xlu0 %311 }
 0x34e   :  { %6491 = vpow2.f32 %v501_v20  ;;  %6043 = vmatprep.subr.mxu0 %v312_v22  ;;  %v302_v23 = vsel %vm286_vm2, %v6486_v21, 0.0 }
 0x34f   :  { %v6488_v24 = vpop.eup %6487  ;;  %303 = vadd.xlane.f32.xlu1 %v302_v23  ;;  %6044 = vmatpush3.msra.mxu0 %v312_v22 }
 0x350   :  { %6045 = vmatprep.subr.mxu0 %v310_v19  ;;  %v299_v25 = vsel %vm286_vm2, %v6488_v24, 0.0 }
 0x351   :  { %300 = vadd.xlane.f32.xlu0 %v299_v25  ;;  %6046 = vmatpush3.msra.mxu0 %v310_v19 }
 0x352   :  { %6057 = vmatprep.subr.mxu0 %v516_v26 }
 0x357   :  { %v6490_v27 = vpop.eup %6489 }
 0x358   :  { %v503_v29 = vsel %vm286_vm2, %v6490_v27, 0.0 }
 0x359   :  { %504 = vadd.xlane.f32.xlu0 %v503_v29 }
 0x35b   :  { %v6492_v31 = vpop.eup %6491 }
 0x35c   :  { %v506_v32 = vsel %vm286_vm2, %v6492_v31, 0.0 }
 0x35d   :  { %507 = vadd.xlane.f32.xlu1 %v506_v32 }
 0x36e   :  { %604 = vrot.lane.b32.xlu1 %v6830_v47, %s7841_s25 }
 0x36f   :  { %606 = vrot.lane.b32.xlu0 %v6828_v45, %s7841_s25 }
 0x372   :  { %602 = vrot.lane.b32.xlu1 %v6828_v45, %s7839_s26 }
 0x373   :  { %600 = vrot.lane.b32.xlu0 %v6830_v47, %s7839_s26 }
 0x3d8   :  { %v304_v34 = vpop.xlane.xlu1 %303 }
 0x3d9   :  { %6493 = vrcp.f32 %v304_v34 }
 0x3da   :  { %v301_v35 = vpop.xlane.xlu0 %300 }
 0x3db   :  { %6495 = vrcp.f32 %v301_v35 }
 0x3e2   :  { %v505_v36 = vpop.xlane.xlu0 %504 }
 0x3e3   :  { %6497 = vrcp.f32 %v505_v36 }
 0x3e6   :  { %v508_v37 = vpop.xlane.xlu1 %507  ;;  %v6494_v38 = vpop.eup %6493 }
 0x3e7   :  { %6499 = vrcp.f32 %v508_v37  ;;  %v308_v43 = vmul.f32 %v6494_v38, %v6486_v21  ;;  %v607_v44 = vpop.permute.xlu0 %606 }
 0x3e8   :  { %v6496_v39 = vpop.eup %6495 }
 0x3e9   :  { %v307_v41 = vmul.f32 %v6496_v39, %v6488_v24 }
 0x3ea   :  { %v605_v52 = vpop.permute.xlu1 %604 }
 0x3eb   :  { %6047 = vmatprep.mubr.msk.f32.mxu0 %vm286_vm2, %v307_v41  ;;  %v601_v51 = vpop.permute.xlu0 %600 }
 0x3ec   :  { %6048 = vmatmul.mubr.msk.f32.vlgmr.msra.gmra.mxu0 %vm286_vm2, %v308_v43 }
 0x3ed   :  { %6058 = vmatpush3.msra.mxu0 %v516_v26 }
 0x3ee   :  { %6059 = vmatprep.subr.mxu0 %v514_v33  ;;  %v603_v53 = vpop.permute.xlu1 %602 }
 0x3ef   :  { %6060 = vmatpush3.msra.mxu0 %v514_v33 }
 0x3f0   :  { %v6498_v46 = vpop.eup %6497  ;;  %6064 = vmatprep.subr.msk.mxu0 %vm198_vm1, %v607_v44 }
 0x3f1   :  { %v511_v48 = vmul.f32 %v6498_v46, %v6490_v27 }
 0x3f3   :  { %6061 = vmatprep.mubr.msk.f32.mxu0 %vm286_vm2, %v511_v48 }
 0x3f4   :  { %v6500_v49 = vpop.eup %6499 }
 0x3f5   :  { %v512_v50 = vmul.f32 %v6500_v49, %v6492_v31 }
 0x3f7   :  { %6062 = vmatmul.mubr.msk.f32.vlgmr.msra.gmra.mxu0 %vm286_vm2, %v512_v50 }
 0x3f8   :  { %6065 = vmatpush3.xpose.msk.msra.mxu0 %vm198_vm1, %v607_v44  ;;  %6068 = vmatprep.mubr.msk.f32.mxu0 %vm198_vm1, %v601_v51 }
 0x3f9   :  { %6066 = vmatprep.subr.msk.mxu0 %vm198_vm1, %v605_v52 }
 0x3fc   :  { %6067 = vmatpush3.xpose.msk.msra.mxu0 %vm198_vm1, %v605_v52 }
 0x3ff   :  { %6069 = vmatmul.mubr.msk.f32.vlgmr.msra.gmra.mxu0 %vm198_vm1, %v603_v53 }
 0x4ac   :  { %v6906_v54 = vpop.f32.mrf.mxu0 }
 0x4ae   :  { %v6908_v56 = vpop.f32.mrf.mxu0 }
 0x4b7   :  { %v6910_v57 = vpop.f32.mrf.mxu0 }
 0x4b9   :  { %v6912_v59 = vpop.f32.mrf.mxu0 }
 0x4bf   :  { %v6070_v60 = vpop.f32.mrf.mxu0 }
 0x4c0   :  { %v692_v61 = vmul.f32 0.35355338, %v6070_v60 }
 0x4c1   :  { %v682_v62 = vpop.f32.mrf.mxu0 }
 0x4c2   :  { %v691_v63 = vmul.f32 0.35355338, %v682_v62  ;;  %v694_v0 = vadd.f32 %v692_v61, %v6861_v55 }
 0x4c4   :  { %v698_v1 = vsel %vm286_vm2, %v694_v0, -inf  ;;  %v693_v2 = vadd.f32 %v691_v63, %v6866_v58  ;;  %v1041_v63 = vld [vmem:[%s7815_s6 + $0x10] sm:$0xff] }
 0x4c5   :  { %699 = vmax.xlane.f32.xlu1 %v698_v1  ;;  %v1039_v1 = vld [vmem:[%s7815_s6] sm:$0xff] }
 0x4c6   :  { %v695_v3 = vsel %vm286_vm2, %v693_v2, -inf }
 0x4c7   :  { %696 = vmax.xlane.f32.xlu0 %v695_v3 }
 0x4d6   :  { %717 = vrot.lane.b32.xlu1 %v6830_v47, %s7837_s27 }
 0x4da   :  { %810 = vrot.lane.b32.xlu1 %v6828_v45, %s7835_s28 }
 0x4de   :  { %808 = vrot.lane.b32.xlu1 %v6830_v47, %s7835_s28 }
 0x4e2   :  { %806 = vrot.lane.b32.xlu1 %v6828_v45, %s7831_s29 }
 0x54e   :  { %v700_v4 = vpop.xlane.xlu1 %699 }
 0x54f   :  { %v702_v5 = vsub.f32 %v694_v0, %v700_v4  ;;  %v1040_v0 = vld [vmem:[%s7815_s6 + $0x8] sm:$0xff] }
 0x550   :  { %v697_v6 = vpop.xlane.xlu0 %696 }
 0x551   :  { %v705_v7 = vmul.f32 1.442695, %v702_v5  ;;  %v701_v8 = vsub.f32 %v693_v2, %v697_v6 }
 0x552   :  { %v718_v16 = vpop.permute.xlu1 %717 }
 0x553   :  { %6501 = vpow2.f32 %v705_v7  ;;  %v703_v9 = vmul.f32 1.442695, %v701_v8 }
 0x555   :  { %6503 = vpow2.f32 %v703_v9 }
 0x556   :  { %v811_v18 = vpop.permute.xlu1 %810 }
 0x55a   :  { %v809_v24 = vpop.permute.xlu1 %808 }
 0x55e   :  { %v807_v25 = vpop.permute.xlu1 %806 }
 0x560   :  { %v6502_v10 = vpop.eup %6501 }
 0x561   :  { %v710_v11 = vsel %vm286_vm2, %v6502_v10, 0.0 }
 0x562   :  { %v6504_v12 = vpop.eup %6503  ;;  %711 = vadd.xlane.f32.xlu0 %v710_v11 }
 0x563   :  { %v707_v13 = vsel %vm286_vm2, %v6504_v12, 0.0 }
 0x566   :  { %708 = vadd.xlane.f32.xlu0 %v707_v13 }
 0x57c   :  { %719 = vrot.lane.b32.xlu0 %v6828_v45, %s7837_s27 }
 0x580   :  { %804 = vrot.lane.b32.xlu0 %v6830_v47, %s7831_s29  ;;  %s7854_s29 = smov 104  }
 0x5eb   :  { %v712_v14 = vpop.xlane.xlu0 %711 }
 0x5ec   :  { %6505 = vrcp.f32 %v712_v14 }
 0x5ef   :  { %v709_v15 = vpop.xlane.xlu0 %708 }
 0x5f0   :  { %6507 = vrcp.f32 %v709_v15 }
 0x5f3   :  { %v720_v17 = vpop.permute.xlu0 %719 }
 0x5f4   :  { %6071 = vmatprep.subr.mxu1 %v720_v17 }
 0x5f5   :  { %6072 = vmatpush3.msra.mxu1 %v720_v17 }
 0x5f6   :  { %6073 = vmatprep.subr.mxu1 %v718_v16 }
 0x5f7   :  { %6074 = vmatpush3.msra.mxu1 %v718_v16  ;;  %v805_v23 = vpop.permute.xlu0 %804 }
 0x5f8   :  { %6078 = vmatprep.subr.msk.mxu1 %vm198_vm1, %v811_v18 }
 0x5f9   :  { %v6506_v19 = vpop.eup %6505 }
 0x5fa   :  { %v716_v22 = vmul.f32 %v6506_v19, %v6502_v10 }
 0x5fd   :  { %v6508_v20 = vpop.eup %6507 }
 0x5fe   :  { %v715_v21 = vmul.f32 %v6508_v20, %v6504_v12 }
 0x600   :  { %6075 = vmatprep.mubr.msk.f32.mxu1 %vm286_vm2, %v715_v21 }
 0x601   :  { %6076 = vmatmul.mubr.msk.f32.vlgmr.msra.gmra.mxu1 %vm286_vm2, %v716_v22 }
 0x602   :  { %6079 = vmatpush3.xpose.msk.msra.mxu1 %vm198_vm1, %v811_v18  ;;  %6082 = vmatprep.mubr.msk.f32.mxu1 %vm198_vm1, %v805_v23 }
 0x603   :  { %6080 = vmatprep.subr.msk.mxu1 %vm198_vm1, %v809_v24 }
 0x606   :  { %6081 = vmatpush3.xpose.msk.msra.mxu1 %vm198_vm1, %v809_v24 }
 0x609   :  { %6083 = vmatmul.mubr.msk.f32.vlgmr.msra.gmra.mxu1 %vm198_vm1, %v807_v25 }
 0x6c1   :  { %v6077_v26 = vpop.f32.mrf.mxu1 }
 0x6c3   :  { %v795_v27 = vpop.f32.mrf.mxu1 }
 0x6c9   :  { %v6084_v29 = vpop.f32.mrf.mxu1 }
 0x6ca   :  { %v896_v31 = vmul.f32 0.35355338, %v6084_v29  ;;  %v1176_v29 = vld [vmem:[%s7818_s9] sm:$0xff] }
 0x6cb   :  { %v886_v32 = vpop.f32.mrf.mxu1 }
 0x6cc   :  { %v895_v33 = vmul.f32 0.35355338, %v886_v32  ;;  %v898_v34 = vadd.f32 %v896_v31, %v6861_v55 }
 0x6ce   :  { %v902_v35 = vsel %vm286_vm2, %v898_v34, -inf  ;;  %v897_v36 = vadd.f32 %v895_v33, %v6866_v58 }
 0x6cf   :  { %903 = vmax.xlane.f32.xlu1 %v902_v35 }
 0x6d0   :  { %v899_v37 = vsel %vm286_vm2, %v897_v36, -inf }
 0x6d1   :  { %900 = vmax.xlane.f32.xlu0 %v899_v37 }
 0x6e0   :  { %921 = vrot.lane.b32.xlu1 %v6830_v47, %s7829_s30 }
 0x6e4   :  { %1010 = vrot.lane.b32.xlu1 %v6912_v59, %s7827_s3 }
 0x6e8   :  { %1012 = vrot.lane.b32.xlu1 %v6910_v57, %s7827_s3  ;;  %s7857_s3 = smov 16  }
 0x6ec   :  { %1020 = vrot.lane.b32.xlu1 %v6077_v26, %s7825_s16 }
 0x758   :  { %v904_v38 = vpop.xlane.xlu1 %903 }
 0x759   :  { %v906_v39 = vsub.f32 %v898_v34, %v904_v38 }
 0x75a   :  { %v901_v41 = vpop.xlane.xlu0 %900 }
 0x75b   :  { %v909_v43 = vmul.f32 1.442695, %v906_v39  ;;  %v905_v44 = vsub.f32 %v897_v36, %v901_v41 }
 0x75c   :  { %v922_v57 = vpop.permute.xlu1 %921 }
 0x75d   :  { %6509 = vpow2.f32 %v909_v43  ;;  %v907_v46 = vmul.f32 1.442695, %v905_v44 }
 0x75f   :  { %6511 = vpow2.f32 %v907_v46 }
 0x760   :  { %v1011_v4 = vpop.permute.xlu1 %1010 }
 0x761   :  { %v1032_v8 = vsel %vm198_vm1, %v6908_v56, %v1011_v4  ;;  %v5583_v56 = vld [vmem:[%s7816_s7] ss:$0 sm:$0xff]  ;;  %v1289_v4 = vld [vmem:[%s7820_s11 + $0x18] sm:$0xff] }
 0x764   :  { %v1013_v5 = vpop.permute.xlu1 %1012 }
 0x765   :  { %v1033_v10 = vsel %vm198_vm1, %v6906_v54, %v1013_v5  ;;  %v1288_v5 = vld [vmem:[%s7820_s11 + $0x10] sm:$0xff] }
 0x768   :  { %v1021_v6 = vpop.permute.xlu1 %1020 }
 0x769   :  { %v1035_v13 = vsel %vm286_vm2, %v1033_v10, %v1021_v6  ;;  %v1287_v6 = vld [vmem:[%s7820_s11 + $0x8] sm:$0xff] }
 0x76a   :  { %v6510_v48 = vpop.eup %6509 }
 0x76b   :  { %v914_v47 = vsel %vm286_vm2, %v6510_v48, 0.0 }
 0x76c   :  { %v6512_v49 = vpop.eup %6511  ;;  %915 = vadd.xlane.f32.xlu0 %v914_v47  ;;  %v1133_v47 = vld [vmem:[%s7817_s8] sm:$0x3] }
 0x76d   :  { %v911_v50 = vsel %vm286_vm2, %v6512_v49, 0.0 }
 0x770   :  { %912 = vadd.xlane.f32.xlu0 %v911_v50  ;;  %v1167_v50 = vrot.slane %v1133_v47, %v6808_v28 }
 0x786   :  { %923 = vrot.lane.b32.xlu0 %v6828_v45, %s7829_s30  ;;  %v1042_v45 = vld [vmem:[%s7815_s6 + $0x18] sm:$0xff]  ;;  %s7855_s30 = smov 40  }
 0x78a   :  { %1018 = vrot.lane.b32.xlu0 %v795_v27, %s7825_s16  ;;  %v1177_v27 = vld [vmem:[%s7818_s9 + $0x8] sm:$0xff]  ;;  %s7858_s16 = smov 24  }
 0x7f5   :  { %v916_v51 = vpop.xlane.xlu0 %915 }
 0x7f6   :  { %6513 = vrcp.f32 %v916_v51 }
 0x7f9   :  { %v913_v52 = vpop.xlane.xlu0 %912 }
 0x7fa   :  { %6515 = vrcp.f32 %v913_v52 }
 0x7fd   :  { %v924_v53 = vpop.permute.xlu0 %923 }
 0x7fe   :  { %6085 = vmatprep.subr.mxu0 %v924_v53 }
 0x7ff   :  { %6086 = vmatpush3.msra.mxu0 %v924_v53  ;;  %v1173_v53 = vrot.slane %v1133_v47, %v6813_v30  ;;  %v5592_v47 = vld [vmem:[%s7813_s4 + $0x20] sm:$0xff] }
 0x800   :  { %6087 = vmatprep.subr.mxu0 %v922_v57 }
 0x801   :  { %6088 = vmatpush3.msra.mxu0 %v922_v57  ;;  %v1019_v7 = vpop.permute.xlu0 %1018 }
 0x802   :  { %6092 = vmatprep.subr.mxu0 %v1042_v45  ;;  %v1034_v11 = vsel %vm286_vm2, %v1032_v8, %v1019_v7  ;;  %v1286_v7 = vld [vmem:[%s7820_s11] sm:$0xff] }
 0x803   :  { %v6514_v59 = vpop.eup %6513  ;;  %v5586_v8 = vld [vmem:[%s7819_s10] ss:$0 sm:$0xff] }
 0x804   :  { %v920_v62 = vmul.f32 %v6514_v59, %v6510_v48 }
 0x807   :  { %v6516_v60 = vpop.eup %6515 }
 0x808   :  { %v919_v61 = vmul.f32 %v6516_v60, %v6512_v49 }
 0x80a   :  { %6089 = vmatprep.mubr.msk.f32.mxu0 %vm286_vm2, %v919_v61 }
 0x80b   :  { %6090 = vmatmul.mubr.msk.f32.vlgmr.msra.gmra.mxu0 %vm286_vm2, %v920_v62 }
 0x80c   :  { %6093 = vmatpush3.msra.mxu0 %v1042_v45 }
 0x80d   :  { %6094 = vmatprep.subr.mxu0 %v1041_v63 }
 0x80e   :  { %6095 = vmatpush3.msra.mxu0 %v1041_v63 }
 0x80f   :  { %6096 = vmatprep.subr.mxu0 %v1040_v0 }
 0x810   :  { %6097 = vmatpush3.msra.mxu0 %v1040_v0  ;;  %v1293_v0 = vld [vmem:[%s7820_s11 + $0x38] sm:$0xff] }
 0x811   :  { %6098 = vmatprep.subr.mxu0 %v1039_v1 }
 0x812   :  { %6099 = vmatpush3.msra.mxu0 %v1039_v1  ;;  %v1292_v1 = vld [vmem:[%s7820_s11 + $0x30] sm:$0xff] }
 0x813   :  { %6114 = vmatprep.subr.mxu0 %v1293_v0 }
 0x8cb   :  { %v6091_v2 = vpop.f32.mrf.mxu0 }
 0x8cc   :  { %1028 = vrot.lane.b32.xlu1 %v6091_v2, %s7833_s20  ;;  %v1291_v2 = vld [vmem:[%s7820_s11 + $0x28] sm:$0xff] }
 0x8cd   :  { %v999_v3 = vpop.f32.mrf.mxu0 }
 0x8ce   :  { %1026 = vrot.lane.b32.xlu0 %v999_v3, %s7833_s20  ;;  %v1290_v3 = vld [vmem:[%s7820_s11 + $0x20] sm:$0xff]  ;;  %s7856_s20 = smov 8  }
 0x93e   :  { %v1029_v9 = vpop.permute.xlu1 %1028 }
 0x93f   :  { %v1038_v15 = vsel %vm1036_vm3, %v1035_v13, %v1029_v9 }
 0x940   :  { %v1027_v12 = vpop.permute.xlu0 %1026 }
 0x941   :  { %v1037_v14 = vsel %vm1036_vm3, %v1034_v11, %v1027_v12 }
 0x942   :  { %6100 = vmatprep.mubr.msk.f32.mxu0 %vm56_vm0, %v1037_v14 }
 0x943   :  { %6101 = vmatmul.mubr.msk.f32.vlgmr.msra.gmra.mxu0 %vm56_vm0, %v1038_v15 }
 0x944   :  { %6115 = vmatpush3.msra.mxu0 %v1293_v0 }
 0x945   :  { %6116 = vmatprep.subr.mxu0 %v1292_v1 }
 0x946   :  { %6117 = vmatpush3.msra.mxu0 %v1292_v1 }
 0x947   :  { %6118 = vmatprep.subr.mxu0 %v1291_v2 }
 0x948   :  { %6119 = vmatpush3.msra.mxu0 %v1291_v2  ;;  %v1385_v2 = vld [vmem:[%s7822_s13] sm:$0x3] }
 0x949   :  { %6120 = vmatprep.subr.mxu0 %v1290_v3 }
 0x94a   :  { %6121 = vmatpush3.msra.mxu0 %v1290_v3 }
 0x94b   :  { %6122 = vmatprep.subr.mxu0 %v1289_v4 }
 0x94c   :  { %6123 = vmatpush3.msra.mxu0 %v1289_v4 }
 0x94d   :  { %6124 = vmatprep.subr.mxu0 %v1288_v5 }
 0x94e   :  { %6125 = vmatpush3.msra.mxu0 %v1288_v5  ;;  %v1419_v5 = vrot.slane %v1385_v2, %v6808_v28 }
 0x94f   :  { %6126 = vmatprep.subr.mxu0 %v1287_v6 }
 0x950   :  { %6127 = vmatpush3.msra.mxu0 %v1287_v6 }
 0x951   :  { %6128 = vmatprep.subr.mxu0 %v1286_v7 }
 0x952   :  { %6129 = vmatpush3.msra.mxu0 %v1286_v7 }
 0xa03   :  { %v6102_v16 = vpop.f32.mrf.mxu0 }
 0xa04   :  { %v1128_v17 = vadd.f32 %v6102_v16, %v5583_v56 }
 0xa05   :  { %v1122_v54 = vpop.f32.mrf.mxu0 }
 0xa06   :  { %v1132_v18 = vadd.f32 %v1128_v17, %v6821_v42  ;;  %v1123_v19 = vadd.f32 %v5583_v56, %v1122_v54  ;;  %v1179_v42 = vld [vmem:[%s7818_s9 + $0x18] sm:$0xff] }
 0xa07   :  { %6103 = vmatprep.subr.mxu1 %v1179_v42 }
 0xa08   :  { %v1131_v20 = vadd.f32 %v1123_v19, %v6817_v40  ;;  %v1137_v21 = vsel %vm56_vm0, %v1132_v18, 0.0  ;;  %v1143_v25 = vmul.f32 %v1132_v18, %v1132_v18  ;;  %v1178_v40 = vld [vmem:[%s7818_s9 + $0x10] sm:$0xff]  ;;  %6104 = vmatpush3.msra.mxu1 %v1179_v42 }
 0xa09   :  { %1138 = vadd.xlane.f32.xlu1 %v1137_v21  ;;  %6105 = vmatprep.subr.mxu1 %v1178_v40 }
 0xa0a   :  { %v1134_v22 = vsel %vm56_vm0, %v1131_v20, 0.0  ;;  %v1142_v23 = vmul.f32 %v1131_v20, %v1131_v20  ;;  %v1147_v26 = vsel %vm56_vm0, %v1143_v25, 0.0  ;;  %6106 = vmatpush3.msra.mxu1 %v1178_v40 }
 0xa0b   :  { %1135 = vadd.xlane.f32.xlu0 %v1134_v22  ;;  %6107 = vmatprep.subr.mxu1 %v1177_v27 }
 0xa0c   :  { %v1144_v24 = vsel %vm56_vm0, %v1142_v23, 0.0  ;;  %6108 = vmatpush3.msra.mxu1 %v1177_v27  ;;  %v5589_v27 = vld [vmem:[%s7821_s12] ss:$0 sm:$0xff] }
 0xa0d   :  { %6109 = vmatprep.subr.mxu1 %v1176_v29 }
 0xa0e   :  { %6110 = vmatpush3.msra.mxu1 %v1176_v29 }
 0xa0f   :  { %1145 = vadd.xlane.f32.xlu0 %v1144_v24 }
 0xa13   :  { %1148 = vadd.xlane.f32.xlu0 %v1147_v26 }
 0xa92   :  { %v1139_v33 = vpop.xlane.xlu1 %1138 }
 0xa93   :  { %v1141_v35 = vmul.f32 0.03125, %v1139_v33 }
 0xa94   :  { %v1136_v31 = vpop.xlane.xlu0 %1135 }
 0xa95   :  { %v1140_v32 = vmul.f32 0.03125, %v1136_v31  ;;  %v1153_v41 = vmul.f32 %v1141_v35, %v1141_v35  ;;  %v1157_v57 = vsub.f32 %v1132_v18, %v1141_v35 }
 0xa97   :  { %v1152_v36 = vmul.f32 %v1140_v32, %v1140_v32  ;;  %v1156_v49 = vsub.f32 %v1131_v20, %v1140_v32 }
 0xa98   :  { %v1146_v34 = vpop.xlane.xlu0 %1145 }
 0xa99   :  { %v1150_v37 = vmul.f32 0.03125, %v1146_v34 }
 0xa9b   :  { %v1154_v38 = vsub.f32 %v1150_v37, %v1152_v36 }
 0xa9c   :  { %v1149_v39 = vpop.xlane.xlu0 %1148 }
 0xa9d   :  { %v1158_v43 = vadd.f32 1e-12, %v1154_v38  ;;  %v1151_v44 = vmul.f32 0.03125, %v1149_v39 }
 0xa9f   :  { %6517 = vrsqrt.f32 %v1158_v43  ;;  %v1155_v46 = vsub.f32 %v1151_v44, %v1153_v41  ;;  %v5595_v44 = vld [vmem:[%s7813_s4 + $0x38] sm:$0xff] }
 0xaa0   :  { %6133 = vmatprep.subr.mxu1 %v5595_v44 }
 0xaa1   :  { %v1159_v48 = vadd.f32 1e-12, %v1155_v46  ;;  %v5594_v46 = vld [vmem:[%s7813_s4 + $0x30] sm:$0xff] }
 0xaa3   :  { %6519 = vrsqrt.f32 %v1159_v48  ;;  %v5593_v48 = vld [vmem:[%s7813_s4 + $0x28] sm:$0xff] }
 0xaac   :  { %v6518_v51 = vpop.eup %6517 }
 0xaad   :  { %v1162_v52 = vmul.f32 %v6518_v51, %v1156_v49 }
 0xaaf   :  { %v1168_v59 = vmul.f32 %v1167_v50, %v1162_v52 }
 0xab0   :  { %v6520_v60 = vpop.eup %6519 }
 0xab1   :  { %v1163_v61 = vmul.f32 %v6520_v60, %v1157_v57  ;;  %v7008_v62 = vadd.f32 %v1173_v53, %v1168_v59 }
 0xab3   :  { %v1169_v45 = vmul.f32 %v1167_v50, %v1163_v61  ;;  %6111 = vmatprep.mubr.msk.f32.mxu1 %vm56_vm0, %v7008_v62 }
 0xab5   :  { %v1175_v63 = vadd.f32 %v1173_v53, %v1169_v45 }
 0xab7   :  { %6112 = vmatmul.mubr.msk.f32.vlgmr.msra.gmra.mxu1 %vm56_vm0, %v1175_v63 }
 0xab8   :  { %6134 = vmatpush3.msra.mxu1 %v5595_v44 }
 0xab9   :  { %6135 = vmatprep.subr.mxu1 %v5594_v46 }
 0xaba   :  { %6136 = vmatpush3.msra.mxu1 %v5594_v46 }
 0xabb   :  { %6137 = vmatprep.subr.mxu1 %v5593_v48 }
 0xabc   :  { %6138 = vmatpush3.msra.mxu1 %v5593_v48 }
 0xabd   :  { %6139 = vmatprep.subr.mxu1 %v5592_v47 }
 0xabe   :  { %6140 = vmatpush3.msra.mxu1 %v5592_v47 }
 0xb77   :  { %v6113_v9 = vpop.f32.mrf.mxu1 }
 0xb78   :  { %v1265_v10 = vadd.f32 %v6113_v9, %v5586_v8 }
 0xb79   :  { %v1259_v11 = vpop.f32.mrf.mxu1 }
 0xb7a   :  { %v1271_v12 = vmul.f32 0.044715, %v1265_v10  ;;  %v1260_v13 = vadd.f32 %v5586_v8, %v1259_v11  ;;  %v1269_v26 = vmul.f32 0.5, %v1265_v10  ;;  %v1425_v11 = vrot.slane %v1385_v2, %v6813_v30 }
 0xb7c   :  { %v1273_v14 = vmul.f32 %v1271_v12, %v1265_v10  ;;  %v1270_v15 = vmul.f32 0.044715, %v1260_v13  ;;  %v1268_v24 = vmul.f32 0.5, %v1260_v13 }
 0xb7e   :  { %v1275_v56 = vmul.f32 %v1273_v14, %v1265_v10  ;;  %v1272_v16 = vmul.f32 %v1270_v15, %v1260_v13  ;;  %v5597_v15 = vld [vmem:[%s7814_s5 + $0x1] ss:$0 sm:$0xff] }
 0xb80   :  { %v1277_v17 = vadd.f32 %v1275_v56, %v1265_v10  ;;  %v1274_v54 = vmul.f32 %v1272_v16, %v1260_v13 }
 0xb82   :  { %v1279_v18 = vmul.f32 0.7978846, %v1277_v17  ;;  %v1276_v19 = vadd.f32 %v1274_v54, %v1260_v13 }
 0xb84   :  { %6521 = vtanh.f32 %v1279_v18  ;;  %v1278_v20 = vmul.f32 0.7978846, %v1276_v19 }
 0xb86   :  { %6523 = vtanh.f32 %v1278_v20 }
 0xb91   :  { %v6522_v21 = vpop.eup %6521 }
 0xb92   :  { %v1283_v23 = vadd.f32 1.0, %v6522_v21 }
 0xb93   :  { %v6524_v22 = vpop.eup %6523 }
 0xb94   :  { %v1282_v25 = vadd.f32 1.0, %v6524_v22  ;;  %v1285_v40 = vmul.f32 %v1283_v23, %v1269_v26 }
 0xb96   :  { %v1284_v42 = vmul.f32 %v1282_v25, %v1268_v24 }
 0xb98   :  { %6130 = vmatprep.mubr.msk.f32.mxu0 %vm1301_vm4, %v1284_v42 }
 0xb99   :  { %6131 = vmatmul.mubr.msk.f32.vlgmr.msra.gmra.mxu0 %vm1301_vm4, %v1285_v40 }
 0xc59   :  { %v6132_v29 = vpop.f32.mrf.mxu0 }
 0xc5a   :  { %v1380_v31 = vadd.f32 %v6132_v29, %v5589_v27 }
 0xc5b   :  { %v1374_v32 = vpop.f32.mrf.mxu0 }
 0xc5c   :  { %v1384_v33 = vadd.f32 %v1380_v31, %v1175_v63  ;;  %v1375_v34 = vadd.f32 %v5589_v27, %v1374_v32 }
 0xc5e   :  { %v1383_v35 = vadd.f32 %v1375_v34, %v7008_v62  ;;  %v1389_v36 = vsel %vm56_vm0, %v1384_v33, 0.0  ;;  %v1395_v37 = vmul.f32 %v1384_v33, %v1384_v33 }
 0xc5f   :  { %1390 = vadd.xlane.f32.xlu1 %v1389_v36 }
 0xc60   :  { %v1386_v38 = vsel %vm56_vm0, %v1383_v35, 0.0  ;;  %v1394_v39 = vmul.f32 %v1383_v35, %v1383_v35  ;;  %v1399_v41 = vsel %vm56_vm0, %v1395_v37, 0.0 }
 0xc61   :  { %1387 = vadd.xlane.f32.xlu0 %v1386_v38 }
 0xc62   :  { %v1396_v43 = vsel %vm56_vm0, %v1394_v39, 0.0 }
 0xc63   :  { %1400 = vadd.xlane.f32.xlu1 %v1399_v41 }
 0xc65   :  { %1397 = vadd.xlane.f32.xlu0 %v1396_v43 }
 0xce8   :  { %v1391_v49 = vpop.xlane.xlu1 %1390 }
 0xce9   :  { %v1393_v50 = vmul.f32 0.03125, %v1391_v49 }
 0xcea   :  { %v1388_v51 = vpop.xlane.xlu0 %1387 }
 0xceb   :  { %v1392_v52 = vmul.f32 0.03125, %v1388_v51  ;;  %v1405_v57 = vmul.f32 %v1393_v50, %v1393_v50  ;;  %v1409_v3 = vsub.f32 %v1384_v33, %v1393_v50 }
 0xcec   :  { %v1401_v53 = vpop.xlane.xlu1 %1400 }
 0xced   :  { %v1403_v59 = vmul.f32 0.03125, %v1401_v53  ;;  %v1404_v61 = vmul.f32 %v1392_v52, %v1392_v52  ;;  %v1408_v6 = vsub.f32 %v1383_v35, %v1392_v52 }
 0xcee   :  { %v1398_v60 = vpop.xlane.xlu0 %1397 }
 0xcef   :  { %v1407_v62 = vsub.f32 %v1403_v59, %v1405_v57  ;;  %v1402_v45 = vmul.f32 0.03125, %v1398_v60 }
 0xcf1   :  { %v1411_v63 = vadd.f32 1e-12, %v1407_v62  ;;  %v1406_v0 = vsub.f32 %v1402_v45, %v1404_v61 }
 0xcf3   :  { %6525 = vrsqrt.f32 %v1411_v63  ;;  %v1410_v1 = vadd.f32 1e-12, %v1406_v0 }
 0xcf5   :  { %6527 = vrsqrt.f32 %v1410_v1 }
 0xd00   :  { %v6526_v4 = vpop.eup %6525 }
 0xd01   :  { %v1415_v7 = vmul.f32 %v6526_v4, %v1409_v3 }
 0xd02   :  { %v6528_v8 = vpop.eup %6527 }
 0xd03   :  { %v1414_v9 = vmul.f32 %v6528_v8, %v1408_v6  ;;  %v1421_v10 = vmul.f32 %v1419_v5, %v1415_v7 }
 0xd05   :  { %v1420_v12 = vmul.f32 %v1419_v5, %v1414_v9  ;;  %v7069_v14 = vadd.f32 %v1425_v11, %v1421_v10 }
 0xd07   :  { %v7067_v13 = vadd.f32 %v1425_v11, %v1420_v12 }
 0xd09   :  { %6141 = vmatprep.mubr.msk.f32.mxu1 %vm56_vm0, %v7067_v13 }
 0xd0a   :  { %6142 = vmatmul.mubr.msk.f32.vlgmr.msra.gmra.mxu1 %vm56_vm0, %v7069_v14 }
 0xdca   :  { %v6143_v56 = vpop.f32.mrf.mxu1 }
 0xdcb   :  { %v7078_v16 = vadd.f32 %v6143_v56, %v5597_v15 }
 0xdcc   :  { %v1515_v17 = vpop.f32.mrf.mxu1 }
 0xdcd   :  { %v7080_v54 = vadd.f32 %v5597_v15, %v1515_v17  ;;  %1528 = vrot.lane.b32.xlu0 %v7078_v16, %s7851_s17 }
 0xdcf   :  { %1526 = vrot.lane.b32.xlu1 %v7080_v54, %s7851_s17  ;;  %6148 = vmatprep.mubr.msk.f32.mxu1 %vm198_vm1, %v7080_v54 }
 0xdd1   :  { %1726 = vrot.lane.b32.xlu0 %v7080_v54, %s7849_s18 }
 0xdd3   :  { %1732 = vrot.lane.b32.xlu1 %v7078_v16, %s7847_s19 }
 0xdd7   :  { %1730 = vrot.lane.b32.xlu1 %v7080_v54, %s7847_s19 }
 0xddb   :  { %1728 = vrot.lane.b32.xlu1 %v7078_v16, %s7849_s18 }
 0xe3f   :  { %v1529_v18 = vpop.permute.xlu0 %1528 }
 0xe40   :  { %6144 = vmatprep.subr.msk.mxu1 %vm198_vm1, %v1529_v18 }
 0xe41   :  { %6145 = vmatpush3.xpose.msk.msra.mxu1 %vm198_vm1, %v1529_v18  ;;  %v1527_v19 = vpop.permute.xlu1 %1526 }
 0xe42   :  { %6146 = vmatprep.subr.msk.mxu1 %vm198_vm1, %v1527_v19 }
 0xe43   :  { %v1727_v21 = vpop.permute.xlu0 %1726 }
 0xe45   :  { %6147 = vmatpush3.xpose.msk.msra.mxu1 %vm198_vm1, %v1527_v19  ;;  %v1733_v20 = vpop.permute.xlu1 %1732 }
 0xe46   :  { %6158 = vmatprep.subr.msk.mxu1 %vm198_vm1, %v1733_v20 }
 0xe48   :  { %6149 = vmatmul.mubr.msk.f32.vlgmr.msra.gmra.mxu1 %vm198_vm1, %v7078_v16 }
 0xe49   :  { %v1731_v22 = vpop.permute.xlu1 %1730  ;;  %6159 = vmatpush3.xpose.msk.msra.mxu1 %vm198_vm1, %v1733_v20  ;;  %6162 = vmatprep.mubr.msk.f32.mxu1 %vm198_vm1, %v1727_v21 }
 0xe4a   :  { %6160 = vmatprep.subr.msk.mxu1 %vm198_vm1, %v1731_v22 }
 0xe4d   :  { %6161 = vmatpush3.xpose.msk.msra.mxu1 %vm198_vm1, %v1731_v22  ;;  %v1729_v23 = vpop.permute.xlu1 %1728 }
 0xe50   :  { %6163 = vmatmul.mubr.msk.f32.vlgmr.msra.gmra.mxu1 %vm198_vm1, %v1729_v23 }
 0xf08   :  { %v6150_v24 = vpop.f32.mrf.mxu1 }
 0xf09   :  { %v1614_v25 = vmul.f32 0.35355338, %v6150_v24 }
 0xf0a   :  { %v1604_v26 = vpop.f32.mrf.mxu1 }
 0xf0b   :  { %v1613_v42 = vmul.f32 0.35355338, %v1604_v26  ;;  %v1616_v40 = vadd.f32 %v1614_v25, %v6861_v55 }
 0xf0d   :  { %v1620_v27 = vsel %vm286_vm2, %v1616_v40, -inf  ;;  %v1615_v29 = vadd.f32 %v1613_v42, %v6866_v58 }
 0xf0e   :  { %1621 = vmax.xlane.f32.xlu1 %v1620_v27 }
 0xf0f   :  { %v1617_v31 = vsel %vm286_vm2, %v1615_v29, -inf }
 0xf10   :  { %v6164_v32 = vpop.f32.mrf.mxu1  ;;  %1618 = vmax.xlane.f32.xlu0 %v1617_v31 }
 0xf11   :  { %v1818_v34 = vmul.f32 0.35355338, %v6164_v32 }
 0xf12   :  { %v1808_v33 = vpop.f32.mrf.mxu1 }
 0xf13   :  { %v1817_v35 = vmul.f32 0.35355338, %v1808_v33  ;;  %v1820_v38 = vadd.f32 %v1818_v34, %v6861_v55  ;;  %v7164_v33 = vld [vmem:[%s7810_s1] sm:$0xff] }
 0xf15   :  { %v1819_v36 = vadd.f32 %v1817_v35, %v6866_v58  ;;  %v1824_v39 = vsel %vm286_vm2, %v1820_v38, -inf }
 0xf17   :  { %v1821_v37 = vsel %vm286_vm2, %v1819_v36, -inf }
 0xf18   :  { %1822 = vmax.xlane.f32.xlu0 %v1821_v37 }
 0xf1c   :  { %1825 = vmax.xlane.f32.xlu0 %v1824_v39 }
 0xf1f   :  { %1639 = vrot.lane.b32.xlu1 %v7080_v54, %s7845_s2 }
 0xf23   :  { %1845 = vrot.lane.b32.xlu1 %v7078_v16, %s7843_s24 }
 0xf27   :  { %1843 = vrot.lane.b32.xlu1 %v7080_v54, %s7843_s24 }
 0xf32   :  { %1641 = vrot.lane.b32.xlu0 %v7078_v16, %s7845_s2 }
 0xf97   :  { %v1622_v58 = vpop.xlane.xlu1 %1621 }
 0xf98   :  { %v1624_v41 = vsub.f32 %v1616_v40, %v1622_v58 }
 0xf99   :  { %v1619_v43 = vpop.xlane.xlu0 %1618 }
 0xf9a   :  { %v1627_v55 = vmul.f32 1.442695, %v1624_v41  ;;  %v1623_v44 = vsub.f32 %v1615_v29, %v1619_v43  ;;  %v7157_v29 = vld [vmem:[%s7810_s1 + $0x8] sm:$0xff] }
 0xf9b   :  { %v1640_v52 = vpop.permute.xlu1 %1639 }
 0xf9c   :  { %6529 = vpow2.f32 %v1627_v55  ;;  %v1625_v46 = vmul.f32 1.442695, %v1623_v44 }
 0xf9e   :  { %6531 = vpow2.f32 %v1625_v46 }
 0xf9f   :  { %v1846_v45 = vpop.permute.xlu1 %1845 }
 0xfa1   :  { %v1823_v48 = vpop.xlane.xlu0 %1822 }
 0xfa2   :  { %v1827_v47 = vsub.f32 %v1819_v36, %v1823_v48 }
 0xfa3   :  { %v1844_v3 = vpop.permute.xlu1 %1843 }
 0xfa4   :  { %v1829_v49 = vmul.f32 1.442695, %v1827_v47 }
 0xfa5   :  { %v1826_v50 = vpop.xlane.xlu0 %1825 }
 0xfa6   :  { %6533 = vpow2.f32 %v1829_v49  ;;  %v1828_v51 = vsub.f32 %v1820_v38, %v1826_v50 }
 0xfa8   :  { %v1831_v53 = vmul.f32 1.442695, %v1828_v51 }
 0xfa9   :  { %v6530_v57 = vpop.eup %6529  ;;  %v1642_v59 = vpop.permute.xlu0 %1641 }
 0xfaa   :  { %6535 = vpow2.f32 %v1831_v53  ;;  %6151 = vmatprep.subr.mxu0 %v1642_v59  ;;  %v1632_v60 = vsel %vm286_vm2, %v6530_v57, 0.0 }
 0xfab   :  { %v6532_v61 = vpop.eup %6531  ;;  %1633 = vadd.xlane.f32.xlu1 %v1632_v60  ;;  %6152 = vmatpush3.msra.mxu0 %v1642_v59 }
 0xfac   :  { %6153 = vmatprep.subr.mxu0 %v1640_v52  ;;  %v1629_v62 = vsel %vm286_vm2, %v6532_v61, 0.0 }
 0xfad   :  { %1630 = vadd.xlane.f32.xlu0 %v1629_v62  ;;  %6154 = vmatpush3.msra.mxu0 %v1640_v52 }
 0xfae   :  { %6165 = vmatprep.subr.mxu0 %v1846_v45 }
 0xfb3   :  { %v6534_v63 = vpop.eup %6533 }
 0xfb4   :  { %v1833_v0 = vsel %vm286_vm2, %v6534_v63, 0.0 }
 0xfb5   :  { %1834 = vadd.xlane.f32.xlu0 %v1833_v0 }
 0xfb7   :  { %v6536_v1 = vpop.eup %6535 }
 0xfb8   :  { %v1836_v2 = vsel %vm286_vm2, %v6536_v1, 0.0 }
 0xfb9   :  { %1837 = vadd.xlane.f32.xlu1 %v1836_v2 }
 0xfca   :  { %1934 = vrot.lane.b32.xlu1 %v7080_v54, %s7841_s25 }
 0xfcb   :  { %1936 = vrot.lane.b32.xlu0 %v7078_v16, %s7841_s25  ;;  %s7863_s25 = smov 72  }
 0xfce   :  { %1932 = vrot.lane.b32.xlu1 %v7078_v16, %s7839_s26 }
 0xfcf   :  { %1930 = vrot.lane.b32.xlu0 %v7080_v54, %s7839_s26  ;;  %s7866_s26 = smov 88  }
0x1034   :  { %v1634_v4 = vpop.xlane.xlu1 %1633 }
0x1035   :  { %6537 = vrcp.f32 %v1634_v4 }
0x1036   :  { %v1631_v5 = vpop.xlane.xlu0 %1630 }
0x1037   :  { %6539 = vrcp.f32 %v1631_v5 }
0x103e   :  { %v1835_v6 = vpop.xlane.xlu0 %1834 }
0x103f   :  { %6541 = vrcp.f32 %v1835_v6 }
0x1042   :  { %v1838_v7 = vpop.xlane.xlu1 %1837  ;;  %v6538_v8 = vpop.eup %6537 }
0x1043   :  { %6543 = vrcp.f32 %v1838_v7  ;;  %v1638_v11 = vmul.f32 %v6538_v8, %v6530_v57  ;;  %v1937_v12 = vpop.permute.xlu0 %1936 }
0x1044   :  { %v6540_v9 = vpop.eup %6539 }
0x1045   :  { %v1637_v10 = vmul.f32 %v6540_v9, %v6532_v61 }
0x1046   :  { %v1935_v20 = vpop.permute.xlu1 %1934 }
0x1047   :  { %6155 = vmatprep.mubr.msk.f32.mxu0 %vm286_vm2, %v1637_v10  ;;  %v1931_v19 = vpop.permute.xlu0 %1930 }
0x1048   :  { %6156 = vmatmul.mubr.msk.f32.vlgmr.msra.gmra.mxu0 %vm286_vm2, %v1638_v11 }
0x1049   :  { %6166 = vmatpush3.msra.mxu0 %v1846_v45 }
0x104a   :  { %6167 = vmatprep.subr.mxu0 %v1844_v3  ;;  %v1933_v21 = vpop.permute.xlu1 %1932 }
0x104b   :  { %6168 = vmatpush3.msra.mxu0 %v1844_v3 }
0x104c   :  { %v6542_v15 = vpop.eup %6541  ;;  %6172 = vmatprep.subr.msk.mxu0 %vm198_vm1, %v1937_v12 }
0x104d   :  { %v1841_v56 = vmul.f32 %v6542_v15, %v6534_v63 }
0x104f   :  { %6169 = vmatprep.mubr.msk.f32.mxu0 %vm286_vm2, %v1841_v56 }
0x1050   :  { %v6544_v17 = vpop.eup %6543 }
0x1051   :  { %v1842_v18 = vmul.f32 %v6544_v17, %v6536_v1 }
0x1053   :  { %6170 = vmatmul.mubr.msk.f32.vlgmr.msra.gmra.mxu0 %vm286_vm2, %v1842_v18 }
0x1054   :  { %6173 = vmatpush3.xpose.msk.msra.mxu0 %vm198_vm1, %v1937_v12  ;;  %6176 = vmatprep.mubr.msk.f32.mxu0 %vm198_vm1, %v1931_v19 }
0x1055   :  { %6174 = vmatprep.subr.msk.mxu0 %vm198_vm1, %v1935_v20 }
0x1058   :  { %6175 = vmatpush3.xpose.msk.msra.mxu0 %vm198_vm1, %v1935_v20 }
0x105b   :  { %6177 = vmatmul.mubr.msk.f32.vlgmr.msra.gmra.mxu0 %vm198_vm1, %v1933_v21 }
0x1108   :  { %v7146_v22 = vpop.f32.mrf.mxu0 }
0x110a   :  { %v7148_v23 = vpop.f32.mrf.mxu0 }
0x1113   :  { %v7150_v24 = vpop.f32.mrf.mxu0 }
0x1115   :  { %v7152_v25 = vpop.f32.mrf.mxu0 }
0x111b   :  { %v6178_v26 = vpop.f32.mrf.mxu0 }
0x111c   :  { %v2022_v42 = vmul.f32 0.35355338, %v6178_v26 }
0x111d   :  { %v2012_v40 = vpop.f32.mrf.mxu0 }
0x111e   :  { %v2021_v27 = vmul.f32 0.35355338, %v2012_v40  ;;  %v2024_v31 = vadd.f32 %v7157_v29, %v2022_v42 }
0x1120   :  { %v2028_v32 = vsel %vm286_vm2, %v2024_v31, -inf  ;;  %v2023_v34 = vadd.f32 %v7164_v33, %v2021_v27  ;;  %v5626_v27 = vld [vmem:[%s7815_s6 + $0x30] sm:$0xff] }
0x1121   :  { %2029 = vmax.xlane.f32.xlu1 %v2028_v32  ;;  %v5624_v32 = vld [vmem:[%s7815_s6 + $0x20] sm:$0xff] }
0x1122   :  { %v2025_v35 = vsel %vm286_vm2, %v2023_v34, -inf }
0x1123   :  { %2026 = vmax.xlane.f32.xlu0 %v2025_v35 }
0x1132   :  { %2047 = vrot.lane.b32.xlu1 %v7080_v54, %s7837_s27 }
0x1136   :  { %2140 = vrot.lane.b32.xlu1 %v7078_v16, %s7835_s28 }
0x113a   :  { %2138 = vrot.lane.b32.xlu1 %v7080_v54, %s7835_s28  ;;  %s7859_s28 = smov 56  }
0x113e   :  { %2136 = vrot.lane.b32.xlu1 %v7078_v16, %s7854_s29 }
0x11aa   :  { %v2030_v36 = vpop.xlane.xlu1 %2029 }
0x11ab   :  { %v2032_v37 = vsub.f32 %v2024_v31, %v2030_v36  ;;  %v5625_v31 = vld [vmem:[%s7815_s6 + $0x28] sm:$0xff] }
0x11ac   :  { %v2027_v38 = vpop.xlane.xlu0 %2026 }
0x11ad   :  { %v2035_v39 = vmul.f32 1.442695, %v2032_v37  ;;  %v2031_v58 = vsub.f32 %v2023_v34, %v2027_v38 }
0x11ae   :  { %v2048_v49 = vpop.permute.xlu1 %2047 }
0x11af   :  { %6545 = vpow2.f32 %v2035_v39  ;;  %v2033_v41 = vmul.f32 1.442695, %v2031_v58 }
0x11b1   :  { %6547 = vpow2.f32 %v2033_v41 }
0x11b2   :  { %v2141_v51 = vpop.permute.xlu1 %2140 }
0x11b6   :  { %v2139_v61 = vpop.permute.xlu1 %2138 }
0x11ba   :  { %v2137_v62 = vpop.permute.xlu1 %2136 }
0x11bc   :  { %v6546_v43 = vpop.eup %6545 }
0x11bd   :  { %v2040_v55 = vsel %vm286_vm2, %v6546_v43, 0.0 }
0x11be   :  { %v6548_v44 = vpop.eup %6547  ;;  %2041 = vadd.xlane.f32.xlu0 %v2040_v55 }
0x11bf   :  { %v2037_v46 = vsel %vm286_vm2, %v6548_v44, 0.0 }
0x11c2   :  { %2038 = vadd.xlane.f32.xlu0 %v2037_v46 }
0x11d8   :  { %2049 = vrot.lane.b32.xlu0 %v7078_v16, %s7837_s27  ;;  %s6705_s27 = smov [#allocation2]  }
0x11dc   :  { %2134 = vrot.lane.b32.xlu0 %v7080_v54, %s7854_s29 }
0x1247   :  { %v2042_v48 = vpop.xlane.xlu0 %2041 }
0x1248   :  { %6549 = vrcp.f32 %v2042_v48 }
0x124b   :  { %v2039_v47 = vpop.xlane.xlu0 %2038 }
0x124c   :  { %6551 = vrcp.f32 %v2039_v47 }
0x124f   :  { %v2050_v50 = vpop.permute.xlu0 %2049 }
0x1250   :  { %6179 = vmatprep.subr.mxu1 %v2050_v50 }
0x1251   :  { %6180 = vmatpush3.msra.mxu1 %v2050_v50 }
0x1252   :  { %6181 = vmatprep.subr.mxu1 %v2048_v49 }
0x1253   :  { %6182 = vmatpush3.msra.mxu1 %v2048_v49  ;;  %v2135_v60 = vpop.permute.xlu0 %2134 }
0x1254   :  { %6186 = vmatprep.subr.msk.mxu1 %vm198_vm1, %v2141_v51 }
0x1255   :  { %v6550_v52 = vpop.eup %6549 }
0x1256   :  { %v2046_v59 = vmul.f32 %v6550_v52, %v6546_v43 }
0x1259   :  { %v6552_v53 = vpop.eup %6551 }
0x125a   :  { %v2045_v57 = vmul.f32 %v6552_v53, %v6548_v44 }
0x125c   :  { %6183 = vmatprep.mubr.msk.f32.mxu1 %vm286_vm2, %v2045_v57 }
0x125d   :  { %6184 = vmatmul.mubr.msk.f32.vlgmr.msra.gmra.mxu1 %vm286_vm2, %v2046_v59 }
0x125e   :  { %6187 = vmatpush3.xpose.msk.msra.mxu1 %vm198_vm1, %v2141_v51  ;;  %6190 = vmatprep.mubr.msk.f32.mxu1 %vm198_vm1, %v2135_v60 }
0x125f   :  { %6188 = vmatprep.subr.msk.mxu1 %vm198_vm1, %v2139_v61 }
0x1262   :  { %6189 = vmatpush3.xpose.msk.msra.mxu1 %vm198_vm1, %v2139_v61 }
0x1265   :  { %6191 = vmatmul.mubr.msk.f32.vlgmr.msra.gmra.mxu1 %vm198_vm1, %v2137_v62 }
0x131d   :  { %v6185_v45 = vpop.f32.mrf.mxu1 }
0x131f   :  { %v2125_v63 = vpop.f32.mrf.mxu1 }
0x1325   :  { %v6192_v0 = vpop.f32.mrf.mxu1 }
0x1326   :  { %v2226_v1 = vmul.f32 0.35355338, %v6192_v0  ;;  %v5635_v0 = vld [vmem:[%s7818_s9 + $0x30] sm:$0xff] }
0x1327   :  { %v2216_v2 = vpop.f32.mrf.mxu1 }
0x1328   :  { %v2225_v3 = vmul.f32 0.35355338, %v2216_v2  ;;  %v2228_v4 = vadd.f32 %v7157_v29, %v2226_v1  ;;  %v5634_v1 = vld [vmem:[%s7818_s9 + $0x28] sm:$0xff]  ;;  %v5633_v2 = vld [vmem:[%s7818_s9 + $0x20] sm:$0xff] }
0x132a   :  { %v2232_v5 = vsel %vm286_vm2, %v2228_v4, -inf  ;;  %v2227_v6 = vadd.f32 %v7164_v33, %v2225_v3 }
0x132b   :  { %2233 = vmax.xlane.f32.xlu1 %v2232_v5 }
0x132c   :  { %v2229_v7 = vsel %vm286_vm2, %v2227_v6, -inf }
0x132d   :  { %2230 = vmax.xlane.f32.xlu0 %v2229_v7 }
0x133c   :  { %2251 = vrot.lane.b32.xlu1 %v7080_v54, %s7855_s30 }
0x1340   :  { %2340 = vrot.lane.b32.xlu1 %v7152_v25, %s7856_s20 }
0x1344   :  { %2342 = vrot.lane.b32.xlu1 %v7150_v24, %s7856_s20 }
0x1348   :  { %2350 = vrot.lane.b32.xlu1 %v6185_v45, %s7857_s3 }
0x13b4   :  { %v2234_v8 = vpop.xlane.xlu1 %2233 }
0x13b5   :  { %v2236_v9 = vsub.f32 %v2228_v4, %v2234_v8 }
0x13b6   :  { %v2231_v10 = vpop.xlane.xlu0 %2230 }
0x13b7   :  { %v2239_v11 = vmul.f32 1.442695, %v2236_v9  ;;  %v2235_v12 = vsub.f32 %v2227_v6, %v2231_v10 }
0x13b8   :  { %v2252_v24 = vpop.permute.xlu1 %2251 }
0x13b9   :  { %6553 = vpow2.f32 %v2239_v11  ;;  %v2237_v15 = vmul.f32 1.442695, %v2235_v12 }
0x13bb   :  { %6555 = vpow2.f32 %v2237_v15 }
0x13bc   :  { %v2341_v36 = vpop.permute.xlu1 %2340 }
0x13bd   :  { %v2362_v58 = vsel %vm198_vm1, %v7148_v23, %v2341_v36  ;;  %v5629_v23 = vld [vmem:[%s7816_s7 + $0x1] ss:$0 sm:$0xff]  ;;  %v5646_v36 = vld [vmem:[%s7820_s11 + $0x68] sm:$0xff] }
0x13c0   :  { %v2343_v37 = vpop.permute.xlu1 %2342 }
0x13c1   :  { %v2363_v43 = vsel %vm198_vm1, %v7146_v22, %v2343_v37  ;;  %v5645_v37 = vld [vmem:[%s7820_s11 + $0x60] sm:$0xff] }
0x13c4   :  { %v2351_v38 = vpop.permute.xlu1 %2350 }
0x13c5   :  { %v2365_v46 = vsel %vm286_vm2, %v2363_v43, %v2351_v38  ;;  %v5644_v38 = vld [vmem:[%s7820_s11 + $0x58] sm:$0xff]  ;;  %v5638_v43 = vld [vmem:[%s7819_s10 + $0x1] ss:$0 sm:$0xff] }
0x13c6   :  { %v6554_v56 = vpop.eup %6553 }
0x13c7   :  { %v2244_v17 = vsel %vm286_vm2, %v6554_v56, 0.0 }
0x13c8   :  { %v6556_v54 = vpop.eup %6555  ;;  %2245 = vadd.xlane.f32.xlu0 %v2244_v17 }
0x13c9   :  { %v2241_v18 = vsel %vm286_vm2, %v6556_v54, 0.0 }
0x13cc   :  { %2242 = vadd.xlane.f32.xlu0 %v2241_v18  ;;  %v5632_v18 = vld [vmem:[%s7817_s8 + $0x2] sm:$0x3] }
0x13e2   :  { %2253 = vrot.lane.b32.xlu0 %v7078_v16, %s7855_s30  ;;  %v5627_v16 = vld [vmem:[%s7815_s6 + $0x38] sm:$0xff] }
0x13e6   :  { %2348 = vrot.lane.b32.xlu0 %v2125_v63, %s7857_s3  ;;  %v5636_v63 = vld [vmem:[%s7818_s9 + $0x38] sm:$0xff] }
0x13e7   :  { %6211 = vmatprep.subr.mxu1 %v5636_v63 }
0x13e8   :  { %6212 = vmatpush3.msra.mxu1 %v5636_v63 }
0x13e9   :  { %6213 = vmatprep.subr.mxu1 %v5635_v0 }
0x13ea   :  { %6214 = vmatpush3.msra.mxu1 %v5635_v0 }
0x13eb   :  { %6215 = vmatprep.subr.mxu1 %v5634_v1 }
0x13ec   :  { %6216 = vmatpush3.msra.mxu1 %v5634_v1 }
0x13ed   :  { %6217 = vmatprep.subr.mxu1 %v5633_v2 }
0x13ee   :  { %6218 = vmatpush3.msra.mxu1 %v5633_v2 }
0x1451   :  { %v2246_v19 = vpop.xlane.xlu0 %2245 }
0x1452   :  { %6557 = vrcp.f32 %v2246_v19 }
0x1455   :  { %v2243_v20 = vpop.xlane.xlu0 %2242 }
0x1456   :  { %6559 = vrcp.f32 %v2243_v20  ;;  %v2499_v20 = vrot.slane %v5632_v18, %v6808_v28 }
0x1459   :  { %v2254_v21 = vpop.permute.xlu0 %2253 }
0x145a   :  { %6193 = vmatprep.subr.mxu0 %v2254_v21 }
0x145b   :  { %6194 = vmatpush3.msra.mxu0 %v2254_v21 }
0x145c   :  { %6195 = vmatprep.subr.mxu0 %v2252_v24 }
0x145d   :  { %6196 = vmatpush3.msra.mxu0 %v2252_v24  ;;  %v2349_v39 = vpop.permute.xlu0 %2348 }
0x145e   :  { %6200 = vmatprep.subr.mxu0 %v5627_v16  ;;  %v2364_v55 = vsel %vm286_vm2, %v2362_v58, %v2349_v39  ;;  %v5643_v39 = vld [vmem:[%s7820_s11 + $0x50] sm:$0xff]  ;;  %v5642_v58 = vld [vmem:[%s7820_s11 + $0x48] sm:$0xff] }
0x145f   :  { %v6558_v25 = vpop.eup %6557 }
0x1460   :  { %v2250_v40 = vmul.f32 %v6558_v25, %v6554_v56  ;;  %v2505_v25 = vrot.slane %v5632_v18, %v6813_v30  ;;  %v5656_v18 = vld [vmem:[%s7813_s4 + $0x50] sm:$0xff] }
0x1463   :  { %v6560_v26 = vpop.eup %6559 }
0x1464   :  { %v2249_v42 = vmul.f32 %v6560_v26, %v6556_v54 }
0x1466   :  { %6197 = vmatprep.mubr.msk.f32.mxu0 %vm286_vm2, %v2249_v42 }
0x1467   :  { %6198 = vmatmul.mubr.msk.f32.vlgmr.msra.gmra.mxu0 %vm286_vm2, %v2250_v40 }
0x1468   :  { %6201 = vmatpush3.msra.mxu0 %v5627_v16 }
0x1469   :  { %6202 = vmatprep.subr.mxu0 %v5626_v27 }
0x146a   :  { %6203 = vmatpush3.msra.mxu0 %v5626_v27 }
0x146b   :  { %6204 = vmatprep.subr.mxu0 %v5625_v31 }
0x146c   :  { %6205 = vmatpush3.msra.mxu0 %v5625_v31 }
0x146d   :  { %6206 = vmatprep.subr.mxu0 %v5624_v32 }
0x146e   :  { %6207 = vmatpush3.msra.mxu0 %v5624_v32 }
0x1527   :  { %v6199_v34 = vpop.f32.mrf.mxu0 }
0x1528   :  { %2358 = vrot.lane.b32.xlu1 %v6199_v34, %s7858_s16  ;;  %v5648_v34 = vld [vmem:[%s7820_s11 + $0x78] sm:$0xff] }
0x1529   :  { %v2329_v35 = vpop.f32.mrf.mxu0  ;;  %6222 = vmatprep.subr.mxu0 %v5648_v34 }
0x152a   :  { %2356 = vrot.lane.b32.xlu0 %v2329_v35, %s7858_s16  ;;  %v5647_v35 = vld [vmem:[%s7820_s11 + $0x70] sm:$0xff] }
0x159a   :  { %v2359_v41 = vpop.permute.xlu1 %2358 }
0x159b   :  { %v2367_v47 = vsel %vm1036_vm3, %v2365_v46, %v2359_v41  ;;  %v5641_v41 = vld [vmem:[%s7820_s11 + $0x40] sm:$0xff] }
0x159c   :  { %v2357_v44 = vpop.permute.xlu0 %2356 }
0x159d   :  { %v2366_v48 = vsel %vm1036_vm3, %v2364_v55, %v2357_v44 }
0x159e   :  { %6208 = vmatprep.mubr.msk.f32.mxu0 %vm56_vm0, %v2366_v48 }
0x159f   :  { %6209 = vmatmul.mubr.msk.f32.vlgmr.msra.gmra.mxu0 %vm56_vm0, %v2367_v47 }
0x15a0   :  { %6223 = vmatpush3.msra.mxu0 %v5648_v34 }
0x15a1   :  { %6224 = vmatprep.subr.mxu0 %v5647_v35 }
0x15a2   :  { %6225 = vmatpush3.msra.mxu0 %v5647_v35 }
0x15a3   :  { %6226 = vmatprep.subr.mxu0 %v5646_v36 }
0x15a4   :  { %6227 = vmatpush3.msra.mxu0 %v5646_v36 }
0x15a5   :  { %6228 = vmatprep.subr.mxu0 %v5645_v37 }
0x15a6   :  { %6229 = vmatpush3.msra.mxu0 %v5645_v37 }
0x15a7   :  { %6230 = vmatprep.subr.mxu0 %v5644_v38 }
0x15a8   :  { %6231 = vmatpush3.msra.mxu0 %v5644_v38  ;;  %v5653_v38 = vld [vmem:[%s7822_s13 + $0x2] sm:$0x3] }
0x15a9   :  { %6232 = vmatprep.subr.mxu0 %v5643_v39 }
0x15aa   :  { %6233 = vmatpush3.msra.mxu0 %v5643_v39 }
0x15ab   :  { %6234 = vmatprep.subr.mxu0 %v5642_v58 }
0x15ac   :  { %6235 = vmatpush3.msra.mxu0 %v5642_v58 }
0x15ad   :  { %6236 = vmatprep.subr.mxu0 %v5641_v41 }
0x15ae   :  { %6237 = vmatpush3.msra.mxu0 %v5641_v41  ;;  %v2755_v41 = vrot.slane %v5653_v38, %v6808_v28 }
0x165f   :  { %v6210_v49 = vpop.f32.mrf.mxu0 }
0x1660   :  { %v2459_v50 = vadd.f32 %v6210_v49, %v5629_v23 }
0x1661   :  { %v2453_v22 = vpop.f32.mrf.mxu0 }
0x1662   :  { %v2463_v51 = vadd.f32 %v2459_v50, %v7069_v14  ;;  %v2454_v52 = vadd.f32 %v5629_v23, %v2453_v22 }
0x1664   :  { %v2462_v53 = vadd.f32 %v2454_v52, %v7067_v13  ;;  %v2469_v57 = vsel %vm56_vm0, %v2463_v51, 0.0  ;;  %v2475_v62 = vmul.f32 %v2463_v51, %v2463_v51 }
0x1665   :  { %2470 = vadd.xlane.f32.xlu1 %v2469_v57 }
0x1666   :  { %v2466_v59 = vsel %vm56_vm0, %v2462_v53, 0.0  ;;  %v2474_v60 = vmul.f32 %v2462_v53, %v2462_v53  ;;  %v2479_v45 = vsel %vm56_vm0, %v2475_v62, 0.0 }
0x1667   :  { %2467 = vadd.xlane.f32.xlu0 %v2466_v59 }
0x1668   :  { %v2476_v61 = vsel %vm56_vm0, %v2474_v60, 0.0 }
0x166b   :  { %2477 = vadd.xlane.f32.xlu0 %v2476_v61 }
0x166f   :  { %2480 = vadd.xlane.f32.xlu0 %v2479_v45 }
0x16ee   :  { %v2471_v5 = vpop.xlane.xlu1 %2470 }
0x16ef   :  { %v2473_v7 = vmul.f32 0.03125, %v2471_v5 }
0x16f0   :  { %v2468_v3 = vpop.xlane.xlu0 %2467 }
0x16f1   :  { %v2472_v4 = vmul.f32 0.03125, %v2468_v3  ;;  %v2485_v12 = vmul.f32 %v2473_v7, %v2473_v7  ;;  %v2489_v26 = vsub.f32 %v2463_v51, %v2473_v7  ;;  %v5650_v3 = vld [vmem:[%s7821_s12 + $0x1] ss:$0 sm:$0xff] }
0x16f3   :  { %v2484_v8 = vmul.f32 %v2472_v4, %v2472_v4  ;;  %v2488_v19 = vsub.f32 %v2462_v53, %v2472_v4 }
0x16f4   :  { %v2478_v6 = vpop.xlane.xlu0 %2477 }
0x16f5   :  { %v2482_v9 = vmul.f32 0.03125, %v2478_v6 }
0x16f7   :  { %v2486_v10 = vsub.f32 %v2482_v9, %v2484_v8 }
0x16f8   :  { %v2481_v11 = vpop.xlane.xlu0 %2480 }
0x16f9   :  { %v2490_v15 = vadd.f32 1e-12, %v2486_v10  ;;  %v2483_v56 = vmul.f32 0.03125, %v2481_v11 }
0x16fb   :  { %6561 = vrsqrt.f32 %v2490_v15  ;;  %v2487_v17 = vsub.f32 %v2483_v56, %v2485_v12 }
0x16fd   :  { %v2491_v54 = vadd.f32 1e-12, %v2487_v17 }
0x16ff   :  { %6563 = vrsqrt.f32 %v2491_v54  ;;  %v5657_v54 = vld [vmem:[%s7813_s4 + $0x58] sm:$0xff] }
0x1700   :  { %6241 = vmatprep.subr.mxu1 %v5657_v54 }
0x1708   :  { %v6562_v21 = vpop.eup %6561 }
0x1709   :  { %v2494_v24 = vmul.f32 %v6562_v21, %v2488_v19  ;;  %v5655_v19 = vld [vmem:[%s7813_s4 + $0x48] sm:$0xff] }
0x170b   :  { %v2500_v42 = vmul.f32 %v2499_v20, %v2494_v24 }
0x170c   :  { %v6564_v40 = vpop.eup %6563 }
0x170d   :  { %v2495_v16 = vmul.f32 %v6564_v40, %v2489_v26  ;;  %v2506_v27 = vadd.f32 %v2505_v25, %v2500_v42 }
0x170f   :  { %v2501_v31 = vmul.f32 %v2499_v20, %v2495_v16  ;;  %6219 = vmatprep.mubr.msk.f32.mxu1 %vm56_vm0, %v2506_v27  ;;  %v5654_v20 = vld [vmem:[%s7813_s4 + $0x40] sm:$0xff] }
0x1711   :  { %v2507_v32 = vadd.f32 %v2505_v25, %v2501_v31 }
0x1713   :  { %6220 = vmatmul.mubr.msk.f32.vlgmr.msra.gmra.mxu1 %vm56_vm0, %v2507_v32 }
0x1714   :  { %6242 = vmatpush3.msra.mxu1 %v5657_v54 }
0x1715   :  { %6243 = vmatprep.subr.mxu1 %v5656_v18 }
0x1716   :  { %6244 = vmatpush3.msra.mxu1 %v5656_v18 }
0x1717   :  { %6245 = vmatprep.subr.mxu1 %v5655_v19 }
0x1718   :  { %6246 = vmatpush3.msra.mxu1 %v5655_v19 }
0x1719   :  { %6247 = vmatprep.subr.mxu1 %v5654_v20 }
0x171a   :  { %6248 = vmatpush3.msra.mxu1 %v5654_v20 }
0x17d3   :  { %v6221_v55 = vpop.f32.mrf.mxu1 }
0x17d4   :  { %v2599_v44 = vadd.f32 %v6221_v55, %v5638_v43 }
0x17d5   :  { %v2593_v46 = vpop.f32.mrf.mxu1 }
0x17d6   :  { %v2605_v48 = vmul.f32 0.044715, %v2599_v44  ;;  %v2594_v47 = vadd.f32 %v5638_v43, %v2593_v46  ;;  %v2603_v0 = vmul.f32 0.5, %v2599_v44 }
0x17d8   :  { %v2607_v23 = vmul.f32 %v2605_v48, %v2599_v44  ;;  %v2604_v49 = vmul.f32 0.044715, %v2594_v47  ;;  %v2602_v45 = vmul.f32 0.5, %v2594_v47 }
0x17da   :  { %v2609_v50 = vmul.f32 %v2607_v23, %v2599_v44  ;;  %v2606_v22 = vmul.f32 %v2604_v49, %v2594_v47 }
0x17dc   :  { %v2611_v51 = vadd.f32 %v2609_v50, %v2599_v44  ;;  %v2608_v52 = vmul.f32 %v2606_v22, %v2594_v47  ;;  %v5659_v22 = vld [vmem:[%s7814_s5 + $0x2] ss:$0 sm:$0xff] }
0x17de   :  { %v2613_v53 = vmul.f32 0.7978846, %v2611_v51  ;;  %v2610_v57 = vadd.f32 %v2608_v52, %v2594_v47  ;;  %v2761_v47 = vrot.slane %v5653_v38, %v6813_v30 }
0x17e0   :  { %6565 = vtanh.f32 %v2613_v53  ;;  %v2612_v59 = vmul.f32 0.7978846, %v2610_v57 }
0x17e2   :  { %6567 = vtanh.f32 %v2612_v59 }
0x17ed   :  { %v6566_v60 = vpop.eup %6565 }
0x17ee   :  { %v2617_v62 = vadd.f32 1.0, %v6566_v60 }
0x17ef   :  { %v6568_v61 = vpop.eup %6567 }
0x17f0   :  { %v2616_v63 = vadd.f32 1.0, %v6568_v61  ;;  %v2619_v2 = vmul.f32 %v2617_v62, %v2603_v0 }
0x17f2   :  { %v2618_v1 = vmul.f32 %v2616_v63, %v2602_v45 }
0x17f4   :  { %6238 = vmatprep.mubr.msk.f32.mxu0 %vm1301_vm4, %v2618_v1 }
0x17f5   :  { %6239 = vmatmul.mubr.msk.f32.vlgmr.msra.gmra.mxu0 %vm1301_vm4, %v2619_v2 }
0x18b5   :  { %v6240_v4 = vpop.f32.mrf.mxu0 }
0x18b6   :  { %v2715_v5 = vadd.f32 %v6240_v4, %v5650_v3 }
0x18b7   :  { %v2709_v6 = vpop.f32.mrf.mxu0 }
0x18b8   :  { %v2719_v7 = vadd.f32 %v2715_v5, %v2507_v32  ;;  %v2710_v8 = vadd.f32 %v5650_v3, %v2709_v6 }
0x18ba   :  { %v2718_v9 = vadd.f32 %v2710_v8, %v2506_v27  ;;  %v2725_v10 = vsel %vm56_vm0, %v2719_v7, 0.0  ;;  %v2731_v11 = vmul.f32 %v2719_v7, %v2719_v7 }
0x18bb   :  { %2726 = vadd.xlane.f32.xlu1 %v2725_v10 }
0x18bc   :  { %v2722_v12 = vsel %vm56_vm0, %v2718_v9, 0.0  ;;  %v2730_v15 = vmul.f32 %v2718_v9, %v2718_v9  ;;  %v2735_v56 = vsel %vm56_vm0, %v2731_v11, 0.0 }
0x18bd   :  { %2723 = vadd.xlane.f32.xlu0 %v2722_v12 }
0x18be   :  { %v2732_v17 = vsel %vm56_vm0, %v2730_v15, 0.0 }
0x18bf   :  { %2736 = vadd.xlane.f32.xlu1 %v2735_v56 }
0x18c1   :  { %2733 = vadd.xlane.f32.xlu0 %v2732_v17 }
0x1944   :  { %v2727_v21 = vpop.xlane.xlu1 %2726 }
0x1945   :  { %v2729_v24 = vmul.f32 0.03125, %v2727_v21 }
0x1946   :  { %v2724_v25 = vpop.xlane.xlu0 %2723 }
0x1947   :  { %v2728_v26 = vmul.f32 0.03125, %v2724_v25  ;;  %v2741_v40 = vmul.f32 %v2729_v24, %v2729_v24  ;;  %v2745_v39 = vsub.f32 %v2719_v7, %v2729_v24 }
0x1948   :  { %v2737_v42 = vpop.xlane.xlu1 %2736 }
0x1949   :  { %v2739_v16 = vmul.f32 0.03125, %v2737_v42  ;;  %v2740_v31 = vmul.f32 %v2728_v26, %v2728_v26  ;;  %v2744_v43 = vsub.f32 %v2718_v9, %v2728_v26 }
0x194a   :  { %v2734_v27 = vpop.xlane.xlu0 %2733 }
0x194b   :  { %v2743_v32 = vsub.f32 %v2739_v16, %v2741_v40  ;;  %v2738_v34 = vmul.f32 0.03125, %v2734_v27 }
0x194d   :  { %v2747_v35 = vadd.f32 1e-12, %v2743_v32  ;;  %v2742_v36 = vsub.f32 %v2738_v34, %v2740_v31 }
0x194f   :  { %6569 = vrsqrt.f32 %v2747_v35  ;;  %v2746_v37 = vadd.f32 1e-12, %v2742_v36 }
0x1951   :  { %6571 = vrsqrt.f32 %v2746_v37 }
0x195c   :  { %v6570_v58 = vpop.eup %6569 }
0x195d   :  { %v2751_v55 = vmul.f32 %v6570_v58, %v2745_v39 }
0x195e   :  { %v6572_v44 = vpop.eup %6571 }
0x195f   :  { %v2750_v46 = vmul.f32 %v6572_v44, %v2744_v43  ;;  %v2757_v48 = vmul.f32 %v2755_v41, %v2751_v55 }
0x1961   :  { %v2756_v23 = vmul.f32 %v2755_v41, %v2750_v46  ;;  %v7315_v50 = vadd.f32 %v2761_v47, %v2757_v48 }
0x1963   :  { %v7313_v49 = vadd.f32 %v2761_v47, %v2756_v23 }
0x1965   :  { %6249 = vmatprep.mubr.msk.f32.mxu1 %vm56_vm0, %v7313_v49 }
0x1966   :  { %6250 = vmatmul.mubr.msk.f32.vlgmr.msra.gmra.mxu1 %vm56_vm0, %v7315_v50 }
0x1a26   :  { %v6251_v51 = vpop.f32.mrf.mxu1 }
0x1a27   :  { %v7324_v52 = vadd.f32 %v6251_v51, %v5659_v22 }
0x1a28   :  { %v2851_v53 = vpop.f32.mrf.mxu1 }
0x1a29   :  { %v7326_v57 = vadd.f32 %v5659_v22, %v2851_v53  ;;  %2864 = vrot.lane.b32.xlu0 %v7324_v52, %s7851_s17 }
0x1a2b   :  { %2862 = vrot.lane.b32.xlu1 %v7326_v57, %s7851_s17  ;;  %6256 = vmatprep.mubr.msk.f32.mxu1 %vm198_vm1, %v7326_v57 }
0x1a2d   :  { %3062 = vrot.lane.b32.xlu0 %v7326_v57, %s7849_s18 }
0x1a2f   :  { %3068 = vrot.lane.b32.xlu1 %v7324_v52, %s7847_s19 }
0x1a33   :  { %3066 = vrot.lane.b32.xlu1 %v7326_v57, %s7847_s19  ;;  %s7864_s19 = smov 96  }
0x1a37   :  { %3064 = vrot.lane.b32.xlu1 %v7324_v52, %s7849_s18 }
0x1a9b   :  { %v2865_v59 = vpop.permute.xlu0 %2864 }
0x1a9c   :  { %6252 = vmatprep.subr.msk.mxu1 %vm198_vm1, %v2865_v59 }
0x1a9d   :  { %6253 = vmatpush3.xpose.msk.msra.mxu1 %vm198_vm1, %v2865_v59  ;;  %v2863_v60 = vpop.permute.xlu1 %2862 }
0x1a9e   :  { %6254 = vmatprep.subr.msk.mxu1 %vm198_vm1, %v2863_v60 }
0x1a9f   :  { %v3063_v62 = vpop.permute.xlu0 %3062 }
0x1aa1   :  { %6255 = vmatpush3.xpose.msk.msra.mxu1 %vm198_vm1, %v2863_v60  ;;  %v3069_v61 = vpop.permute.xlu1 %3068 }
0x1aa2   :  { %6266 = vmatprep.subr.msk.mxu1 %vm198_vm1, %v3069_v61 }
0x1aa4   :  { %6257 = vmatmul.mubr.msk.f32.vlgmr.msra.gmra.mxu1 %vm198_vm1, %v7324_v52 }
0x1aa5   :  { %v3067_v45 = vpop.permute.xlu1 %3066  ;;  %6267 = vmatpush3.xpose.msk.msra.mxu1 %vm198_vm1, %v3069_v61  ;;  %6270 = vmatprep.mubr.msk.f32.mxu1 %vm198_vm1, %v3063_v62 }
0x1aa6   :  { %6268 = vmatprep.subr.msk.mxu1 %vm198_vm1, %v3067_v45 }
0x1aa9   :  { %6269 = vmatpush3.xpose.msk.msra.mxu1 %vm198_vm1, %v3067_v45  ;;  %v3065_v63 = vpop.permute.xlu1 %3064 }
0x1aac   :  { %6271 = vmatmul.mubr.msk.f32.vlgmr.msra.gmra.mxu1 %vm198_vm1, %v3065_v63 }
0x1b64   :  { %v6258_v0 = vpop.f32.mrf.mxu1 }
0x1b65   :  { %v2950_v1 = vmul.f32 0.35355338, %v6258_v0 }
0x1b66   :  { %v2940_v2 = vpop.f32.mrf.mxu1 }
0x1b67   :  { %v2952_v3 = vadd.f32 %v7157_v29, %v2950_v1  ;;  %v2949_v4 = vmul.f32 0.35355338, %v2940_v2 }
0x1b69   :  { %v2951_v5 = vadd.f32 %v7164_v33, %v2949_v4  ;;  %v2956_v6 = vsel %vm286_vm2, %v2952_v3, -inf }
0x1b6a   :  { %2957 = vmax.xlane.f32.xlu1 %v2956_v6 }
0x1b6b   :  { %v2953_v7 = vsel %vm286_vm2, %v2951_v5, -inf }
0x1b6c   :  { %v6272_v8 = vpop.f32.mrf.mxu1  ;;  %2954 = vmax.xlane.f32.xlu0 %v2953_v7 }
0x1b6d   :  { %v3154_v10 = vmul.f32 0.35355338, %v6272_v8 }
0x1b6e   :  { %v3144_v9 = vpop.f32.mrf.mxu1 }
0x1b6f   :  { %v3153_v11 = vmul.f32 0.35355338, %v3144_v9  ;;  %v3156_v15 = vadd.f32 %v7157_v29, %v3154_v10 }
0x1b71   :  { %v3155_v12 = vadd.f32 %v7164_v33, %v3153_v11  ;;  %v3160_v17 = vsel %vm286_vm2, %v3156_v15, -inf }
0x1b73   :  { %v3157_v56 = vsel %vm286_vm2, %v3155_v12, -inf }
0x1b74   :  { %3158 = vmax.xlane.f32.xlu0 %v3157_v56 }
0x1b78   :  { %3161 = vmax.xlane.f32.xlu0 %v3160_v17 }
0x1b7b   :  { %2975 = vrot.lane.b32.xlu1 %v7326_v57, %s7845_s2 }
0x1b7f   :  { %3181 = vrot.lane.b32.xlu1 %v7324_v52, %s7859_s28 }
0x1b83   :  { %3179 = vrot.lane.b32.xlu1 %v7326_v57, %s7859_s28 }
0x1b8e   :  { %2977 = vrot.lane.b32.xlu0 %v7324_v52, %s7845_s2  ;;  %s7865_s2 = smov 120  }
0x1bf3   :  { %v2958_v54 = vpop.xlane.xlu1 %2957 }
0x1bf4   :  { %v2960_v18 = vsub.f32 %v2952_v3, %v2958_v54 }
0x1bf5   :  { %v2955_v19 = vpop.xlane.xlu0 %2954 }
0x1bf6   :  { %v2963_v20 = vmul.f32 1.442695, %v2960_v18  ;;  %v2959_v21 = vsub.f32 %v2951_v5, %v2955_v19 }
0x1bf7   :  { %v2976_v27 = vpop.permute.xlu1 %2975 }
0x1bf8   :  { %6573 = vpow2.f32 %v2963_v20  ;;  %v2961_v24 = vmul.f32 1.442695, %v2959_v21 }
0x1bfa   :  { %6575 = vpow2.f32 %v2961_v24 }
0x1bfb   :  { %v3182_v38 = vpop.permute.xlu1 %3181 }
0x1bfd   :  { %v3159_v25 = vpop.xlane.xlu0 %3158 }
0x1bfe   :  { %v3163_v26 = vsub.f32 %v3155_v12, %v3159_v25 }
0x1bff   :  { %v3180_v55 = vpop.permute.xlu1 %3179 }
0x1c00   :  { %v3165_v42 = vmul.f32 1.442695, %v3163_v26 }
0x1c01   :  { %v3162_v40 = vpop.xlane.xlu0 %3161 }
0x1c02   :  { %6577 = vpow2.f32 %v3165_v42  ;;  %v3164_v16 = vsub.f32 %v3156_v15, %v3162_v40 }
0x1c04   :  { %v3167_v31 = vmul.f32 1.442695, %v3164_v16 }
0x1c05   :  { %v6574_v32 = vpop.eup %6573  ;;  %v2978_v34 = vpop.permute.xlu0 %2977 }
0x1c06   :  { %6579 = vpow2.f32 %v3167_v31  ;;  %6259 = vmatprep.subr.mxu0 %v2978_v34  ;;  %v2968_v35 = vsel %vm286_vm2, %v6574_v32, 0.0 }
0x1c07   :  { %v6576_v36 = vpop.eup %6575  ;;  %2969 = vadd.xlane.f32.xlu1 %v2968_v35  ;;  %6260 = vmatpush3.msra.mxu0 %v2978_v34 }
0x1c08   :  { %6261 = vmatprep.subr.mxu0 %v2976_v27  ;;  %v2965_v37 = vsel %vm286_vm2, %v6576_v36, 0.0 }
0x1c09   :  { %2966 = vadd.xlane.f32.xlu0 %v2965_v37  ;;  %6262 = vmatpush3.msra.mxu0 %v2976_v27 }
0x1c0a   :  { %6273 = vmatprep.subr.mxu0 %v3182_v38 }
0x1c0f   :  { %v6578_v39 = vpop.eup %6577 }
0x1c10   :  { %v3169_v58 = vsel %vm286_vm2, %v6578_v39, 0.0 }
0x1c11   :  { %3170 = vadd.xlane.f32.xlu0 %v3169_v58 }
0x1c13   :  { %v6580_v41 = vpop.eup %6579 }
0x1c14   :  { %v3172_v43 = vsel %vm286_vm2, %v6580_v41, 0.0 }
0x1c15   :  { %3173 = vadd.xlane.f32.xlu1 %v3172_v43 }
0x1c26   :  { %3270 = vrot.lane.b32.xlu1 %v7326_v57, %s7860_s21 }
0x1c27   :  { %3272 = vrot.lane.b32.xlu0 %v7324_v52, %s7860_s21 }
0x1c2a   :  { %3268 = vrot.lane.b32.xlu1 %v7324_v52, %s7861_s22 }
0x1c2b   :  { %3266 = vrot.lane.b32.xlu0 %v7326_v57, %s7861_s22 }
0x1c90   :  { %v2970_v44 = vpop.xlane.xlu1 %2969 }
0x1c91   :  { %6581 = vrcp.f32 %v2970_v44 }
0x1c92   :  { %v2967_v46 = vpop.xlane.xlu0 %2966 }
0x1c93   :  { %6583 = vrcp.f32 %v2967_v46 }
0x1c9a   :  { %v3171_v48 = vpop.xlane.xlu0 %3170 }
0x1c9b   :  { %6585 = vrcp.f32 %v3171_v48 }
0x1c9e   :  { %v3174_v47 = vpop.xlane.xlu1 %3173  ;;  %v6582_v23 = vpop.eup %6581 }
0x1c9f   :  { %6587 = vrcp.f32 %v3174_v47  ;;  %v2974_v53 = vmul.f32 %v6582_v23, %v6574_v32  ;;  %v3273_v59 = vpop.permute.xlu0 %3272 }
0x1ca0   :  { %v6584_v22 = vpop.eup %6583 }
0x1ca1   :  { %v2973_v51 = vmul.f32 %v6584_v22, %v6576_v36 }
0x1ca2   :  { %v3271_v0 = vpop.permute.xlu1 %3270 }
0x1ca3   :  { %6263 = vmatprep.mubr.msk.f32.mxu0 %vm286_vm2, %v2973_v51  ;;  %v3267_v63 = vpop.permute.xlu0 %3266 }
0x1ca4   :  { %6264 = vmatmul.mubr.msk.f32.vlgmr.msra.gmra.mxu0 %vm286_vm2, %v2974_v53 }
0x1ca5   :  { %6274 = vmatpush3.msra.mxu0 %v3182_v38 }
0x1ca6   :  { %6275 = vmatprep.subr.mxu0 %v3180_v55  ;;  %v3269_v1 = vpop.permute.xlu1 %3268 }
0x1ca7   :  { %6276 = vmatpush3.msra.mxu0 %v3180_v55 }
0x1ca8   :  { %v6586_v60 = vpop.eup %6585  ;;  %6280 = vmatprep.subr.msk.mxu0 %vm198_vm1, %v3273_v59 }
0x1ca9   :  { %v3177_v61 = vmul.f32 %v6586_v60, %v6578_v39 }
0x1cab   :  { %6277 = vmatprep.mubr.msk.f32.mxu0 %vm286_vm2, %v3177_v61 }
0x1cac   :  { %v6588_v62 = vpop.eup %6587 }
0x1cad   :  { %v3178_v45 = vmul.f32 %v6588_v62, %v6580_v41 }
0x1caf   :  { %6278 = vmatmul.mubr.msk.f32.vlgmr.msra.gmra.mxu0 %vm286_vm2, %v3178_v45 }
0x1cb0   :  { %6281 = vmatpush3.xpose.msk.msra.mxu0 %vm198_vm1, %v3273_v59  ;;  %6284 = vmatprep.mubr.msk.f32.mxu0 %vm198_vm1, %v3267_v63 }
0x1cb1   :  { %6282 = vmatprep.subr.msk.mxu0 %vm198_vm1, %v3271_v0 }
0x1cb4   :  { %6283 = vmatpush3.xpose.msk.msra.mxu0 %vm198_vm1, %v3271_v0 }
0x1cb7   :  { %6285 = vmatmul.mubr.msk.f32.vlgmr.msra.gmra.mxu0 %vm198_vm1, %v3269_v1 }
0x1d64   :  { %v7392_v2 = vpop.f32.mrf.mxu0 }
0x1d66   :  { %v7394_v3 = vpop.f32.mrf.mxu0 }
0x1d6f   :  { %v7396_v4 = vpop.f32.mrf.mxu0 }
0x1d71   :  { %v7398_v5 = vpop.f32.mrf.mxu0 }
0x1d77   :  { %v6286_v6 = vpop.f32.mrf.mxu0 }
0x1d78   :  { %v3358_v7 = vmul.f32 0.35355338, %v6286_v6 }
0x1d79   :  { %v3348_v8 = vpop.f32.mrf.mxu0 }
0x1d7a   :  { %v3360_v9 = vadd.f32 %v7157_v29, %v3358_v7  ;;  %v3357_v10 = vmul.f32 0.35355338, %v3348_v8 }
0x1d7c   :  { %v3359_v11 = vadd.f32 %v7164_v33, %v3357_v10  ;;  %v3364_v12 = vsel %vm286_vm2, %v3360_v9, -inf  ;;  %v5687_v10 = vld [vmem:[%s7815_s6 + $0x48] sm:$0xff] }
0x1d7d   :  { %3365 = vmax.xlane.f32.xlu1 %v3364_v12 }
0x1d7e   :  { %v3361_v15 = vsel %vm286_vm2, %v3359_v11, -inf }
0x1d7f   :  { %3362 = vmax.xlane.f32.xlu0 %v3361_v15 }
0x1d8e   :  { %3383 = vrot.lane.b32.xlu1 %v7326_v57, %s7862_s23 }
0x1d92   :  { %3476 = vrot.lane.b32.xlu1 %v7324_v52, %s7863_s25 }
0x1d96   :  { %3474 = vrot.lane.b32.xlu1 %v7326_v57, %s7863_s25 }
0x1d9a   :  { %3472 = vrot.lane.b32.xlu1 %v7324_v52, %s7854_s29 }
0x1e06   :  { %v3366_v56 = vpop.xlane.xlu1 %3365 }
0x1e07   :  { %v3368_v17 = vsub.f32 %v3360_v9, %v3366_v56  ;;  %v5688_v9 = vld [vmem:[%s7815_s6 + $0x50] sm:$0xff] }
0x1e08   :  { %v3363_v54 = vpop.xlane.xlu0 %3362 }
0x1e09   :  { %v3371_v18 = vmul.f32 1.442695, %v3368_v17  ;;  %v3367_v19 = vsub.f32 %v3359_v11, %v3363_v54  ;;  %v5686_v11 = vld [vmem:[%s7815_s6 + $0x40] sm:$0xff] }
0x1e0a   :  { %v3384_v16 = vpop.permute.xlu1 %3383 }
0x1e0b   :  { %6589 = vpow2.f32 %v3371_v18  ;;  %v3369_v20 = vmul.f32 1.442695, %v3367_v19 }
0x1e0d   :  { %6591 = vpow2.f32 %v3369_v20 }
0x1e0e   :  { %v3477_v31 = vpop.permute.xlu1 %3476 }
0x1e12   :  { %v3475_v38 = vpop.permute.xlu1 %3474 }
0x1e16   :  { %v3473_v39 = vpop.permute.xlu1 %3472 }
0x1e18   :  { %v6590_v21 = vpop.eup %6589 }
0x1e19   :  { %v3376_v24 = vsel %vm286_vm2, %v6590_v21, 0.0 }
0x1e1a   :  { %v6592_v25 = vpop.eup %6591  ;;  %3377 = vadd.xlane.f32.xlu0 %v3376_v24 }
0x1e1b   :  { %v3373_v26 = vsel %vm286_vm2, %v6592_v25, 0.0 }
0x1e1e   :  { %3374 = vadd.xlane.f32.xlu0 %v3373_v26 }
0x1e34   :  { %3385 = vrot.lane.b32.xlu0 %v7324_v52, %s7862_s23 }
0x1e38   :  { %3470 = vrot.lane.b32.xlu0 %v7326_v57, %s7854_s29 }
0x1ea3   :  { %v3378_v42 = vpop.xlane.xlu0 %3377 }
0x1ea4   :  { %6593 = vrcp.f32 %v3378_v42 }
0x1ea7   :  { %v3375_v40 = vpop.xlane.xlu0 %3374 }
0x1ea8   :  { %6595 = vrcp.f32 %v3375_v40 }
0x1eab   :  { %v3386_v27 = vpop.permute.xlu0 %3385 }
0x1eac   :  { %6287 = vmatprep.subr.mxu1 %v3386_v27 }
0x1ead   :  { %6288 = vmatpush3.msra.mxu1 %v3386_v27 }
0x1eae   :  { %6289 = vmatprep.subr.mxu1 %v3384_v16 }
0x1eaf   :  { %6290 = vmatpush3.msra.mxu1 %v3384_v16  ;;  %v3471_v37 = vpop.permute.xlu0 %3470 }
0x1eb0   :  { %6294 = vmatprep.subr.msk.mxu1 %vm198_vm1, %v3477_v31 }
0x1eb1   :  { %v6594_v32 = vpop.eup %6593 }
0x1eb2   :  { %v3382_v36 = vmul.f32 %v6594_v32, %v6590_v21 }
0x1eb5   :  { %v6596_v34 = vpop.eup %6595 }
0x1eb6   :  { %v3381_v35 = vmul.f32 %v6596_v34, %v6592_v25 }
0x1eb8   :  { %6291 = vmatprep.mubr.msk.f32.mxu1 %vm286_vm2, %v3381_v35 }
0x1eb9   :  { %6292 = vmatmul.mubr.msk.f32.vlgmr.msra.gmra.mxu1 %vm286_vm2, %v3382_v36 }
0x1eba   :  { %6295 = vmatpush3.xpose.msk.msra.mxu1 %vm198_vm1, %v3477_v31  ;;  %6298 = vmatprep.mubr.msk.f32.mxu1 %vm198_vm1, %v3471_v37 }
0x1ebb   :  { %6296 = vmatprep.subr.msk.mxu1 %vm198_vm1, %v3475_v38 }
0x1ebe   :  { %6297 = vmatpush3.xpose.msk.msra.mxu1 %vm198_vm1, %v3475_v38 }
0x1ec1   :  { %6299 = vmatmul.mubr.msk.f32.vlgmr.msra.gmra.mxu1 %vm198_vm1, %v3473_v39 }
0x1f79   :  { %v6293_v58 = vpop.f32.mrf.mxu1 }
0x1f7b   :  { %v3461_v41 = vpop.f32.mrf.mxu1 }
0x1f81   :  { %v6300_v43 = vpop.f32.mrf.mxu1 }
0x1f82   :  { %v3562_v55 = vmul.f32 0.35355338, %v6300_v43  ;;  %v5697_v43 = vld [vmem:[%s7818_s9 + $0x50] sm:$0xff] }
0x1f83   :  { %v3552_v44 = vpop.f32.mrf.mxu1 }
0x1f84   :  { %v3564_v46 = vadd.f32 %v7157_v29, %v3562_v55  ;;  %v3561_v48 = vmul.f32 0.35355338, %v3552_v44  ;;  %v5696_v55 = vld [vmem:[%s7818_s9 + $0x48] sm:$0xff]  ;;  %v5695_v44 = vld [vmem:[%s7818_s9 + $0x40] sm:$0xff] }
0x1f86   :  { %v3563_v47 = vadd.f32 %v7164_v33, %v3561_v48  ;;  %v3568_v23 = vsel %vm286_vm2, %v3564_v46, -inf }
0x1f87   :  { %3569 = vmax.xlane.f32.xlu1 %v3568_v23 }
0x1f88   :  { %v3565_v22 = vsel %vm286_vm2, %v3563_v47, -inf }
0x1f89   :  { %3566 = vmax.xlane.f32.xlu0 %v3565_v22 }
0x1f98   :  { %3587 = vrot.lane.b32.xlu1 %v7326_v57, %s7855_s30 }
0x1f9c   :  { %3676 = vrot.lane.b32.xlu1 %v7398_v5, %s7856_s20 }
0x1fa0   :  { %3678 = vrot.lane.b32.xlu1 %v7396_v4, %s7856_s20 }
0x1fa4   :  { %3686 = vrot.lane.b32.xlu1 %v6293_v58, %s7857_s3 }
0x2010   :  { %v3570_v29 = vpop.xlane.xlu1 %3569 }
0x2011   :  { %v3572_v51 = vsub.f32 %v3564_v46, %v3570_v29 }
0x2012   :  { %v3567_v33 = vpop.xlane.xlu0 %3566 }
0x2013   :  { %v3575_v53 = vmul.f32 1.442695, %v3572_v51  ;;  %v3571_v59 = vsub.f32 %v3563_v47, %v3567_v33 }
0x2014   :  { %v3588_v4 = vpop.permute.xlu1 %3587 }
0x2015   :  { %6597 = vpow2.f32 %v3575_v53  ;;  %v3573_v60 = vmul.f32 1.442695, %v3571_v59 }
0x2017   :  { %6599 = vpow2.f32 %v3573_v60 }
0x2018   :  { %v3677_v56 = vpop.permute.xlu1 %3676 }
0x2019   :  { %v3698_v19 = vsel %vm198_vm1, %v7394_v3, %v3677_v56  ;;  %v5691_v3 = vld [vmem:[%s7816_s7 + $0x2] ss:$0 sm:$0xff]  ;;  %v5708_v56 = vld [vmem:[%s7820_s11 + $0xa8] sm:$0xff] }
0x201c   :  { %v3679_v17 = vpop.permute.xlu1 %3678 }
0x201d   :  { %v3699_v21 = vsel %vm198_vm1, %v7392_v2, %v3679_v17  ;;  %v5707_v17 = vld [vmem:[%s7820_s11 + $0xa0] sm:$0xff] }
0x2020   :  { %v3687_v54 = vpop.permute.xlu1 %3686 }
0x2021   :  { %v3701_v26 = vsel %vm286_vm2, %v3699_v21, %v3687_v54  ;;  %v5706_v54 = vld [vmem:[%s7820_s11 + $0x98] sm:$0xff]  ;;  %v5700_v21 = vld [vmem:[%s7819_s10 + $0x2] ss:$0 sm:$0xff] }
0x2022   :  { %v6598_v61 = vpop.eup %6597 }
0x2023   :  { %v3580_v62 = vsel %vm286_vm2, %v6598_v61, 0.0 }
0x2024   :  { %v6600_v57 = vpop.eup %6599  ;;  %3581 = vadd.xlane.f32.xlu0 %v3580_v62 }
0x2025   :  { %v3577_v45 = vsel %vm286_vm2, %v6600_v57, 0.0 }
0x2028   :  { %3578 = vadd.xlane.f32.xlu0 %v3577_v45  ;;  %v5694_v45 = vld [vmem:[%s7817_s8 + $0x4] sm:$0x3] }
0x203e   :  { %3589 = vrot.lane.b32.xlu0 %v7324_v52, %s7855_s30  ;;  %v5689_v52 = vld [vmem:[%s7815_s6 + $0x58] sm:$0xff] }
0x2042   :  { %3684 = vrot.lane.b32.xlu0 %v3461_v41, %s7857_s3  ;;  %v5698_v41 = vld [vmem:[%s7818_s9 + $0x58] sm:$0xff] }
0x2043   :  { %6319 = vmatprep.subr.mxu1 %v5698_v41 }
0x2044   :  { %6320 = vmatpush3.msra.mxu1 %v5698_v41 }
0x2045   :  { %6321 = vmatprep.subr.mxu1 %v5697_v43 }
0x2046   :  { %6322 = vmatpush3.msra.mxu1 %v5697_v43 }
0x2047   :  { %6323 = vmatprep.subr.mxu1 %v5696_v55 }
0x2048   :  { %6324 = vmatpush3.msra.mxu1 %v5696_v55 }
0x2049   :  { %6325 = vmatprep.subr.mxu1 %v5695_v44 }
0x204a   :  { %6326 = vmatpush3.msra.mxu1 %v5695_v44 }
0x20ad   :  { %v3582_v63 = vpop.xlane.xlu0 %3581 }
0x20ae   :  { %6601 = vrcp.f32 %v3582_v63 }
0x20b1   :  { %v3579_v0 = vpop.xlane.xlu0 %3578 }
0x20b2   :  { %6603 = vrcp.f32 %v3579_v0  ;;  %v3835_v0 = vrot.slane %v5694_v45, %v6808_v28 }
0x20b5   :  { %v3590_v1 = vpop.permute.xlu0 %3589 }
0x20b6   :  { %6301 = vmatprep.subr.mxu0 %v3590_v1 }
0x20b7   :  { %6302 = vmatpush3.msra.mxu0 %v3590_v1 }
0x20b8   :  { %6303 = vmatprep.subr.mxu0 %v3588_v4 }
0x20b9   :  { %6304 = vmatpush3.msra.mxu0 %v3588_v4  ;;  %v3685_v18 = vpop.permute.xlu0 %3684 }
0x20ba   :  { %6308 = vmatprep.subr.mxu0 %v5689_v52  ;;  %v3700_v24 = vsel %vm286_vm2, %v3698_v19, %v3685_v18  ;;  %v5705_v18 = vld [vmem:[%s7820_s11 + $0x90] sm:$0xff]  ;;  %v5704_v19 = vld [vmem:[%s7820_s11 + $0x88] sm:$0xff] }
0x20bb   :  { %v6602_v5 = vpop.eup %6601 }
0x20bc   :  { %v3586_v8 = vmul.f32 %v6602_v5, %v6598_v61  ;;  %v3841_v5 = vrot.slane %v5694_v45, %v6813_v30  ;;  %v5718_v45 = vld [vmem:[%s7813_s4 + $0x70] sm:$0xff] }
0x20bf   :  { %v6604_v6 = vpop.eup %6603 }
0x20c0   :  { %v3585_v7 = vmul.f32 %v6604_v6, %v6600_v57 }
0x20c2   :  { %6305 = vmatprep.mubr.msk.f32.mxu0 %vm286_vm2, %v3585_v7 }
0x20c3   :  { %6306 = vmatmul.mubr.msk.f32.vlgmr.msra.gmra.mxu0 %vm286_vm2, %v3586_v8 }
0x20c4   :  { %6309 = vmatpush3.msra.mxu0 %v5689_v52 }
0x20c5   :  { %6310 = vmatprep.subr.mxu0 %v5688_v9 }
0x20c6   :  { %6311 = vmatpush3.msra.mxu0 %v5688_v9 }
0x20c7   :  { %6312 = vmatprep.subr.mxu0 %v5687_v10 }
0x20c8   :  { %6313 = vmatpush3.msra.mxu0 %v5687_v10 }
0x20c9   :  { %6314 = vmatprep.subr.mxu0 %v5686_v11 }
0x20ca   :  { %6315 = vmatpush3.msra.mxu0 %v5686_v11 }
0x2183   :  { %v6307_v12 = vpop.f32.mrf.mxu0 }
0x2184   :  { %3694 = vrot.lane.b32.xlu1 %v6307_v12, %s7858_s16  ;;  %v5710_v12 = vld [vmem:[%s7820_s11 + $0xb8] sm:$0xff] }
0x2185   :  { %v3665_v15 = vpop.f32.mrf.mxu0  ;;  %6330 = vmatprep.subr.mxu0 %v5710_v12 }
0x2186   :  { %3692 = vrot.lane.b32.xlu0 %v3665_v15, %s7858_s16  ;;  %v5709_v15 = vld [vmem:[%s7820_s11 + $0xb0] sm:$0xff] }
0x21f6   :  { %v3695_v20 = vpop.permute.xlu1 %3694 }
0x21f7   :  { %v3703_v40 = vsel %vm1036_vm3, %v3701_v26, %v3695_v20  ;;  %v5703_v20 = vld [vmem:[%s7820_s11 + $0x80] sm:$0xff] }
0x21f8   :  { %v3693_v25 = vpop.permute.xlu0 %3692 }
0x21f9   :  { %v3702_v42 = vsel %vm1036_vm3, %v3700_v24, %v3693_v25 }
0x21fa   :  { %6316 = vmatprep.mubr.msk.f32.mxu0 %vm56_vm0, %v3702_v42 }
0x21fb   :  { %6317 = vmatmul.mubr.msk.f32.vlgmr.msra.gmra.mxu0 %vm56_vm0, %v3703_v40 }
0x21fc   :  { %6331 = vmatpush3.msra.mxu0 %v5710_v12 }
0x21fd   :  { %6332 = vmatprep.subr.mxu0 %v5709_v15 }
0x21fe   :  { %6333 = vmatpush3.msra.mxu0 %v5709_v15 }
0x21ff   :  { %6334 = vmatprep.subr.mxu0 %v5708_v56 }
0x2200   :  { %6335 = vmatpush3.msra.mxu0 %v5708_v56 }
0x2201   :  { %6336 = vmatprep.subr.mxu0 %v5707_v17 }
0x2202   :  { %6337 = vmatpush3.msra.mxu0 %v5707_v17 }
0x2203   :  { %6338 = vmatprep.subr.mxu0 %v5706_v54 }
0x2204   :  { %6339 = vmatpush3.msra.mxu0 %v5706_v54  ;;  %v5715_v54 = vld [vmem:[%s7822_s13 + $0x4] sm:$0x3] }
0x2205   :  { %6340 = vmatprep.subr.mxu0 %v5705_v18 }
0x2206   :  { %6341 = vmatpush3.msra.mxu0 %v5705_v18 }
0x2207   :  { %6342 = vmatprep.subr.mxu0 %v5704_v19 }
0x2208   :  { %6343 = vmatpush3.msra.mxu0 %v5704_v19 }
0x2209   :  { %6344 = vmatprep.subr.mxu0 %v5703_v20 }
0x220a   :  { %6345 = vmatpush3.msra.mxu0 %v5703_v20  ;;  %v4091_v20 = vrot.slane %v5715_v54, %v6808_v28 }
0x22bb   :  { %v6318_v16 = vpop.f32.mrf.mxu0 }
0x22bc   :  { %v3795_v27 = vadd.f32 %v6318_v16, %v5691_v3 }
0x22bd   :  { %v3789_v2 = vpop.f32.mrf.mxu0 }
0x22be   :  { %v3799_v31 = vadd.f32 %v3795_v27, %v7315_v50  ;;  %v3790_v32 = vadd.f32 %v5691_v3, %v3789_v2 }
0x22c0   :  { %v3798_v34 = vadd.f32 %v3790_v32, %v7313_v49  ;;  %v3805_v35 = vsel %vm56_vm0, %v3799_v31, 0.0  ;;  %v3811_v39 = vmul.f32 %v3799_v31, %v3799_v31 }
0x22c1   :  { %3806 = vadd.xlane.f32.xlu1 %v3805_v35 }
0x22c2   :  { %v3802_v36 = vsel %vm56_vm0, %v3798_v34, 0.0  ;;  %v3810_v37 = vmul.f32 %v3798_v34, %v3798_v34  ;;  %v3815_v58 = vsel %vm56_vm0, %v3811_v39, 0.0 }
0x22c3   :  { %3803 = vadd.xlane.f32.xlu0 %v3802_v36 }
0x22c4   :  { %v3812_v38 = vsel %vm56_vm0, %v3810_v37, 0.0 }
0x22c7   :  { %3813 = vadd.xlane.f32.xlu0 %v3812_v38 }
0x22cb   :  { %3816 = vadd.xlane.f32.xlu0 %v3815_v58 }
0x234a   :  { %v3807_v47 = vpop.xlane.xlu1 %3806 }
0x234b   :  { %v3809_v22 = vmul.f32 0.03125, %v3807_v47 }
0x234c   :  { %v3804_v46 = vpop.xlane.xlu0 %3803 }
0x234d   :  { %v3808_v48 = vmul.f32 0.03125, %v3804_v46  ;;  %v3821_v59 = vmul.f32 %v3809_v22, %v3809_v22  ;;  %v3825_v6 = vsub.f32 %v3799_v31, %v3809_v22  ;;  %v5712_v46 = vld [vmem:[%s7821_s12 + $0x2] ss:$0 sm:$0xff] }
0x234f   :  { %v3820_v29 = vmul.f32 %v3808_v48, %v3808_v48  ;;  %v3824_v63 = vsub.f32 %v3798_v34, %v3808_v48 }
0x2350   :  { %v3814_v23 = vpop.xlane.xlu0 %3813 }
0x2351   :  { %v3818_v51 = vmul.f32 0.03125, %v3814_v23 }
0x2353   :  { %v3822_v33 = vsub.f32 %v3818_v51, %v3820_v29 }
0x2354   :  { %v3817_v53 = vpop.xlane.xlu0 %3816 }
0x2355   :  { %v3826_v60 = vadd.f32 1e-12, %v3822_v33  ;;  %v3819_v61 = vmul.f32 0.03125, %v3817_v53 }
0x2357   :  { %6605 = vrsqrt.f32 %v3826_v60  ;;  %v3823_v62 = vsub.f32 %v3819_v61, %v3821_v59 }
0x2359   :  { %v3827_v57 = vadd.f32 1e-12, %v3823_v62 }
0x235b   :  { %6607 = vrsqrt.f32 %v3827_v57  ;;  %v5719_v57 = vld [vmem:[%s7813_s4 + $0x78] sm:$0xff] }
0x235c   :  { %6349 = vmatprep.subr.mxu1 %v5719_v57 }
0x2364   :  { %v6606_v1 = vpop.eup %6605 }
0x2365   :  { %v3830_v4 = vmul.f32 %v6606_v1, %v3824_v63  ;;  %v5717_v63 = vld [vmem:[%s7813_s4 + $0x68] sm:$0xff] }
0x2367   :  { %v3836_v7 = vmul.f32 %v3835_v0, %v3830_v4 }
0x2368   :  { %v6608_v8 = vpop.eup %6607 }
0x2369   :  { %v3831_v52 = vmul.f32 %v6608_v8, %v3825_v6  ;;  %v3842_v9 = vadd.f32 %v3841_v5, %v3836_v7 }
0x236b   :  { %v3837_v10 = vmul.f32 %v3835_v0, %v3831_v52  ;;  %6327 = vmatprep.mubr.msk.f32.mxu1 %vm56_vm0, %v3842_v9  ;;  %v5716_v0 = vld [vmem:[%s7813_s4 + $0x60] sm:$0xff]  ;;  %s5548_s4 = sshll.u32 %s6705_s27, 4  ;;  %s5549_s4 = int_to_ptr.vmem [resolvable:$true] %s5548_s4 }
0x236c   :  { %p6672_p1 = scmp.lt.s32.totalorder %s5549_s4, %s5549_s4 }
0x236d   :  { %v3843_v11 = vadd.f32 %v3841_v5, %v3837_v10 }
0x236f   :  { %6328 = vmatmul.mubr.msk.f32.vlgmr.msra.gmra.mxu1 %vm56_vm0, %v3843_v11 }
0x2370   :  { %6350 = vmatpush3.msra.mxu1 %v5719_v57 }
0x2371   :  { %6351 = vmatprep.subr.mxu1 %v5718_v45 }
0x2372   :  { %6352 = vmatpush3.msra.mxu1 %v5718_v45 }
0x2373   :  { %6353 = vmatprep.subr.mxu1 %v5717_v63 }
0x2374   :  { %6354 = vmatpush3.msra.mxu1 %v5717_v63 }
0x2375   :  { %6355 = vmatprep.subr.mxu1 %v5716_v0 }
0x2376   :  { %6356 = vmatpush3.msra.mxu1 %v5716_v0 }
0x242f   :  { %v6329_v24 = vpop.f32.mrf.mxu1 }
0x2430   :  { %v3935_v25 = vadd.f32 %v6329_v24, %v5700_v21 }
0x2431   :  { %v3929_v26 = vpop.f32.mrf.mxu1 }
0x2432   :  { %v3941_v42 = vmul.f32 0.044715, %v3935_v25  ;;  %v3930_v40 = vadd.f32 %v5700_v21, %v3929_v26  ;;  %v3939_v43 = vmul.f32 0.5, %v3935_v25 }
0x2434   :  { %v3943_v3 = vmul.f32 %v3941_v42, %v3935_v25  ;;  %v3940_v16 = vmul.f32 0.044715, %v3930_v40  ;;  %v3938_v58 = vmul.f32 0.5, %v3930_v40 }
0x2436   :  { %v3945_v27 = vmul.f32 %v3943_v3, %v3935_v25  ;;  %v3942_v2 = vmul.f32 %v3940_v16, %v3930_v40 }
0x2438   :  { %v3947_v31 = vadd.f32 %v3945_v27, %v3935_v25  ;;  %v3944_v32 = vmul.f32 %v3942_v2, %v3930_v40  ;;  %v5721_v2 = vld [vmem:[%s7814_s5 + $0x3] ss:$0 sm:$0xff] }
0x243a   :  { %v3949_v34 = vmul.f32 0.7978846, %v3947_v31  ;;  %v3946_v35 = vadd.f32 %v3944_v32, %v3930_v40  ;;  %v4097_v40 = vrot.slane %v5715_v54, %v6813_v30 }
0x243c   :  { %6609 = vtanh.f32 %v3949_v34  ;;  %v3948_v36 = vmul.f32 0.7978846, %v3946_v35 }
0x243e   :  { %6611 = vtanh.f32 %v3948_v36 }
0x2449   :  { %v6610_v37 = vpop.eup %6609 }
0x244a   :  { %v3953_v39 = vadd.f32 1.0, %v6610_v37 }
0x244b   :  { %v6612_v38 = vpop.eup %6611 }
0x244c   :  { %v3952_v41 = vadd.f32 1.0, %v6612_v38  ;;  %v3955_v44 = vmul.f32 %v3953_v39, %v3939_v43 }
0x244e   :  { %v3954_v55 = vmul.f32 %v3952_v41, %v3938_v58 }
0x2450   :  { %6346 = vmatprep.mubr.msk.f32.mxu0 %vm1301_vm4, %v3954_v55 }
0x2451   :  { %6347 = vmatmul.mubr.msk.f32.vlgmr.msra.gmra.mxu0 %vm1301_vm4, %v3955_v44 }
0x2511   :  { %v6348_v48 = vpop.f32.mrf.mxu0 }
0x2512   :  { %v4051_v47 = vadd.f32 %v6348_v48, %v5712_v46 }
0x2513   :  { %v4045_v23 = vpop.f32.mrf.mxu0 }
0x2514   :  { %v4055_v22 = vadd.f32 %v4051_v47, %v3843_v11  ;;  %v4046_v29 = vadd.f32 %v5712_v46, %v4045_v23  ;;  %v7593_v46 = vld [vmem:[%s7810_s1 + $0x8] sm:$0xff]  ;;  %v7599_v23 = vld [vmem:[%s7810_s1] sm:$0xff]  ;;  %s7867_s1 = smov 64  }
0x2516   :  { %v4054_v51 = vadd.f32 %v4046_v29, %v3842_v9  ;;  %v4061_v33 = vsel %vm56_vm0, %v4055_v22, 0.0  ;;  %v4067_v53 = vmul.f32 %v4055_v22, %v4055_v22 }
0x2517   :  { %4062 = vadd.xlane.f32.xlu1 %v4061_v33 }
0x2518   :  { %v4058_v59 = vsel %vm56_vm0, %v4054_v51, 0.0  ;;  %v4066_v60 = vmul.f32 %v4054_v51, %v4054_v51  ;;  %v4071_v61 = vsel %vm56_vm0, %v4067_v53, 0.0 }
0x2519   :  { %4059 = vadd.xlane.f32.xlu0 %v4058_v59 }
0x251a   :  { %v4068_v62 = vsel %vm56_vm0, %v4066_v60, 0.0 }
0x251b   :  { %4072 = vadd.xlane.f32.xlu1 %v4071_v61 }
0x251d   :  { %4069 = vadd.xlane.f32.xlu0 %v4068_v62 }
0x25a0   :  { %v4063_v1 = vpop.xlane.xlu1 %4062 }
0x25a1   :  { %v4065_v4 = vmul.f32 0.03125, %v4063_v1 }
0x25a2   :  { %v4060_v5 = vpop.xlane.xlu0 %4059 }
0x25a3   :  { %v4064_v6 = vmul.f32 0.03125, %v4060_v5  ;;  %v4077_v8 = vmul.f32 %v4065_v4, %v4065_v4  ;;  %v4081_v18 = vsub.f32 %v4055_v22, %v4065_v4 }
0x25a4   :  { %v4073_v7 = vpop.xlane.xlu1 %4072 }
0x25a5   :  { %v4075_v52 = vmul.f32 0.03125, %v4073_v7  ;;  %v4076_v10 = vmul.f32 %v4064_v6, %v4064_v6  ;;  %v4080_v21 = vsub.f32 %v4054_v51, %v4064_v6 }
0x25a6   :  { %v4070_v9 = vpop.xlane.xlu0 %4069 }
0x25a7   :  { %v4079_v11 = vsub.f32 %v4075_v52, %v4077_v8  ;;  %v4074_v12 = vmul.f32 0.03125, %v4070_v9 }
0x25a9   :  { %v4083_v15 = vadd.f32 1e-12, %v4079_v11  ;;  %v4078_v56 = vsub.f32 %v4074_v12, %v4076_v10 }
0x25ab   :  { %6613 = vrsqrt.f32 %v4083_v15  ;;  %v4082_v17 = vadd.f32 1e-12, %v4078_v56 }
0x25ad   :  { %6615 = vrsqrt.f32 %v4082_v17 }
0x25b8   :  { %v6614_v19 = vpop.eup %6613 }
0x25b9   :  { %v4087_v24 = vmul.f32 %v6614_v19, %v4081_v18 }
0x25ba   :  { %v6616_v25 = vpop.eup %6615 }
0x25bb   :  { %v4086_v26 = vmul.f32 %v6616_v25, %v4080_v21  ;;  %v4093_v42 = vmul.f32 %v4091_v20, %v4087_v24 }
0x25bd   :  { %v4092_v3 = vmul.f32 %v4091_v20, %v4086_v26  ;;  %v7551_v27 = vadd.f32 %v4097_v40, %v4093_v42 }
0x25bf   :  { %v7549_v16 = vadd.f32 %v4097_v40, %v4092_v3 }
0x25c1   :  { %6357 = vmatprep.mubr.msk.f32.mxu1 %vm56_vm0, %v7549_v16 }
0x25c2   :  { %6358 = vmatmul.mubr.msk.f32.vlgmr.msra.gmra.mxu1 %vm56_vm0, %v7551_v27 }
0x2682   :  { %v6359_v31 = vpop.f32.mrf.mxu1 }
0x2683   :  { %v7560_v32 = vadd.f32 %v6359_v31, %v5721_v2 }
0x2684   :  { %v4187_v34 = vpop.f32.mrf.mxu1 }
0x2685   :  { %v7562_v35 = vadd.f32 %v5721_v2, %v4187_v34  ;;  %4200 = vrot.lane.b32.xlu0 %v7560_v32, %s7864_s19 }
0x2687   :  { %4198 = vrot.lane.b32.xlu1 %v7562_v35, %s7864_s19  ;;  %6364 = vmatprep.mubr.msk.f32.mxu1 %vm198_vm1, %v7562_v35 }
0x2689   :  { %4398 = vrot.lane.b32.xlu0 %v7562_v35, %s7865_s2 }
0x268b   :  { %4404 = vrot.lane.b32.xlu1 %v7560_v32, %s7866_s26 }
0x268f   :  { %4402 = vrot.lane.b32.xlu1 %v7562_v35, %s7866_s26 }
0x2693   :  { %4400 = vrot.lane.b32.xlu1 %v7560_v32, %s7865_s2 }
0x26f7   :  { %v4201_v36 = vpop.permute.xlu0 %4200 }
0x26f8   :  { %6360 = vmatprep.subr.msk.mxu1 %vm198_vm1, %v4201_v36 }
0x26f9   :  { %6361 = vmatpush3.xpose.msk.msra.mxu1 %vm198_vm1, %v4201_v36  ;;  %v4199_v37 = vpop.permute.xlu1 %4198 }
0x26fa   :  { %6362 = vmatprep.subr.msk.mxu1 %vm198_vm1, %v4199_v37 }
0x26fb   :  { %v4399_v39 = vpop.permute.xlu0 %4398 }
0x26fd   :  { %6363 = vmatpush3.xpose.msk.msra.mxu1 %vm198_vm1, %v4199_v37  ;;  %v4405_v38 = vpop.permute.xlu1 %4404 }
0x26fe   :  { %6374 = vmatprep.subr.msk.mxu1 %vm198_vm1, %v4405_v38 }
0x2700   :  { %6365 = vmatmul.mubr.msk.f32.vlgmr.msra.gmra.mxu1 %vm198_vm1, %v7560_v32 }
0x2701   :  { %v4403_v58 = vpop.permute.xlu1 %4402  ;;  %6375 = vmatpush3.xpose.msk.msra.mxu1 %vm198_vm1, %v4405_v38  ;;  %6378 = vmatprep.mubr.msk.f32.mxu1 %vm198_vm1, %v4399_v39 }
0x2702   :  { %6376 = vmatprep.subr.msk.mxu1 %vm198_vm1, %v4403_v58 }
0x2705   :  { %6377 = vmatpush3.xpose.msk.msra.mxu1 %vm198_vm1, %v4403_v58  ;;  %v4401_v41 = vpop.permute.xlu1 %4400 }
0x2708   :  { %6379 = vmatmul.mubr.msk.f32.vlgmr.msra.gmra.mxu1 %vm198_vm1, %v4401_v41 }
0x27c0   :  { %v6366_v43 = vpop.f32.mrf.mxu1 }
0x27c1   :  { %v4286_v55 = vmul.f32 0.35355338, %v6366_v43 }
0x27c2   :  { %v4276_v44 = vpop.f32.mrf.mxu1 }
0x27c3   :  { %v4288_v48 = vadd.f32 %v7593_v46, %v4286_v55  ;;  %v4285_v47 = vmul.f32 0.35355338, %v4276_v44 }
0x27c5   :  { %v4287_v22 = vadd.f32 %v7599_v23, %v4285_v47  ;;  %v4292_v29 = vsel %vm286_vm2, %v4288_v48, -inf }
0x27c6   :  { %4293 = vmax.xlane.f32.xlu1 %v4292_v29 }
0x27c7   :  { %v4289_v51 = vsel %vm286_vm2, %v4287_v22, -inf }
0x27c8   :  { %v6380_v33 = vpop.f32.mrf.mxu1  ;;  %4290 = vmax.xlane.f32.xlu0 %v4289_v51 }
0x27c9   :  { %v4490_v59 = vmul.f32 0.35355338, %v6380_v33 }
0x27ca   :  { %v4480_v53 = vpop.f32.mrf.mxu1 }
0x27cb   :  { %v4489_v60 = vmul.f32 0.35355338, %v4480_v53  ;;  %v4492_v62 = vadd.f32 %v7593_v46, %v4490_v59 }
0x27cd   :  { %v4491_v61 = vadd.f32 %v7599_v23, %v4489_v60  ;;  %v4496_v45 = vsel %vm286_vm2, %v4492_v62, -inf }
0x27cf   :  { %v4493_v57 = vsel %vm286_vm2, %v4491_v61, -inf }
0x27d0   :  { %4494 = vmax.xlane.f32.xlu0 %v4493_v57 }
0x27d4   :  { %4497 = vmax.xlane.f32.xlu0 %v4496_v45 }
0x27d7   :  { %4311 = vrot.lane.b32.xlu1 %v7562_v35, %s7867_s1 }
0x27db   :  { %4517 = vrot.lane.b32.xlu1 %v7560_v32, %s7859_s28 }
0x27df   :  { %4515 = vrot.lane.b32.xlu1 %v7562_v35, %s7859_s28 }
0x27ea   :  { %4313 = vrot.lane.b32.xlu0 %v7560_v32, %s7867_s1  ;;  %s6667_s1 = scalar_lea.vmem %s5549_s4, 32 }
0x27eb   :  { %p6668_p0 = scmp.ne.s32.totalorder %s5549_s4, %s6667_s1  ;;  %p6673_p2 = scmp.lt.s32.totalorder %s6667_s1, %s6667_s1 }
0x27ed   :  { %p6674_p3 = por %p6673_p2, %p6672_p1 }
0x27ef   :  { %p6675_p4 = pnand %p6674_p3, %p6668_p0 }
0x284f   :  { %v4294_v63 = vpop.xlane.xlu1 %4293 }
0x2850   :  { %v4296_v0 = vsub.f32 %v4288_v48, %v4294_v63 }
0x2851   :  { %v4291_v1 = vpop.xlane.xlu0 %4290 }
0x2852   :  { %v4299_v4 = vmul.f32 1.442695, %v4296_v0  ;;  %v4295_v5 = vsub.f32 %v4287_v22, %v4291_v1 }
0x2853   :  { %v4312_v11 = vpop.permute.xlu1 %4311 }
0x2854   :  { %6617 = vpow2.f32 %v4299_v4  ;;  %v4297_v6 = vmul.f32 1.442695, %v4295_v5 }
0x2856   :  { %6619 = vpow2.f32 %v4297_v6 }
0x2857   :  { %v4518_v19 = vpop.permute.xlu1 %4517 }
0x2859   :  { %v4495_v7 = vpop.xlane.xlu0 %4494 }
0x285a   :  { %v4499_v8 = vsub.f32 %v4491_v61, %v4495_v7 }
0x285b   :  { %v4516_v26 = vpop.permute.xlu1 %4515 }
0x285c   :  { %v4501_v52 = vmul.f32 1.442695, %v4499_v8 }
0x285d   :  { %v4498_v9 = vpop.xlane.xlu0 %4497 }
0x285e   :  { %6621 = vpow2.f32 %v4501_v52  ;;  %v4500_v10 = vsub.f32 %v4492_v62, %v4498_v9 }
0x2860   :  { %v4503_v12 = vmul.f32 1.442695, %v4500_v10 }
0x2861   :  { %v6618_v15 = vpop.eup %6617  ;;  %v4314_v56 = vpop.permute.xlu0 %4313 }
0x2862   :  { %6623 = vpow2.f32 %v4503_v12  ;;  %6367 = vmatprep.subr.mxu0 %v4314_v56  ;;  %v4304_v17 = vsel %vm286_vm2, %v6618_v15, 0.0 }
0x2863   :  { %v6620_v54 = vpop.eup %6619  ;;  %4305 = vadd.xlane.f32.xlu1 %v4304_v17  ;;  %6368 = vmatpush3.msra.mxu0 %v4314_v56 }
0x2864   :  { %6369 = vmatprep.subr.mxu0 %v4312_v11  ;;  %v4301_v18 = vsel %vm286_vm2, %v6620_v54, 0.0 }
0x2865   :  { %4302 = vadd.xlane.f32.xlu0 %v4301_v18  ;;  %6370 = vmatpush3.msra.mxu0 %v4312_v11 }
0x2866   :  { %6381 = vmatprep.subr.mxu0 %v4518_v19 }
0x286b   :  { %v6622_v20 = vpop.eup %6621 }
0x286c   :  { %v4505_v21 = vsel %vm286_vm2, %v6622_v20, 0.0 }
0x286d   :  { %4506 = vadd.xlane.f32.xlu0 %v4505_v21 }
0x286f   :  { %v6624_v24 = vpop.eup %6623 }
0x2870   :  { %v4508_v25 = vsel %vm286_vm2, %v6624_v24, 0.0 }
0x2871   :  { %4509 = vadd.xlane.f32.xlu1 %v4508_v25 }
0x2882   :  { %4606 = vrot.lane.b32.xlu1 %v7562_v35, %s7860_s21 }
0x2883   :  { %4608 = vrot.lane.b32.xlu0 %v7560_v32, %s7860_s21 }
0x2886   :  { %4604 = vrot.lane.b32.xlu1 %v7560_v32, %s7861_s22 }
0x2887   :  { %4602 = vrot.lane.b32.xlu0 %v7562_v35, %s7861_s22 }
0x28ec   :  { %v4306_v42 = vpop.xlane.xlu1 %4305 }
0x28ed   :  { %6625 = vrcp.f32 %v4306_v42 }
0x28ee   :  { %v4303_v40 = vpop.xlane.xlu0 %4302 }
0x28ef   :  { %6627 = vrcp.f32 %v4303_v40 }
0x28f6   :  { %v4507_v3 = vpop.xlane.xlu0 %4506 }
0x28f7   :  { %6629 = vrcp.f32 %v4507_v3 }
0x28fa   :  { %v4510_v2 = vpop.xlane.xlu1 %4509  ;;  %v6626_v31 = vpop.eup %6625 }
0x28fb   :  { %6631 = vrcp.f32 %v4510_v2  ;;  %v4310_v37 = vmul.f32 %v6626_v31, %v6618_v15  ;;  %v4609_v38 = vpop.permute.xlu0 %4608 }
0x28fc   :  { %v6628_v34 = vpop.eup %6627 }
0x28fd   :  { %v4309_v36 = vmul.f32 %v6628_v34, %v6620_v54 }
0x28fe   :  { %v4607_v44 = vpop.permute.xlu1 %4606 }
0x28ff   :  { %6371 = vmatprep.mubr.msk.f32.mxu0 %vm286_vm2, %v4309_v36  ;;  %v4603_v55 = vpop.permute.xlu0 %4602 }
0x2900   :  { %6372 = vmatmul.mubr.msk.f32.vlgmr.msra.gmra.mxu0 %vm286_vm2, %v4310_v37 }
0x2901   :  { %6382 = vmatpush3.msra.mxu0 %v4518_v19 }
0x2902   :  { %6383 = vmatprep.subr.mxu0 %v4516_v26  ;;  %v4605_v48 = vpop.permute.xlu1 %4604 }
0x2903   :  { %6384 = vmatpush3.msra.mxu0 %v4516_v26 }
0x2904   :  { %v6630_v39 = vpop.eup %6629  ;;  %6388 = vmatprep.subr.msk.mxu0 %vm198_vm1, %v4609_v38 }
0x2905   :  { %v4513_v58 = vmul.f32 %v6630_v39, %v6622_v20 }
0x2907   :  { %6385 = vmatprep.mubr.msk.f32.mxu0 %vm286_vm2, %v4513_v58 }
0x2908   :  { %v6632_v41 = vpop.eup %6631 }
0x2909   :  { %v4514_v43 = vmul.f32 %v6632_v41, %v6624_v24 }
0x290b   :  { %6386 = vmatmul.mubr.msk.f32.vlgmr.msra.gmra.mxu0 %vm286_vm2, %v4514_v43 }
0x290c   :  { %6389 = vmatpush3.xpose.msk.msra.mxu0 %vm198_vm1, %v4609_v38  ;;  %6392 = vmatprep.mubr.msk.f32.mxu0 %vm198_vm1, %v4603_v55 }
0x290d   :  { %6390 = vmatprep.subr.msk.mxu0 %vm198_vm1, %v4607_v44 }
0x2910   :  { %6391 = vmatpush3.xpose.msk.msra.mxu0 %vm198_vm1, %v4607_v44 }
0x2913   :  { %6393 = vmatmul.mubr.msk.f32.vlgmr.msra.gmra.mxu0 %vm198_vm1, %v4605_v48 }
0x29c0   :  { %v7638_v47 = vpop.f32.mrf.mxu0 }
0x29c2   :  { %v7640_v22 = vpop.f32.mrf.mxu0 }
0x29cb   :  { %v7642_v29 = vpop.f32.mrf.mxu0 }
0x29cd   :  { %v7644_v51 = vpop.f32.mrf.mxu0 }
0x29d3   :  { %v6394_v33 = vpop.f32.mrf.mxu0 }
0x29d4   :  { %v4694_v53 = vmul.f32 0.35355338, %v6394_v33 }
0x29d5   :  { %v4684_v59 = vpop.f32.mrf.mxu0 }
0x29d6   :  { %v4696_v60 = vadd.f32 %v7593_v46, %v4694_v53  ;;  %v4693_v61 = vmul.f32 0.35355338, %v4684_v59 }
0x29d8   :  { %v4695_v62 = vadd.f32 %v7599_v23, %v4693_v61  ;;  %v4700_v57 = vsel %vm286_vm2, %v4696_v60, -inf }
0x29d9   :  { %4701 = vmax.xlane.f32.xlu1 %v4700_v57  ;;  %v5749_v57 = vld [vmem:[%s7815_s6 + $0x68] sm:$0xff] }
0x29da   :  { %v4697_v45 = vsel %vm286_vm2, %v4695_v62, -inf }
0x29db   :  { %4698 = vmax.xlane.f32.xlu0 %v4697_v45  ;;  %v5748_v45 = vld [vmem:[%s7815_s6 + $0x60] sm:$0xff] }
0x29ea   :  { %4719 = vrot.lane.b32.xlu1 %v7562_v35, %s7862_s23 }
0x29ee   :  { %4812 = vrot.lane.b32.xlu1 %v7560_v32, %s7863_s25 }
0x29f2   :  { %4810 = vrot.lane.b32.xlu1 %v7562_v35, %s7863_s25 }
0x29f6   :  { %4808 = vrot.lane.b32.xlu1 %v7560_v32, %s7854_s29 }
0x2a62   :  { %v4702_v63 = vpop.xlane.xlu1 %4701 }
0x2a63   :  { %v4704_v0 = vsub.f32 %v4696_v60, %v4702_v63 }
0x2a64   :  { %v4699_v1 = vpop.xlane.xlu0 %4698 }
0x2a65   :  { %v4707_v4 = vmul.f32 1.442695, %v4704_v0  ;;  %v4703_v5 = vsub.f32 %v4695_v62, %v4699_v1  ;;  %v5750_v62 = vld [vmem:[%s7815_s6 + $0x70] sm:$0xff] }
0x2a66   :  { %v4720_v12 = vpop.permute.xlu1 %4719 }
0x2a67   :  { %6633 = vpow2.f32 %v4707_v4  ;;  %v4705_v6 = vmul.f32 1.442695, %v4703_v5 }
0x2a69   :  { %6635 = vpow2.f32 %v4705_v6 }
0x2a6a   :  { %v4813_v56 = vpop.permute.xlu1 %4812 }
0x2a6e   :  { %v4811_v21 = vpop.permute.xlu1 %4810 }
0x2a72   :  { %v4809_v24 = vpop.permute.xlu1 %4808 }
0x2a74   :  { %v6634_v7 = vpop.eup %6633 }
0x2a75   :  { %v4712_v8 = vsel %vm286_vm2, %v6634_v7, 0.0 }
0x2a76   :  { %v6636_v52 = vpop.eup %6635  ;;  %4713 = vadd.xlane.f32.xlu0 %v4712_v8 }
0x2a77   :  { %v4709_v9 = vsel %vm286_vm2, %v6636_v52, 0.0 }
0x2a7a   :  { %4710 = vadd.xlane.f32.xlu0 %v4709_v9 }
0x2a90   :  { %4721 = vrot.lane.b32.xlu0 %v7560_v32, %s7862_s23 }
0x2a94   :  { %4806 = vrot.lane.b32.xlu0 %v7562_v35, %s7854_s29 }
0x2aff   :  { %v4714_v10 = vpop.xlane.xlu0 %4713 }
0x2b00   :  { %6637 = vrcp.f32 %v4714_v10 }
0x2b03   :  { %v4711_v11 = vpop.xlane.xlu0 %4710 }
0x2b04   :  { %6639 = vrcp.f32 %v4711_v11 }
0x2b07   :  { %v4722_v15 = vpop.permute.xlu0 %4721 }
0x2b08   :  { %6395 = vmatprep.subr.mxu1 %v4722_v15 }
0x2b09   :  { %6396 = vmatpush3.msra.mxu1 %v4722_v15 }
0x2b0a   :  { %6397 = vmatprep.subr.mxu1 %v4720_v12 }
0x2b0b   :  { %6398 = vmatpush3.msra.mxu1 %v4720_v12  ;;  %v4807_v20 = vpop.permute.xlu0 %4806 }
0x2b0c   :  { %6402 = vmatprep.subr.msk.mxu1 %vm198_vm1, %v4813_v56 }
0x2b0d   :  { %v6638_v17 = vpop.eup %6637 }
0x2b0e   :  { %v4718_v19 = vmul.f32 %v6638_v17, %v6634_v7 }
0x2b11   :  { %v6640_v54 = vpop.eup %6639 }
0x2b12   :  { %v4717_v18 = vmul.f32 %v6640_v54, %v6636_v52 }
0x2b14   :  { %6399 = vmatprep.mubr.msk.f32.mxu1 %vm286_vm2, %v4717_v18 }
0x2b15   :  { %6400 = vmatmul.mubr.msk.f32.vlgmr.msra.gmra.mxu1 %vm286_vm2, %v4718_v19 }
0x2b16   :  { %6403 = vmatpush3.xpose.msk.msra.mxu1 %vm198_vm1, %v4813_v56  ;;  %6406 = vmatprep.mubr.msk.f32.mxu1 %vm198_vm1, %v4807_v20 }
0x2b17   :  { %6404 = vmatprep.subr.msk.mxu1 %vm198_vm1, %v4811_v21 }
0x2b1a   :  { %6405 = vmatpush3.xpose.msk.msra.mxu1 %vm198_vm1, %v4811_v21 }
0x2b1d   :  { %6407 = vmatmul.mubr.msk.f32.vlgmr.msra.gmra.mxu1 %vm198_vm1, %v4809_v24 }
0x2bd5   :  { %v6401_v25 = vpop.f32.mrf.mxu1 }
0x2bd7   :  { %v4797_v26 = vpop.f32.mrf.mxu1 }
0x2bdd   :  { %v6408_v42 = vpop.f32.mrf.mxu1 }
0x2bde   :  { %v4898_v40 = vmul.f32 0.35355338, %v6408_v42 }
0x2bdf   :  { %v4888_v3 = vpop.f32.mrf.mxu1 }
0x2be0   :  { %v4900_v2 = vadd.f32 %v7593_v46, %v4898_v40  ;;  %v4897_v31 = vmul.f32 0.35355338, %v4888_v3  ;;  %v5760_v40 = vld [vmem:[%s7818_s9 + $0x78] sm:$0xff]  ;;  %v5759_v3 = vld [vmem:[%s7818_s9 + $0x70] sm:$0xff] }
0x2be1   :  { %6427 = vmatprep.subr.mxu1 %v5760_v40 }
0x2be2   :  { %v4899_v34 = vadd.f32 %v7599_v23, %v4897_v31  ;;  %v4904_v36 = vsel %vm286_vm2, %v4900_v2, -inf  ;;  %6428 = vmatpush3.msra.mxu1 %v5760_v40  ;;  %v5757_v31 = vld [vmem:[%s7818_s9 + $0x60] sm:$0xff] }
0x2be3   :  { %4905 = vmax.xlane.f32.xlu1 %v4904_v36  ;;  %6429 = vmatprep.subr.mxu1 %v5759_v3 }
0x2be4   :  { %v4901_v37 = vsel %vm286_vm2, %v4899_v34, -inf  ;;  %6430 = vmatpush3.msra.mxu1 %v5759_v3 }
0x2be5   :  { %4902 = vmax.xlane.f32.xlu0 %v4901_v37 }
0x2bf4   :  { %4923 = vrot.lane.b32.xlu1 %v7562_v35, %s7855_s30 }
0x2bf8   :  { %5012 = vrot.lane.b32.xlu1 %v7644_v51, %s7856_s20 }
0x2bfc   :  { %5014 = vrot.lane.b32.xlu1 %v7642_v29, %s7856_s20 }
0x2c00   :  { %5022 = vrot.lane.b32.xlu1 %v6401_v25, %s7857_s3 }
0x2c6c   :  { %v4906_v46 = vpop.xlane.xlu1 %4905 }
0x2c6d   :  { %v4908_v38 = vsub.f32 %v4900_v2, %v4906_v46  ;;  %v5758_v2 = vld [vmem:[%s7818_s9 + $0x68] sm:$0xff] }
0x2c6e   :  { %v4903_v23 = vpop.xlane.xlu0 %4902  ;;  %6431 = vmatprep.subr.mxu1 %v5758_v2 }
0x2c6f   :  { %v4911_v39 = vmul.f32 1.442695, %v4908_v38  ;;  %v4907_v58 = vsub.f32 %v4899_v34, %v4903_v23  ;;  %6432 = vmatpush3.msra.mxu1 %v5758_v2 }
0x2c70   :  { %v4924_v33 = vpop.permute.xlu1 %4923  ;;  %6433 = vmatprep.subr.mxu1 %v5757_v31 }
0x2c71   :  { %6641 = vpow2.f32 %v4911_v39  ;;  %v4909_v41 = vmul.f32 1.442695, %v4907_v58  ;;  %6434 = vmatpush3.msra.mxu1 %v5757_v31 }
0x2c73   :  { %6643 = vpow2.f32 %v4909_v41 }
0x2c74   :  { %v5013_v1 = vpop.permute.xlu1 %5012 }
0x2c75   :  { %v5034_v7 = vsel %vm198_vm1, %v7640_v22, %v5013_v1  ;;  %v5753_v22 = vld [vmem:[%s7816_s7 + $0x3] ss:$0 sm:$0xff]  ;;  %v5772_v1 = vld [vmem:[%s7820_s11 + $0xf8] sm:$0xff] }
0x2c78   :  { %v5015_v4 = vpop.permute.xlu1 %5014 }
0x2c79   :  { %v5035_v52 = vsel %vm198_vm1, %v7638_v47, %v5015_v4  ;;  %v5771_v4 = vld [vmem:[%s7820_s11 + $0xf0] sm:$0xff] }
0x2c7c   :  { %v5023_v5 = vpop.permute.xlu1 %5022 }
0x2c7d   :  { %v5037_v11 = vsel %vm286_vm2, %v5035_v52, %v5023_v5  ;;  %v5770_v5 = vld [vmem:[%s7820_s11 + $0xe8] sm:$0xff] }
0x2c7e   :  { %v6642_v43 = vpop.eup %6641  ;;  %v5766_v52 = vld [vmem:[%s7820_s11 + $0xc8] sm:$0xff] }
0x2c7f   :  { %v4916_v55 = vsel %vm286_vm2, %v6642_v43, 0.0 }
0x2c80   :  { %v6644_v35 = vpop.eup %6643  ;;  %4917 = vadd.xlane.f32.xlu0 %v4916_v55 }
0x2c81   :  { %v4913_v44 = vsel %vm286_vm2, %v6644_v35, 0.0 }
0x2c84   :  { %4914 = vadd.xlane.f32.xlu0 %v4913_v44 }
0x2c9a   :  { %4925 = vrot.lane.b32.xlu0 %v7560_v32, %s7855_s30  ;;  %v5751_v32 = vld [vmem:[%s7815_s6 + $0x78] sm:$0xff] }
0x2c9e   :  { %5020 = vrot.lane.b32.xlu0 %v4797_v26, %s7857_s3 }
0x2d09   :  { %v4918_v48 = vpop.xlane.xlu0 %4917 }
0x2d0a   :  { %6645 = vrcp.f32 %v4918_v48 }
0x2d0d   :  { %v4915_v29 = vpop.xlane.xlu0 %4914 }
0x2d0e   :  { %6647 = vrcp.f32 %v4915_v29  ;;  %v5756_v29 = vld [vmem:[%s7817_s8 + $0x6] sm:$0x3] }
0x2d11   :  { %v4926_v51 = vpop.permute.xlu0 %4925 }
0x2d12   :  { %6409 = vmatprep.subr.mxu0 %v4926_v51 }
0x2d13   :  { %6410 = vmatpush3.msra.mxu0 %v4926_v51 }
0x2d14   :  { %6411 = vmatprep.subr.mxu0 %v4924_v33 }
0x2d15   :  { %6412 = vmatpush3.msra.mxu0 %v4924_v33  ;;  %v5021_v6 = vpop.permute.xlu0 %5020  ;;  %v5171_v33 = vrot.slane %v5756_v29, %v6808_v28 }
0x2d16   :  { %6416 = vmatprep.subr.mxu0 %v5751_v32  ;;  %v5036_v9 = vsel %vm286_vm2, %v5034_v7, %v5021_v6  ;;  %v5769_v6 = vld [vmem:[%s7820_s11 + $0xe0] sm:$0xff]  ;;  %v5768_v7 = vld [vmem:[%s7820_s11 + $0xd8] sm:$0xff] }
0x2d17   :  { %v6646_v53 = vpop.eup %6645 }
0x2d18   :  { %v4922_v61 = vmul.f32 %v6646_v53, %v6642_v43 }
0x2d1b   :  { %v6648_v59 = vpop.eup %6647 }
0x2d1c   :  { %v4921_v60 = vmul.f32 %v6648_v59, %v6644_v35 }
0x2d1e   :  { %6413 = vmatprep.mubr.msk.f32.mxu0 %vm286_vm2, %v4921_v60  ;;  %v5177_v60 = vrot.slane %v5756_v29, %v6813_v30 }
0x2d1f   :  { %6414 = vmatmul.mubr.msk.f32.vlgmr.msra.gmra.mxu0 %vm286_vm2, %v4922_v61 }
0x2d20   :  { %6417 = vmatpush3.msra.mxu0 %v5751_v32 }
0x2d21   :  { %6418 = vmatprep.subr.mxu0 %v5750_v62 }
0x2d22   :  { %6419 = vmatpush3.msra.mxu0 %v5750_v62 }
0x2d23   :  { %6420 = vmatprep.subr.mxu0 %v5749_v57 }
0x2d24   :  { %6421 = vmatpush3.msra.mxu0 %v5749_v57 }
0x2d25   :  { %6422 = vmatprep.subr.mxu0 %v5748_v45 }
0x2d26   :  { %6423 = vmatpush3.msra.mxu0 %v5748_v45 }
0x2d27   :  { %6438 = vmatprep.subr.mxu0 %v5772_v1 }
0x2ddf   :  { %v6415_v63 = vpop.f32.mrf.mxu0 }
0x2de0   :  { %5030 = vrot.lane.b32.xlu1 %v6415_v63, %s7858_s16 }
0x2de1   :  { %v5001_v0 = vpop.f32.mrf.mxu0 }
0x2de2   :  { %5028 = vrot.lane.b32.xlu0 %v5001_v0, %s7858_s16 }
0x2e52   :  { %v5031_v8 = vpop.permute.xlu1 %5030 }
0x2e53   :  { %v5039_v15 = vsel %vm1036_vm3, %v5037_v11, %v5031_v8  ;;  %v5767_v8 = vld [vmem:[%s7820_s11 + $0xd0] sm:$0xff] }
0x2e54   :  { %v5029_v10 = vpop.permute.xlu0 %5028 }
0x2e55   :  { %v5038_v12 = vsel %vm1036_vm3, %v5036_v9, %v5029_v10  ;;  %v5765_v9 = vld [vmem:[%s7820_s11 + $0xc0] sm:$0xff] }
0x2e56   :  { %6424 = vmatprep.mubr.msk.f32.mxu0 %vm56_vm0, %v5038_v12  ;;  %v5762_v10 = vld [vmem:[%s7819_s10 + $0x3] ss:$0 sm:$0xff] }
0x2e57   :  { %6425 = vmatmul.mubr.msk.f32.vlgmr.msra.gmra.mxu0 %vm56_vm0, %v5039_v15 }
0x2e58   :  { %6439 = vmatpush3.msra.mxu0 %v5772_v1 }
0x2e59   :  { %6440 = vmatprep.subr.mxu0 %v5771_v4 }
0x2e5a   :  { %6441 = vmatpush3.msra.mxu0 %v5771_v4 }
0x2e5b   :  { %6442 = vmatprep.subr.mxu0 %v5770_v5 }
0x2e5c   :  { %6443 = vmatpush3.msra.mxu0 %v5770_v5 }
0x2e5d   :  { %6444 = vmatprep.subr.mxu0 %v5769_v6 }
0x2e5e   :  { %6445 = vmatpush3.msra.mxu0 %v5769_v6  ;;  %v5777_v6 = vld [vmem:[%s7822_s13 + $0x6] sm:$0x3] }
0x2e5f   :  { %6446 = vmatprep.subr.mxu0 %v5768_v7 }
0x2e60   :  { %6447 = vmatpush3.msra.mxu0 %v5768_v7 }
0x2e61   :  { %6448 = vmatprep.subr.mxu0 %v5767_v8 }
0x2e62   :  { %6449 = vmatpush3.msra.mxu0 %v5767_v8  ;;  %v5427_v8 = vrot.slane %v5777_v6, %v6808_v28 }
0x2e63   :  { %6450 = vmatprep.subr.mxu0 %v5766_v52 }
0x2e64   :  { %6451 = vmatpush3.msra.mxu0 %v5766_v52 }
0x2e65   :  { %6452 = vmatprep.subr.mxu0 %v5765_v9 }
0x2e66   :  { %6453 = vmatpush3.msra.mxu0 %v5765_v9 }
0x2f17   :  { %v6426_v56 = vpop.f32.mrf.mxu0 }
0x2f18   :  { %v5131_v17 = vadd.f32 %v6426_v56, %v5753_v22 }
0x2f19   :  { %v5125_v47 = vpop.f32.mrf.mxu0 }
0x2f1a   :  { %v5135_v54 = vadd.f32 %v5131_v17, %v7551_v27  ;;  %v5126_v18 = vadd.f32 %v5753_v22, %v5125_v47 }
0x2f1c   :  { %v5134_v19 = vadd.f32 %v5126_v18, %v7549_v16  ;;  %v5141_v20 = vsel %vm56_vm0, %v5135_v54, 0.0  ;;  %v5147_v26 = vmul.f32 %v5135_v54, %v5135_v54 }
0x2f1d   :  { %5142 = vadd.xlane.f32.xlu1 %v5141_v20 }
0x2f1e   :  { %v5138_v21 = vsel %vm56_vm0, %v5134_v19, 0.0  ;;  %v5146_v24 = vmul.f32 %v5134_v19, %v5134_v19  ;;  %v5151_v42 = vsel %vm56_vm0, %v5147_v26, 0.0 }
0x2f1f   :  { %5139 = vadd.xlane.f32.xlu0 %v5138_v21 }
0x2f20   :  { %v5148_v25 = vsel %vm56_vm0, %v5146_v24, 0.0 }
0x2f23   :  { %5149 = vadd.xlane.f32.xlu0 %v5148_v25 }
0x2f27   :  { %5152 = vadd.xlane.f32.xlu0 %v5151_v42 }
0x2fa6   :  { %v5143_v37 = vpop.xlane.xlu1 %5142 }
0x2fa7   :  { %v5145_v38 = vmul.f32 0.03125, %v5143_v37  ;;  %v5774_v37 = vld [vmem:[%s7821_s12 + $0x3] ss:$0 sm:$0xff] }
0x2fa8   :  { %v5140_v34 = vpop.xlane.xlu0 %5139 }
0x2fa9   :  { %v5144_v36 = vmul.f32 0.03125, %v5140_v34  ;;  %v5157_v43 = vmul.f32 %v5145_v38, %v5145_v38  ;;  %v5161_v61 = vsub.f32 %v5135_v54, %v5145_v38 }
0x2fab   :  { %v5156_v23 = vmul.f32 %v5144_v36, %v5144_v36  ;;  %v5160_v51 = vsub.f32 %v5134_v19, %v5144_v36 }
0x2fac   :  { %v5150_v46 = vpop.xlane.xlu0 %5149 }
0x2fad   :  { %v5154_v39 = vmul.f32 0.03125, %v5150_v46 }
0x2faf   :  { %v5158_v58 = vsub.f32 %v5154_v39, %v5156_v23 }
0x2fb0   :  { %v5153_v41 = vpop.xlane.xlu0 %5152 }
0x2fb1   :  { %v5162_v55 = vadd.f32 1e-12, %v5158_v58  ;;  %v5155_v35 = vmul.f32 0.03125, %v5153_v41 }
0x2fb3   :  { %6649 = vrsqrt.f32 %v5162_v55  ;;  %v5159_v44 = vsub.f32 %v5155_v35, %v5157_v43 }
0x2fb5   :  { %v5163_v48 = vadd.f32 1e-12, %v5159_v44 }
0x2fb7   :  { %6651 = vrsqrt.f32 %v5163_v48 }
0x2fc0   :  { %v6650_v53 = vpop.eup %6649 }
0x2fc1   :  { %v5166_v59 = vmul.f32 %v6650_v53, %v5160_v51  ;;  %v6703_v51 = vmov 0.0  }
0x2fc2   :  { %6457 = vmatprep.subr.mxu1 %v6703_v51 }
0x2fc3   :  { %v5172_v32 = vmul.f32 %v5171_v33, %v5166_v59 }
0x2fc4   :  { %v6652_v62 = vpop.eup %6651 }
0x2fc5   :  { %v5167_v57 = vmul.f32 %v6652_v62, %v5161_v61  ;;  %v5178_v45 = vadd.f32 %v5177_v60, %v5172_v32 }
0x2fc7   :  { %v5173_v63 = vmul.f32 %v5171_v33, %v5167_v57  ;;  %6435 = vmatprep.mubr.msk.f32.mxu1 %vm56_vm0, %v5178_v45 }
0x2fc9   :  { %v5179_v0 = vadd.f32 %v5177_v60, %v5173_v63 }
0x2fcb   :  { %6436 = vmatmul.mubr.msk.f32.vlgmr.msra.gmra.mxu1 %vm56_vm0, %v5179_v0 }
0x2fcc   :  { %6461 = vmatprep.mubr.msk.f32.mxu1 %vm6704_vm5, %v6703_v51 }
0x308b   :  { %v6437_v11 = vpop.f32.mrf.mxu1 }
0x308c   :  { %v5271_v12 = vadd.f32 %v6437_v11, %v5762_v10  ;;  %v5433_v11 = vrot.slane %v5777_v6, %v6813_v30 }
0x308d   :  { %v5265_v15 = vpop.f32.mrf.mxu1 }
0x308e   :  { %v5277_v22 = vmul.f32 0.044715, %v5271_v12  ;;  %v5266_v56 = vadd.f32 %v5762_v10, %v5265_v15  ;;  %v5275_v31 = vmul.f32 0.5, %v5271_v12  ;;  %v2765_v15 = vadd.f32 %v7315_v50, %v7069_v14  ;;  %v5440_v14 = vld [vmem:[%s7809_s0] sm:$0x3] }
0x3090   :  { %v5279_v17 = vmul.f32 %v5277_v22, %v5271_v12  ;;  %v5276_v47 = vmul.f32 0.044715, %v5266_v56  ;;  %v5274_v3 = vmul.f32 0.5, %v5266_v56 }
0x3092   :  { %v5281_v54 = vmul.f32 %v5279_v17, %v5271_v12  ;;  %v5278_v18 = vmul.f32 %v5276_v47, %v5266_v56  ;;  %v4101_v17 = vadd.f32 %v7551_v27, %v2765_v15 }
0x3094   :  { %v5283_v19 = vadd.f32 %v5281_v54, %v5271_v12  ;;  %v5280_v20 = vmul.f32 %v5278_v18, %v5266_v56  ;;  %v2764_v54 = vadd.f32 %v7313_v49, %v7067_v13  ;;  %v5517_v13 = vld [vmem:[%s7823_s14 + $0x3] sm:$0x1] }
0x3095   :  { %v5523_v49 = vadd.f32 1e-05, %v5517_v13 }
0x3096   :  { %v5285_v21 = vmul.f32 0.7978846, %v5283_v19  ;;  %v5282_v24 = vadd.f32 %v5280_v20, %v5266_v56  ;;  %v4100_v20 = vadd.f32 %v7549_v16, %v2764_v54  ;;  %v5779_v16 = vld [vmem:[%s7823_s14 + $0x2] ss:$0 sm:$0xff] }
0x3098   :  { %6653 = vtanh.f32 %v5285_v21  ;;  %v5284_v25 = vmul.f32 0.7978846, %v5282_v24 }
0x309a   :  { %6655 = vtanh.f32 %v5284_v25 }
0x30a5   :  { %v6654_v26 = vpop.eup %6653 }
0x30a6   :  { %v5289_v40 = vadd.f32 1.0, %v6654_v26 }
0x30a7   :  { %v6656_v42 = vpop.eup %6655 }
0x30a8   :  { %v5288_v2 = vadd.f32 1.0, %v6656_v42  ;;  %v5291_v36 = vmul.f32 %v5289_v40, %v5275_v31  ;;  %v5780_v40 = vld [vmem:[%s7823_s14] ss:$0 sm:$0xff]  ;;  %v5781_v31 = vld [vmem:[%s7823_s14 + $0x1] ss:$0 sm:$0xff] }
0x30aa   :  { %v5290_v34 = vmul.f32 %v5288_v2, %v5274_v3 }
0x30ac   :  { %6454 = vmatprep.mubr.msk.f32.mxu0 %vm1301_vm4, %v5290_v34 }
0x30ad   :  { %6455 = vmatmul.mubr.msk.f32.vlgmr.msra.gmra.mxu0 %vm1301_vm4, %v5291_v36 }
0x316d   :  { %v6456_v46 = vpop.f32.mrf.mxu0 }
0x316e   :  { %v5387_v38 = vadd.f32 %v6456_v46, %v5774_v37 }
0x316f   :  { %v5381_v23 = vpop.f32.mrf.mxu0 }
0x3170   :  { %v5391_v39 = vadd.f32 %v5387_v38, %v5179_v0  ;;  %v5382_v58 = vadd.f32 %v5774_v37, %v5381_v23 }
0x3172   :  { %v5390_v41 = vadd.f32 %v5382_v58, %v5178_v45  ;;  %v5397_v43 = vsel %vm56_vm0, %v5391_v39, 0.0  ;;  %v5403_v55 = vmul.f32 %v5391_v39, %v5391_v39 }
0x3173   :  { %5398 = vadd.xlane.f32.xlu0 %v5397_v43 }
0x3174   :  { %v5394_v35 = vsel %vm56_vm0, %v5390_v41, 0.0  ;;  %v5402_v44 = vmul.f32 %v5390_v41, %v5390_v41  ;;  %v5407_v48 = vsel %vm56_vm0, %v5403_v55, 0.0 }
0x3175   :  { %5395 = vadd.xlane.f32.xlu1 %v5394_v35 }
0x3176   :  { %v5404_v29 = vsel %vm56_vm0, %v5402_v44, 0.0 }
0x3177   :  { %5408 = vadd.xlane.f32.xlu0 %v5407_v48 }
0x3179   :  { %5405 = vadd.xlane.f32.xlu1 %v5404_v29 }
0x31fc   :  { %v5399_v33 = vpop.xlane.xlu0 %5398 }
0x31fd   :  { %v5401_v53 = vmul.f32 0.03125, %v5399_v33 }
0x31fe   :  { %v5396_v59 = vpop.xlane.xlu1 %5395 }
0x31ff   :  { %v5400_v60 = vmul.f32 0.03125, %v5396_v59  ;;  %v5413_v32 = vmul.f32 %v5401_v53, %v5401_v53  ;;  %v5417_v7 = vsub.f32 %v5391_v39, %v5401_v53 }
0x3200   :  { %v5409_v61 = vpop.xlane.xlu0 %5408 }
0x3201   :  { %v5411_v62 = vmul.f32 0.03125, %v5409_v61  ;;  %v5412_v45 = vmul.f32 %v5400_v60, %v5400_v60  ;;  %v5416_v9 = vsub.f32 %v5390_v41, %v5400_v60 }
0x3202   :  { %v5406_v57 = vpop.xlane.xlu1 %5405 }
0x3203   :  { %v5415_v63 = vsub.f32 %v5411_v62, %v5413_v32  ;;  %v5410_v0 = vmul.f32 0.03125, %v5406_v57 }
0x3205   :  { %v5419_v1 = vadd.f32 1e-12, %v5415_v63  ;;  %v5414_v4 = vsub.f32 %v5410_v0, %v5412_v45 }
0x3207   :  { %6657 = vrsqrt.f32 %v5419_v1  ;;  %v5418_v5 = vadd.f32 1e-12, %v5414_v4 }
0x3209   :  { %6659 = vrsqrt.f32 %v5418_v5 }
0x320a   :  { %6661 = vrsqrt.f32 %v5523_v49 }
0x3214   :  { %v6658_v52 = vpop.eup %6657 }
0x3215   :  { %v5423_v10 = vmul.f32 %v6658_v52, %v5417_v7 }
0x3216   :  { %v6660_v12 = vpop.eup %6659 }
0x3217   :  { %v5429_v22 = vmul.f32 %v5427_v8, %v5423_v10  ;;  %v5422_v56 = vmul.f32 %v6660_v12, %v5416_v9  ;;  %v6662_v50 = vpop.eup %6661 }
0x3218   :  { %v5528_v27 = vrot.slane %v6662_v50, %v6808_v28 }
0x3219   :  { %v5435_v47 = vadd.f32 %v5433_v11, %v5429_v22  ;;  %v5428_v18 = vmul.f32 %v5427_v8, %v5422_v56 }
0x321b   :  { %v5437_v19 = vadd.f32 %v5435_v47, %v4101_v17  ;;  %v5434_v21 = vadd.f32 %v5433_v11, %v5428_v18 }
0x321d   :  { %v5439_v24 = vmul.f32 0.25, %v5437_v19  ;;  %v5436_v25 = vadd.f32 %v5434_v21, %v4100_v20 }
0x321f   :  { %6458 = vmatpush3.msra.mxu1 %v5439_v24  ;;  %v5438_v30 = vmul.f32 0.25, %v5436_v25 }
0x3220   :  { %6459 = vmatprep.subr.mxu1 %v6703_v51 }
0x3221   :  { %6460 = vmatpush3.msra.mxu1 %v5438_v30 }
0x3222   :  { %6462 = vmatmul.mubr.msk.f32.vlgmr.msra.gmra.mxu1 %vm286_vm2, %v5440_v14 }
0x32e2   :  { %v5510_v26 = vpop.f32.mrf.mxu1 }
0x32e3   :  { %v5522_v42 = vsub.f32 %v5510_v26, %v5779_v16 }
0x32e4   :  { %v6463_v3 = vpop.f32.mrf.mxu1 }
0x32e5   :  { %v5529_v2 = vmul.f32 %v5528_v27, %v5522_v42 }
0x32e7   :  { %v5534_v34 = vmul.f32 %v5780_v40, %v5529_v2 }
0x32e9   :  { %v5539_v36 = vadd.f32 %v5781_v31, %v5534_v34 }
0x32eb   :  { %5541 = vst.msk [vmem:[#allocation2] sm:$0x3] %vm5540_vm6, %v5539_v36 }
0x32ec   :  { %6678 = shalt.err (!%p6675_p4)
}
0x32ed   :  { %s7868_s20 = sld [smem:[#allocation5_spill]] }
0x32f3   :  { %5551 = dma.vmem_to_hbm [thread:$0]  %s5549_s4, 32, %s7868_s20, [#allocation3]  }
0x32f4   :  { %6687 = dma.done.wait [#allocation3], 32  }
0x32f5   :  { %6688 = vsyncadd [#allocation3], 4294967264 }
0x32f6   :  { %5555 = vsyncpa [#allocation3], 1 }

</bundles_post_ra>
